<compile_context>
chip_gen: v6e
topology: v6e:2x2x1
jax: 0.10.0
libtpu: 0.0.40
codegen_flags: <defaults>
</compile_context>

<pallas_src>
import math
import numpy as np

import jax
import jax.numpy as jnp
from jax.experimental import pallas as pl
from jax.experimental.pallas import tpu as pltpu

_VMEM = pl.BlockSpec(memory_space=pltpu.MemorySpace.VMEM)


# ----------------------------------------------------------------------------
# Deterministic synthetic parameter init (shapes follow the reference module)
# ----------------------------------------------------------------------------
def _init_linear(key, fan_in, fan_out):
    k1, k2 = jax.random.split(key)
    bound = 1.0 / math.sqrt(fan_in)
    W = jax.random.uniform(k1, (fan_in, fan_out), jnp.float32, -bound, bound)
    b = jax.random.uniform(k2, (1, fan_out), jnp.float32, -bound, bound)
    return W, b


def _init_mlp(key, in_dim, cond_dim, hidden_dim, out_dim, depth):
    """BasicFullyConnectedNet: Linear(in+cond,h)+LReLU, depth*[Linear(h,h)+LReLU], Linear(h,out)."""
    keys = jax.random.split(key, depth + 2)
    W0, b0 = _init_linear(keys[0], in_dim + cond_dim, hidden_dim)
    hidden = [_init_linear(keys[1 + d], hidden_dim, hidden_dim) for d in range(depth)]
    Wf, bf = _init_linear(keys[-1], hidden_dim, out_dim)
    return dict(W0a=W0[:in_dim], W0c=W0[in_dim:], b0=b0, hidden=hidden, Wf=Wf, bf=bf)


def _block_diag(a, b):
    ha, wa = a.shape
    hb, wb = b.shape
    top = jnp.concatenate([a, jnp.zeros((ha, wb), a.dtype)], axis=1)
    bot = jnp.concatenate([jnp.zeros((hb, wa), b.dtype), b], axis=1)
    return jnp.concatenate([top, bot], axis=0)


def _init_subflow(key, in_ch, cond_dim, hidden_dim, depth, n_flow):
    """Build packed parameter slabs for one ConditionalFlow (n_flow blocks)."""
    C, D2, H, E = in_ch, in_ch // 2, hidden_dim, cond_dim
    loc, scale, perm = [], [], []
    w0a, w0c, b0 = [], [], []
    wh, bh = [], []
    wf, bfin = [], []
    keys = jax.random.split(key, n_flow)
    for k in keys:
        k_an, k_s0, k_t0, k_s1, k_t1, k_p = jax.random.split(k, 6)
        loc.append(jnp.zeros((1, C), jnp.float32))
        scale.append((1.0 + 0.1 * jax.random.normal(k_an, (1, C))).astype(jnp.float32))
        # Shuffle: fixed random permutation, stored as a one-hot matrix so the
        # kernel can apply it with an MXU matmul (h @ P == h[:, p]).
        p = jax.random.permutation(k_p, C)
        pm = jnp.zeros((C, C), jnp.float32).at[p, jnp.arange(C)].set(1.0)
        perm.append(pm)
        for ks, kt in ((k_s0, k_t0), (k_s1, k_t1)):   # two coupling half-steps
            s = _init_mlp(ks, D2, E, H, D2, depth)
            t = _init_mlp(kt, D2, E, H, D2, depth)
            # Merge s/t nets: first layer by column concat, rest block-diagonal
            # so the [s-lanes | t-lanes] halves stay independent.
            w0a.append(jnp.concatenate([s['W0a'], t['W0a']], axis=1))   # (D2, 2H)
            w0c.append(jnp.concatenate([s['W0c'], t['W0c']], axis=1))   # (E , 2H)
            b0.append(jnp.concatenate([s['b0'], t['b0']], axis=1))      # (1 , 2H)
            for d in range(depth):
                wh.append(_block_diag(s['hidden'][d][0], t['hidden'][d][0]))   # (2H,2H)
                bh.append(jnp.concatenate([s['hidden'][d][1], t['hidden'][d][1]], axis=1))
            wf.append(_block_diag(s['Wf'], t['Wf']))                     # (2H, 2*D2)
            bfin.append(jnp.concatenate([s['bf'], t['bf']], axis=1))     # (1 , 2*D2)

    bf16 = lambda xs: jnp.stack(xs).astype(jnp.bfloat16)
    slabs = [jnp.stack(loc), jnp.stack(scale), jnp.stack(perm),
             bf16(w0a), bf16(w0c), jnp.stack(b0)]
    if depth > 0:
        slabs += [bf16(wh), jnp.stack(bh)]
    slabs += [bf16(wf), jnp.stack(bfin)]
    cfg = dict(C=C, D2=D2, H=H, n_flow=n_flow)
    return cfg, slabs


# ----------------------------------------------------------------------------
# The single fused kernel: entire ConditionalFlatSplitFlow.f
# ----------------------------------------------------------------------------
def _make_fused_kernel(cfgs, depth, n_slabs):
    def kernel(*refs):
        x_ref, cond_ref = refs[0], refs[1]
        z_ref, ld_ref = refs[-2], refs[-1]
        prefs = refs[2:-2]

        def leaky(v, slope):
            return jnp.where(v >= 0.0, v, slope * v)

        cond_bf = cond_ref[...].astype(jnp.bfloat16)        # reused by all couplings
        h = x_ref[...]                                      # (B, dim) f32
        logdet = jnp.zeros((h.shape[0], 1), jnp.float32)
        z_parts = []

        for si, cfg in enumerate(cfgs):
            base = si * n_slabs
            loc_r, scale_r, perm_r, w0a_r, w0c_r, b0_r = prefs[base:base + 6]
            off = base + 6
            if depth > 0:
                wh_r, bh_r = prefs[off:off + 2]
                off += 2
            wf_r, bfin_r = prefs[off:off + 2]

            D2 = cfg["D2"]
            for f in range(cfg["n_flow"]):
                # --- ActNorm (logdet hoisted to host) + invertible LeakyReLU(0.9)
                h = scale_r[f] * (h + loc_r[f])
                h = leaky(h, 0.9)
                # --- ConditionalDoubleVectorCouplingBlock: two half-steps -----
                xa, xb = h[:, :D2], h[:, D2:]
                for half in range(2):
                    ci = 2 * f + half
                    hb = jnp.dot(xa.astype(jnp.bfloat16), w0a_r[ci],
                                 preferred_element_type=jnp.float32)
                    hb = hb + jnp.dot(cond_bf, w0c_r[ci],
                                      preferred_element_type=jnp.float32)
                    hb = leaky(hb + b0_r[ci], 0.01)
                    for d in range(depth):
                        li = ci * depth + d
                        hb = jnp.dot(hb.astype(jnp.bfloat16), wh_r[li],
                                     preferred_element_type=jnp.float32) + bh_r[li]
                        hb = leaky(hb, 0.01)
                    st = jnp.dot(hb.astype(jnp.bfloat16), wf_r[ci],
                                 preferred_element_type=jnp.float32) + bfin_r[ci]
                    s = jnp.tanh(st[:, :D2])            # scale net has tanh
                    t = st[:, D2:]                      # translation net
                    xb = xb * jnp.exp(s) + t
                    logdet = logdet + jnp.sum(s, axis=1, keepdims=True)
                    if half == 0:
                        xa, xb = xb, xa                 # swap halves for step 1
                h = jnp.concatenate([xa, xb], axis=1)
                # --- Shuffle: one-hot permutation matmul (exact, f32, MXU slack)
                h = jnp.dot(h, perm_r[f], preferred_element_type=jnp.float32)

            # early Gaussianization split
            d_out = cfg["dim_out"]
            if d_out > 0:
                z_parts.append(h[:, :d_out])
                h = h[:, d_out:]

        z_parts.append(h)
        z = jnp.concatenate(z_parts, axis=1) if len(z_parts) > 1 else z_parts[0]
        z_ref[...] = z                      # single lane-dense activation write
        ld_ref[...] = logdet                # single (B,1) write at the end
    return kernel


# ----------------------------------------------------------------------------
# ConditionalFlatSplitFlow
# ----------------------------------------------------------------------------
class ConditionalFlatSplitFlowPallas:
    def __init__(self, n_scale, dim, n_flow_sub, submodule_depth,
                 hidden_dim_multiplier, embedding_dim, key):
        self.n_scale = n_scale
        self.z_dim = dim
        dims = self.make_dims(n_scale, dim)
        self.all_dims = dims + [dims[-1]]
        diffs = np.abs(np.diff(np.array(dims)))
        assert diffs[-1] > 1
        self.dim_diffs = list(diffs) + [diffs[-1] // 2, diffs[-1] // 2]
        self.depth = submodule_depth
        self.embedding_dim = embedding_dim

        keys = jax.random.split(key, len(dims))
        self.cfgs = []
        self.params = []
        for i, (k, d) in enumerate(zip(keys, dims)):
            cfg, slabs = _init_subflow(k, d, embedding_dim,
                                       d * hidden_dim_multiplier,
                                       submodule_depth, n_flow_sub)
            cfg["dim_out"] = self.all_dims[i] - self.all_dims[i + 1]
            self.cfgs.append(cfg)
            self.params += slabs
        self.n_slabs = len(self.params) // len(dims)

        # ActNorm logdet is data-independent (H=W=1): precompute on host.
        scale_slabs = [self.params[i * self.n_slabs + 1] for i in range(len(dims))]
        self.actnorm_logdet = float(sum(jnp.sum(jnp.log(jnp.abs(s))) for s in scale_slabs))

        kernel = _make_fused_kernel(tuple(self.cfgs), self.depth, self.n_slabs)

        # Rough advisory cost numbers (per batch row).
        flops_row, trans_row = 0, 0
        for cfg in self.cfgs:
            C, D2, H, nf = cfg["C"], cfg["D2"], cfg["H"], cfg["n_flow"]
            per_half = 2 * (D2 * 2 * H + embedding_dim * 2 * H
                            + submodule_depth * (2 * H) * (2 * H) + 2 * H * 2 * D2)
            flops_row += nf * (2 * per_half + 2 * C * C)
            trans_row += nf * 2 * 2 * D2
        param_bytes = sum(int(np.prod(p.shape)) * p.dtype.itemsize for p in self.params)
        actnorm_logdet = self.actnorm_logdet

        def fwd(x, cond, params):
            B, D = x.shape
            ce = pl.CostEstimate(
                flops=B * flops_row,
                transcendentals=B * trans_row,
                bytes_accessed=param_bytes + 4 * (x.size + cond.size + B * (D + 1)))
            z, ld = pl.pallas_call(
                kernel,
                out_shape=(jax.ShapeDtypeStruct((B, D), jnp.float32),
                           jax.ShapeDtypeStruct((B, 1), jnp.float32)),
                in_specs=[_VMEM] * (2 + len(params)),
                out_specs=(_VMEM, _VMEM),
                cost_estimate=ce,
            )(x, cond, *params)
            return z, ld[:, 0] + actnorm_logdet

        self._fwd = jax.jit(fwd)

    @staticmethod
    def make_dims(n_factor, z_dim):
        dims = [z_dim, 2 ** int(np.log2(z_dim))]
        for n in range(1, n_factor):
            dims.append(dims[-1] // 2)
        assert dims[-1] > 0
        return dims

    def forward(self, x, condition, reverse=False):
        assert not reverse  # TODO(synk): reverse path (g) not implemented
        return self._fwd(x, condition, self.params)


# ----------------------------------------------------------------------------
if __name__ == "__main__":
    key = jax.random.PRNGKey(0)
    k_param, k_x, k_c = jax.random.split(key, 3)

    # small, forward-consistent shapes
    B = 8
    n_scale = 2
    dim = 24                  # not a power of 2 -> splits 24 -> 16 -> 8
    n_flow_sub = 2
    submodule_depth = 1
    hidden_dim_multiplier = 2
    embedding_dim = 16

    model = ConditionalFlatSplitFlowPallas(
        n_scale, dim, n_flow_sub, submodule_depth,
        hidden_dim_multiplier, embedding_dim, k_param)

    x = jax.random.normal(k_x, (B, dim), jnp.float32)        # (B, C) == (B, C, 1, 1)
    condition = jax.random.normal(k_c, (B, embedding_dim), jnp.float32)

    z, logdet = model.forward(x, condition, reverse=False)
    jax.block_until_ready((z, logdet))

    assert z.shape == (B, dim), z.shape
    assert logdet.shape == (B,), logdet.shape
    assert bool(jnp.all(jnp.isfinite(z))) and bool(jnp.all(jnp.isfinite(logdet)))
    print("KERNEL_OK")
</pallas_src>

<mosaic_0001>
module attributes {stable_mosaic.version = 11 : i64} {
  func.func @kernel(%arg0: memref<8x24xf32, #tpu.memory_space<vmem>>, %arg1: memref<8x16xf32, #tpu.memory_space<vmem>>, %arg2: memref<2x1x24xf32, #tpu.memory_space<vmem>>, %arg3: memref<2x1x24xf32, #tpu.memory_space<vmem>>, %arg4: memref<2x24x24xf32, #tpu.memory_space<vmem>>, %arg5: memref<4x12x96xbf16, #tpu.memory_space<vmem>>, %arg6: memref<4x16x96xbf16, #tpu.memory_space<vmem>>, %arg7: memref<4x1x96xf32, #tpu.memory_space<vmem>>, %arg8: memref<4x96x96xbf16, #tpu.memory_space<vmem>>, %arg9: memref<4x1x96xf32, #tpu.memory_space<vmem>>, %arg10: memref<4x96x24xbf16, #tpu.memory_space<vmem>>, %arg11: memref<4x1x24xf32, #tpu.memory_space<vmem>>, %arg12: memref<2x1x16xf32, #tpu.memory_space<vmem>>, %arg13: memref<2x1x16xf32, #tpu.memory_space<vmem>>, %arg14: memref<2x16x16xf32, #tpu.memory_space<vmem>>, %arg15: memref<4x8x64xbf16, #tpu.memory_space<vmem>>, %arg16: memref<4x16x64xbf16, #tpu.memory_space<vmem>>, %arg17: memref<4x1x64xf32, #tpu.memory_space<vmem>>, %arg18: memref<4x64x64xbf16, #tpu.memory_space<vmem>>, %arg19: memref<4x1x64xf32, #tpu.memory_space<vmem>>, %arg20: memref<4x64x16xbf16, #tpu.memory_space<vmem>>, %arg21: memref<4x1x16xf32, #tpu.memory_space<vmem>>, %arg22: memref<2x1x8xf32, #tpu.memory_space<vmem>>, %arg23: memref<2x1x8xf32, #tpu.memory_space<vmem>>, %arg24: memref<2x8x8xf32, #tpu.memory_space<vmem>>, %arg25: memref<4x4x32xbf16, #tpu.memory_space<vmem>>, %arg26: memref<4x16x32xbf16, #tpu.memory_space<vmem>>, %arg27: memref<4x1x32xf32, #tpu.memory_space<vmem>>, %arg28: memref<4x32x32xbf16, #tpu.memory_space<vmem>>, %arg29: memref<4x1x32xf32, #tpu.memory_space<vmem>>, %arg30: memref<4x32x8xbf16, #tpu.memory_space<vmem>>, %arg31: memref<4x1x8xf32, #tpu.memory_space<vmem>>, %arg32: memref<8x24xf32, #tpu.memory_space<vmem>>, %arg33: memref<8x1xf32, #tpu.memory_space<vmem>>) attributes {dimension_semantics = [], scalar_prefetch = 0 : i64, scratch_operands = 0 : i64, tpu.core_type = #tpu.core_type<tc>} {
    %c0 = arith.constant 0 : index
    %c0_0 = arith.constant 0 : index
    %0 = vector.load %arg1[%c0, %c0_0] : memref<8x16xf32, #tpu.memory_space<vmem>>, vector<8x16xf32>
    %1 = arith.truncf %0 : vector<8x16xf32> to vector<8x16xbf16>
    %c0_1 = arith.constant 0 : index
    %c0_2 = arith.constant 0 : index
    %2 = vector.load %arg0[%c0_1, %c0_2] : memref<8x24xf32, #tpu.memory_space<vmem>>, vector<8x24xf32>
    %cst = arith.constant 0.000000e+00 : f32
    %3 = vector.broadcast %cst : f32 to vector<8x1xf32>
    %c0_3 = arith.constant 0 : index
    %c0_4 = arith.constant 0 : index
    %c0_5 = arith.constant 0 : index
    %4 = vector.load %arg3[%c0_3, %c0_4, %c0_5] : memref<2x1x24xf32, #tpu.memory_space<vmem>>, vector<1x1x24xf32>
    %5 = vector.shape_cast %4 : vector<1x1x24xf32> to vector<1x24xf32>
    %c0_6 = arith.constant 0 : index
    %c0_7 = arith.constant 0 : index
    %c0_8 = arith.constant 0 : index
    %6 = vector.load %arg2[%c0_6, %c0_7, %c0_8] : memref<2x1x24xf32, #tpu.memory_space<vmem>>, vector<1x1x24xf32>
    %7 = vector.shape_cast %6 : vector<1x1x24xf32> to vector<1x24xf32>
    %8 = vector.broadcast %7 : vector<1x24xf32> to vector<8x24xf32>
    %9 = arith.addf %2, %8 : vector<8x24xf32>
    %10 = vector.broadcast %5 : vector<1x24xf32> to vector<8x24xf32>
    %11 = arith.mulf %10, %9 : vector<8x24xf32>
    %cst_9 = arith.constant 0.000000e+00 : f32
    %12 = vector.broadcast %cst_9 : f32 to vector<8x24xf32>
    %13 = arith.cmpf oge, %11, %12 : vector<8x24xf32>
    %cst_10 = arith.constant 0.899999976 : f32
    %14 = vector.broadcast %cst_10 : f32 to vector<8x24xf32>
    %15 = arith.mulf %14, %11 : vector<8x24xf32>
    %16 = arith.select %13, %11, %15 : vector<8x24xi1>, vector<8x24xf32>
    %17 = vector.extract_strided_slice %16 {offsets = [0, 0], sizes = [8, 12], strides = [1, 1]} : vector<8x24xf32> to vector<8x12xf32>
    %18 = vector.extract_strided_slice %16 {offsets = [0, 12], sizes = [8, 12], strides = [1, 1]} : vector<8x24xf32> to vector<8x12xf32>
    %19 = arith.truncf %17 : vector<8x12xf32> to vector<8x12xbf16>
    %c0_11 = arith.constant 0 : index
    %c0_12 = arith.constant 0 : index
    %c0_13 = arith.constant 0 : index
    %20 = vector.load %arg5[%c0_11, %c0_12, %c0_13] : memref<4x12x96xbf16, #tpu.memory_space<vmem>>, vector<1x12x96xbf16>
    %21 = vector.shape_cast %20 : vector<1x12x96xbf16> to vector<12x96xbf16>
    %cst_14 = arith.constant dense<0.000000e+00> : vector<8x96xf32>
    %22 = tpu.matmul %19, %21, %cst_14 {dimension_numbers = #tpu.dot_dimension_numbers<[1], [0], [0], [1], [0, 0, 1, 1], [], []>} : vector<8x12xbf16>, vector<12x96xbf16>, vector<8x96xf32> -> vector<8x96xf32>
    %c0_15 = arith.constant 0 : index
    %c0_16 = arith.constant 0 : index
    %c0_17 = arith.constant 0 : index
    %23 = vector.load %arg6[%c0_15, %c0_16, %c0_17] : memref<4x16x96xbf16, #tpu.memory_space<vmem>>, vector<1x16x96xbf16>
    %24 = vector.shape_cast %23 : vector<1x16x96xbf16> to vector<16x96xbf16>
    %cst_18 = arith.constant dense<0.000000e+00> : vector<8x96xf32>
    %25 = tpu.matmul %1, %24, %cst_18 {dimension_numbers = #tpu.dot_dimension_numbers<[1], [0], [0], [1], [0, 0, 1, 1], [], []>} : vector<8x16xbf16>, vector<16x96xbf16>, vector<8x96xf32> -> vector<8x96xf32>
    %26 = arith.addf %22, %25 : vector<8x96xf32>
    %c0_19 = arith.constant 0 : index
    %c0_20 = arith.constant 0 : index
    %c0_21 = arith.constant 0 : index
    %27 = vector.load %arg7[%c0_19, %c0_20, %c0_21] : memref<4x1x96xf32, #tpu.memory_space<vmem>>, vector<1x1x96xf32>
    %28 = vector.shape_cast %27 : vector<1x1x96xf32> to vector<1x96xf32>
    %29 = vector.broadcast %28 : vector<1x96xf32> to vector<8x96xf32>
    %30 = arith.addf %26, %29 : vector<8x96xf32>
    %cst_22 = arith.constant 0.000000e+00 : f32
    %31 = vector.broadcast %cst_22 : f32 to vector<8x96xf32>
    %32 = arith.cmpf oge, %30, %31 : vector<8x96xf32>
    %cst_23 = arith.constant 0.00999999977 : f32
    %33 = vector.broadcast %cst_23 : f32 to vector<8x96xf32>
    %34 = arith.mulf %33, %30 : vector<8x96xf32>
    %35 = arith.select %32, %30, %34 : vector<8x96xi1>, vector<8x96xf32>
    %36 = arith.truncf %35 : vector<8x96xf32> to vector<8x96xbf16>
    %c0_24 = arith.constant 0 : index
    %c0_25 = arith.constant 0 : index
    %c0_26 = arith.constant 0 : index
    %37 = vector.load %arg8[%c0_24, %c0_25, %c0_26] : memref<4x96x96xbf16, #tpu.memory_space<vmem>>, vector<1x96x96xbf16>
    %38 = vector.shape_cast %37 : vector<1x96x96xbf16> to vector<96x96xbf16>
    %cst_27 = arith.constant dense<0.000000e+00> : vector<8x96xf32>
    %39 = tpu.matmul %36, %38, %cst_27 {dimension_numbers = #tpu.dot_dimension_numbers<[1], [0], [0], [1], [0, 0, 1, 1], [], []>} : vector<8x96xbf16>, vector<96x96xbf16>, vector<8x96xf32> -> vector<8x96xf32>
    %c0_28 = arith.constant 0 : index
    %c0_29 = arith.constant 0 : index
    %c0_30 = arith.constant 0 : index
    %40 = vector.load %arg9[%c0_28, %c0_29, %c0_30] : memref<4x1x96xf32, #tpu.memory_space<vmem>>, vector<1x1x96xf32>
    %41 = vector.shape_cast %40 : vector<1x1x96xf32> to vector<1x96xf32>
    %42 = vector.broadcast %41 : vector<1x96xf32> to vector<8x96xf32>
    %43 = arith.addf %39, %42 : vector<8x96xf32>
    %cst_31 = arith.constant 0.000000e+00 : f32
    %44 = vector.broadcast %cst_31 : f32 to vector<8x96xf32>
    %45 = arith.cmpf oge, %43, %44 : vector<8x96xf32>
    %cst_32 = arith.constant 0.00999999977 : f32
    %46 = vector.broadcast %cst_32 : f32 to vector<8x96xf32>
    %47 = arith.mulf %46, %43 : vector<8x96xf32>
    %48 = arith.select %45, %43, %47 : vector<8x96xi1>, vector<8x96xf32>
    %49 = arith.truncf %48 : vector<8x96xf32> to vector<8x96xbf16>
    %c0_33 = arith.constant 0 : index
    %c0_34 = arith.constant 0 : index
    %c0_35 = arith.constant 0 : index
    %50 = vector.load %arg10[%c0_33, %c0_34, %c0_35] : memref<4x96x24xbf16, #tpu.memory_space<vmem>>, vector<1x96x24xbf16>
    %51 = vector.shape_cast %50 : vector<1x96x24xbf16> to vector<96x24xbf16>
    %cst_36 = arith.constant dense<0.000000e+00> : vector<8x24xf32>
    %52 = tpu.matmul %49, %51, %cst_36 {dimension_numbers = #tpu.dot_dimension_numbers<[1], [0], [0], [1], [0, 0, 1, 1], [], []>} : vector<8x96xbf16>, vector<96x24xbf16>, vector<8x24xf32> -> vector<8x24xf32>
    %c0_37 = arith.constant 0 : index
    %c0_38 = arith.constant 0 : index
    %c0_39 = arith.constant 0 : index
    %53 = vector.load %arg11[%c0_37, %c0_38, %c0_39] : memref<4x1x24xf32, #tpu.memory_space<vmem>>, vector<1x1x24xf32>
    %54 = vector.shape_cast %53 : vector<1x1x24xf32> to vector<1x24xf32>
    %55 = vector.broadcast %54 : vector<1x24xf32> to vector<8x24xf32>
    %56 = arith.addf %52, %55 : vector<8x24xf32>
    %57 = vector.extract_strided_slice %56 {offsets = [0, 0], sizes = [8, 12], strides = [1, 1]} : vector<8x24xf32> to vector<8x12xf32>
    %58 = math.tanh %57 : vector<8x12xf32>
    %59 = vector.extract_strided_slice %56 {offsets = [0, 12], sizes = [8, 12], strides = [1, 1]} : vector<8x24xf32> to vector<8x12xf32>
    %60 = math.exp %58 : vector<8x12xf32>
    %61 = arith.mulf %18, %60 : vector<8x12xf32>
    %62 = arith.addf %61, %59 : vector<8x12xf32>
    %cst_40 = arith.constant dense<0.000000e+00> : vector<8xf32>
    %63 = vector.multi_reduction <add>, %58, %cst_40 [1] : vector<8x12xf32> to vector<8xf32>
    %64 = vector.shape_cast %63 : vector<8xf32> to vector<8x1xf32>
    %65 = arith.addf %3, %64 : vector<8x1xf32>
    %66 = arith.truncf %62 : vector<8x12xf32> to vector<8x12xbf16>
    %c1 = arith.constant 1 : index
    %c0_41 = arith.constant 0 : index
    %c0_42 = arith.constant 0 : index
    %67 = vector.load %arg5[%c1, %c0_41, %c0_42] : memref<4x12x96xbf16, #tpu.memory_space<vmem>>, vector<1x12x96xbf16>
    %68 = vector.shape_cast %67 : vector<1x12x96xbf16> to vector<12x96xbf16>
    %cst_43 = arith.constant dense<0.000000e+00> : vector<8x96xf32>
    %69 = tpu.matmul %66, %68, %cst_43 {dimension_numbers = #tpu.dot_dimension_numbers<[1], [0], [0], [1], [0, 0, 1, 1], [], []>} : vector<8x12xbf16>, vector<12x96xbf16>, vector<8x96xf32> -> vector<8x96xf32>
    %c1_44 = arith.constant 1 : index
    %c0_45 = arith.constant 0 : index
    %c0_46 = arith.constant 0 : index
    %70 = vector.load %arg6[%c1_44, %c0_45, %c0_46] : memref<4x16x96xbf16, #tpu.memory_space<vmem>>, vector<1x16x96xbf16>
    %71 = vector.shape_cast %70 : vector<1x16x96xbf16> to vector<16x96xbf16>
    %cst_47 = arith.constant dense<0.000000e+00> : vector<8x96xf32>
    %72 = tpu.matmul %1, %71, %cst_47 {dimension_numbers = #tpu.dot_dimension_numbers<[1], [0], [0], [1], [0, 0, 1, 1], [], []>} : vector<8x16xbf16>, vector<16x96xbf16>, vector<8x96xf32> -> vector<8x96xf32>
    %73 = arith.addf %69, %72 : vector<8x96xf32>
    %c1_48 = arith.constant 1 : index
    %c0_49 = arith.constant 0 : index
    %c0_50 = arith.constant 0 : index
    %74 = vector.load %arg7[%c1_48, %c0_49, %c0_50] : memref<4x1x96xf32, #tpu.memory_space<vmem>>, vector<1x1x96xf32>
    %75 = vector.shape_cast %74 : vector<1x1x96xf32> to vector<1x96xf32>
    %76 = vector.broadcast %75 : vector<1x96xf32> to vector<8x96xf32>
    %77 = arith.addf %73, %76 : vector<8x96xf32>
    %cst_51 = arith.constant 0.000000e+00 : f32
    %78 = vector.broadcast %cst_51 : f32 to vector<8x96xf32>
    %79 = arith.cmpf oge, %77, %78 : vector<8x96xf32>
    %cst_52 = arith.constant 0.00999999977 : f32
    %80 = vector.broadcast %cst_52 : f32 to vector<8x96xf32>
    %81 = arith.mulf %80, %77 : vector<8x96xf32>
    %82 = arith.select %79, %77, %81 : vector<8x96xi1>, vector<8x96xf32>
    %83 = arith.truncf %82 : vector<8x96xf32> to vector<8x96xbf16>
    %c1_53 = arith.constant 1 : index
    %c0_54 = arith.constant 0 : index
    %c0_55 = arith.constant 0 : index
    %84 = vector.load %arg8[%c1_53, %c0_54, %c0_55] : memref<4x96x96xbf16, #tpu.memory_space<vmem>>, vector<1x96x96xbf16>
    %85 = vector.shape_cast %84 : vector<1x96x96xbf16> to vector<96x96xbf16>
    %cst_56 = arith.constant dense<0.000000e+00> : vector<8x96xf32>
    %86 = tpu.matmul %83, %85, %cst_56 {dimension_numbers = #tpu.dot_dimension_numbers<[1], [0], [0], [1], [0, 0, 1, 1], [], []>} : vector<8x96xbf16>, vector<96x96xbf16>, vector<8x96xf32> -> vector<8x96xf32>
    %c1_57 = arith.constant 1 : index
    %c0_58 = arith.constant 0 : index
    %c0_59 = arith.constant 0 : index
    %87 = vector.load %arg9[%c1_57, %c0_58, %c0_59] : memref<4x1x96xf32, #tpu.memory_space<vmem>>, vector<1x1x96xf32>
    %88 = vector.shape_cast %87 : vector<1x1x96xf32> to vector<1x96xf32>
    %89 = vector.broadcast %88 : vector<1x96xf32> to vector<8x96xf32>
    %90 = arith.addf %86, %89 : vector<8x96xf32>
    %cst_60 = arith.constant 0.000000e+00 : f32
    %91 = vector.broadcast %cst_60 : f32 to vector<8x96xf32>
    %92 = arith.cmpf oge, %90, %91 : vector<8x96xf32>
    %cst_61 = arith.constant 0.00999999977 : f32
    %93 = vector.broadcast %cst_61 : f32 to vector<8x96xf32>
    %94 = arith.mulf %93, %90 : vector<8x96xf32>
    %95 = arith.select %92, %90, %94 : vector<8x96xi1>, vector<8x96xf32>
    %96 = arith.truncf %95 : vector<8x96xf32> to vector<8x96xbf16>
    %c1_62 = arith.constant 1 : index
    %c0_63 = arith.constant 0 : index
    %c0_64 = arith.constant 0 : index
    %97 = vector.load %arg10[%c1_62, %c0_63, %c0_64] : memref<4x96x24xbf16, #tpu.memory_space<vmem>>, vector<1x96x24xbf16>
    %98 = vector.shape_cast %97 : vector<1x96x24xbf16> to vector<96x24xbf16>
    %cst_65 = arith.constant dense<0.000000e+00> : vector<8x24xf32>
    %99 = tpu.matmul %96, %98, %cst_65 {dimension_numbers = #tpu.dot_dimension_numbers<[1], [0], [0], [1], [0, 0, 1, 1], [], []>} : vector<8x96xbf16>, vector<96x24xbf16>, vector<8x24xf32> -> vector<8x24xf32>
    %c1_66 = arith.constant 1 : index
    %c0_67 = arith.constant 0 : index
    %c0_68 = arith.constant 0 : index
    %100 = vector.load %arg11[%c1_66, %c0_67, %c0_68] : memref<4x1x24xf32, #tpu.memory_space<vmem>>, vector<1x1x24xf32>
    %101 = vector.shape_cast %100 : vector<1x1x24xf32> to vector<1x24xf32>
    %102 = vector.broadcast %101 : vector<1x24xf32> to vector<8x24xf32>
    %103 = arith.addf %99, %102 : vector<8x24xf32>
    %104 = vector.extract_strided_slice %103 {offsets = [0, 0], sizes = [8, 12], strides = [1, 1]} : vector<8x24xf32> to vector<8x12xf32>
    %105 = math.tanh %104 : vector<8x12xf32>
    %106 = vector.extract_strided_slice %103 {offsets = [0, 12], sizes = [8, 12], strides = [1, 1]} : vector<8x24xf32> to vector<8x12xf32>
    %107 = math.exp %105 : vector<8x12xf32>
    %108 = arith.mulf %17, %107 : vector<8x12xf32>
    %109 = arith.addf %108, %106 : vector<8x12xf32>
    %cst_69 = arith.constant dense<0.000000e+00> : vector<8xf32>
    %110 = vector.multi_reduction <add>, %105, %cst_69 [1] : vector<8x12xf32> to vector<8xf32>
    %111 = vector.shape_cast %110 : vector<8xf32> to vector<8x1xf32>
    %112 = arith.addf %65, %111 : vector<8x1xf32>
    %113 = tpu.concatenate %62, %109 in 1 : vector<8x12xf32>, vector<8x12xf32> -> vector<8x24xf32>
    %c0_70 = arith.constant 0 : index
    %c0_71 = arith.constant 0 : index
    %c0_72 = arith.constant 0 : index
    %114 = vector.load %arg4[%c0_70, %c0_71, %c0_72] : memref<2x24x24xf32, #tpu.memory_space<vmem>>, vector<1x24x24xf32>
    %115 = vector.shape_cast %114 : vector<1x24x24xf32> to vector<24x24xf32>
    %cst_73 = arith.constant dense<0.000000e+00> : vector<8x24xf32>
    %116 = tpu.matmul %113, %115, %cst_73 {dimension_numbers = #tpu.dot_dimension_numbers<[1], [0], [0], [1], [0, 0, 1, 1], [], []>} : vector<8x24xf32>, vector<24x24xf32>, vector<8x24xf32> -> vector<8x24xf32>
    %c1_74 = arith.constant 1 : index
    %c0_75 = arith.constant 0 : index
    %c0_76 = arith.constant 0 : index
    %117 = vector.load %arg3[%c1_74, %c0_75, %c0_76] : memref<2x1x24xf32, #tpu.memory_space<vmem>>, vector<1x1x24xf32>
    %118 = vector.shape_cast %117 : vector<1x1x24xf32> to vector<1x24xf32>
    %c1_77 = arith.constant 1 : index
    %c0_78 = arith.constant 0 : index
    %c0_79 = arith.constant 0 : index
    %119 = vector.load %arg2[%c1_77, %c0_78, %c0_79] : memref<2x1x24xf32, #tpu.memory_space<vmem>>, vector<1x1x24xf32>
    %120 = vector.shape_cast %119 : vector<1x1x24xf32> to vector<1x24xf32>
    %121 = vector.broadcast %120 : vector<1x24xf32> to vector<8x24xf32>
    %122 = arith.addf %116, %121 : vector<8x24xf32>
    %123 = vector.broadcast %118 : vector<1x24xf32> to vector<8x24xf32>
    %124 = arith.mulf %123, %122 : vector<8x24xf32>
    %cst_80 = arith.constant 0.000000e+00 : f32
    %125 = vector.broadcast %cst_80 : f32 to vector<8x24xf32>
    %126 = arith.cmpf oge, %124, %125 : vector<8x24xf32>
    %cst_81 = arith.constant 0.899999976 : f32
    %127 = vector.broadcast %cst_81 : f32 to vector<8x24xf32>
    %128 = arith.mulf %127, %124 : vector<8x24xf32>
    %129 = arith.select %126, %124, %128 : vector<8x24xi1>, vector<8x24xf32>
    %130 = vector.extract_strided_slice %129 {offsets = [0, 0], sizes = [8, 12], strides = [1, 1]} : vector<8x24xf32> to vector<8x12xf32>
    %131 = vector.extract_strided_slice %129 {offsets = [0, 12], sizes = [8, 12], strides = [1, 1]} : vector<8x24xf32> to vector<8x12xf32>
    %132 = arith.truncf %130 : vector<8x12xf32> to vector<8x12xbf16>
    %c2 = arith.constant 2 : index
    %c0_82 = arith.constant 0 : index
    %c0_83 = arith.constant 0 : index
    %133 = vector.load %arg5[%c2, %c0_82, %c0_83] : memref<4x12x96xbf16, #tpu.memory_space<vmem>>, vector<1x12x96xbf16>
    %134 = vector.shape_cast %133 : vector<1x12x96xbf16> to vector<12x96xbf16>
    %cst_84 = arith.constant dense<0.000000e+00> : vector<8x96xf32>
    %135 = tpu.matmul %132, %134, %cst_84 {dimension_numbers = #tpu.dot_dimension_numbers<[1], [0], [0], [1], [0, 0, 1, 1], [], []>} : vector<8x12xbf16>, vector<12x96xbf16>, vector<8x96xf32> -> vector<8x96xf32>
    %c2_85 = arith.constant 2 : index
    %c0_86 = arith.constant 0 : index
    %c0_87 = arith.constant 0 : index
    %136 = vector.load %arg6[%c2_85, %c0_86, %c0_87] : memref<4x16x96xbf16, #tpu.memory_space<vmem>>, vector<1x16x96xbf16>
    %137 = vector.shape_cast %136 : vector<1x16x96xbf16> to vector<16x96xbf16>
    %cst_88 = arith.constant dense<0.000000e+00> : vector<8x96xf32>
    %138 = tpu.matmul %1, %137, %cst_88 {dimension_numbers = #tpu.dot_dimension_numbers<[1], [0], [0], [1], [0, 0, 1, 1], [], []>} : vector<8x16xbf16>, vector<16x96xbf16>, vector<8x96xf32> -> vector<8x96xf32>
    %139 = arith.addf %135, %138 : vector<8x96xf32>
    %c2_89 = arith.constant 2 : index
    %c0_90 = arith.constant 0 : index
    %c0_91 = arith.constant 0 : index
    %140 = vector.load %arg7[%c2_89, %c0_90, %c0_91] : memref<4x1x96xf32, #tpu.memory_space<vmem>>, vector<1x1x96xf32>
    %141 = vector.shape_cast %140 : vector<1x1x96xf32> to vector<1x96xf32>
    %142 = vector.broadcast %141 : vector<1x96xf32> to vector<8x96xf32>
    %143 = arith.addf %139, %142 : vector<8x96xf32>
    %cst_92 = arith.constant 0.000000e+00 : f32
    %144 = vector.broadcast %cst_92 : f32 to vector<8x96xf32>
    %145 = arith.cmpf oge, %143, %144 : vector<8x96xf32>
    %cst_93 = arith.constant 0.00999999977 : f32
    %146 = vector.broadcast %cst_93 : f32 to vector<8x96xf32>
    %147 = arith.mulf %146, %143 : vector<8x96xf32>
    %148 = arith.select %145, %143, %147 : vector<8x96xi1>, vector<8x96xf32>
    %149 = arith.truncf %148 : vector<8x96xf32> to vector<8x96xbf16>
    %c2_94 = arith.constant 2 : index
    %c0_95 = arith.constant 0 : index
    %c0_96 = arith.constant 0 : index
    %150 = vector.load %arg8[%c2_94, %c0_95, %c0_96] : memref<4x96x96xbf16, #tpu.memory_space<vmem>>, vector<1x96x96xbf16>
    %151 = vector.shape_cast %150 : vector<1x96x96xbf16> to vector<96x96xbf16>
    %cst_97 = arith.constant dense<0.000000e+00> : vector<8x96xf32>
    %152 = tpu.matmul %149, %151, %cst_97 {dimension_numbers = #tpu.dot_dimension_numbers<[1], [0], [0], [1], [0, 0, 1, 1], [], []>} : vector<8x96xbf16>, vector<96x96xbf16>, vector<8x96xf32> -> vector<8x96xf32>
    %c2_98 = arith.constant 2 : index
    %c0_99 = arith.constant 0 : index
    %c0_100 = arith.constant 0 : index
    %153 = vector.load %arg9[%c2_98, %c0_99, %c0_100] : memref<4x1x96xf32, #tpu.memory_space<vmem>>, vector<1x1x96xf32>
    %154 = vector.shape_cast %153 : vector<1x1x96xf32> to vector<1x96xf32>
    %155 = vector.broadcast %154 : vector<1x96xf32> to vector<8x96xf32>
    %156 = arith.addf %152, %155 : vector<8x96xf32>
    %cst_101 = arith.constant 0.000000e+00 : f32
    %157 = vector.broadcast %cst_101 : f32 to vector<8x96xf32>
    %158 = arith.cmpf oge, %156, %157 : vector<8x96xf32>
    %cst_102 = arith.constant 0.00999999977 : f32
    %159 = vector.broadcast %cst_102 : f32 to vector<8x96xf32>
    %160 = arith.mulf %159, %156 : vector<8x96xf32>
    %161 = arith.select %158, %156, %160 : vector<8x96xi1>, vector<8x96xf32>
    %162 = arith.truncf %161 : vector<8x96xf32> to vector<8x96xbf16>
    %c2_103 = arith.constant 2 : index
    %c0_104 = arith.constant 0 : index
    %c0_105 = arith.constant 0 : index
    %163 = vector.load %arg10[%c2_103, %c0_104, %c0_105] : memref<4x96x24xbf16, #tpu.memory_space<vmem>>, vector<1x96x24xbf16>
    %164 = vector.shape_cast %163 : vector<1x96x24xbf16> to vector<96x24xbf16>
    %cst_106 = arith.constant dense<0.000000e+00> : vector<8x24xf32>
    %165 = tpu.matmul %162, %164, %cst_106 {dimension_numbers = #tpu.dot_dimension_numbers<[1], [0], [0], [1], [0, 0, 1, 1], [], []>} : vector<8x96xbf16>, vector<96x24xbf16>, vector<8x24xf32> -> vector<8x24xf32>
    %c2_107 = arith.constant 2 : index
    %c0_108 = arith.constant 0 : index
    %c0_109 = arith.constant 0 : index
    %166 = vector.load %arg11[%c2_107, %c0_108, %c0_109] : memref<4x1x24xf32, #tpu.memory_space<vmem>>, vector<1x1x24xf32>
    %167 = vector.shape_cast %166 : vector<1x1x24xf32> to vector<1x24xf32>
    %168 = vector.broadcast %167 : vector<1x24xf32> to vector<8x24xf32>
    %169 = arith.addf %165, %168 : vector<8x24xf32>
    %170 = vector.extract_strided_slice %169 {offsets = [0, 0], sizes = [8, 12], strides = [1, 1]} : vector<8x24xf32> to vector<8x12xf32>
    %171 = math.tanh %170 : vector<8x12xf32>
    %172 = vector.extract_strided_slice %169 {offsets = [0, 12], sizes = [8, 12], strides = [1, 1]} : vector<8x24xf32> to vector<8x12xf32>
    %173 = math.exp %171 : vector<8x12xf32>
    %174 = arith.mulf %131, %173 : vector<8x12xf32>
    %175 = arith.addf %174, %172 : vector<8x12xf32>
    %cst_110 = arith.constant dense<0.000000e+00> : vector<8xf32>
    %176 = vector.multi_reduction <add>, %171, %cst_110 [1] : vector<8x12xf32> to vector<8xf32>
    %177 = vector.shape_cast %176 : vector<8xf32> to vector<8x1xf32>
    %178 = arith.addf %112, %177 : vector<8x1xf32>
    %179 = arith.truncf %175 : vector<8x12xf32> to vector<8x12xbf16>
    %c3 = arith.constant 3 : index
    %c0_111 = arith.constant 0 : index
    %c0_112 = arith.constant 0 : index
    %180 = vector.load %arg5[%c3, %c0_111, %c0_112] : memref<4x12x96xbf16, #tpu.memory_space<vmem>>, vector<1x12x96xbf16>
    %181 = vector.shape_cast %180 : vector<1x12x96xbf16> to vector<12x96xbf16>
    %cst_113 = arith.constant dense<0.000000e+00> : vector<8x96xf32>
    %182 = tpu.matmul %179, %181, %cst_113 {dimension_numbers = #tpu.dot_dimension_numbers<[1], [0], [0], [1], [0, 0, 1, 1], [], []>} : vector<8x12xbf16>, vector<12x96xbf16>, vector<8x96xf32> -> vector<8x96xf32>
    %c3_114 = arith.constant 3 : index
    %c0_115 = arith.constant 0 : index
    %c0_116 = arith.constant 0 : index
    %183 = vector.load %arg6[%c3_114, %c0_115, %c0_116] : memref<4x16x96xbf16, #tpu.memory_space<vmem>>, vector<1x16x96xbf16>
    %184 = vector.shape_cast %183 : vector<1x16x96xbf16> to vector<16x96xbf16>
    %cst_117 = arith.constant dense<0.000000e+00> : vector<8x96xf32>
    %185 = tpu.matmul %1, %184, %cst_117 {dimension_numbers = #tpu.dot_dimension_numbers<[1], [0], [0], [1], [0, 0, 1, 1], [], []>} : vector<8x16xbf16>, vector<16x96xbf16>, vector<8x96xf32> -> vector<8x96xf32>
    %186 = arith.addf %182, %185 : vector<8x96xf32>
    %c3_118 = arith.constant 3 : index
    %c0_119 = arith.constant 0 : index
    %c0_120 = arith.constant 0 : index
    %187 = vector.load %arg7[%c3_118, %c0_119, %c0_120] : memref<4x1x96xf32, #tpu.memory_space<vmem>>, vector<1x1x96xf32>
    %188 = vector.shape_cast %187 : vector<1x1x96xf32> to vector<1x96xf32>
    %189 = vector.broadcast %188 : vector<1x96xf32> to vector<8x96xf32>
    %190 = arith.addf %186, %189 : vector<8x96xf32>
    %cst_121 = arith.constant 0.000000e+00 : f32
    %191 = vector.broadcast %cst_121 : f32 to vector<8x96xf32>
    %192 = arith.cmpf oge, %190, %191 : vector<8x96xf32>
    %cst_122 = arith.constant 0.00999999977 : f32
    %193 = vector.broadcast %cst_122 : f32 to vector<8x96xf32>
    %194 = arith.mulf %193, %190 : vector<8x96xf32>
    %195 = arith.select %192, %190, %194 : vector<8x96xi1>, vector<8x96xf32>
    %196 = arith.truncf %195 : vector<8x96xf32> to vector<8x96xbf16>
    %c3_123 = arith.constant 3 : index
    %c0_124 = arith.constant 0 : index
    %c0_125 = arith.constant 0 : index
    %197 = vector.load %arg8[%c3_123, %c0_124, %c0_125] : memref<4x96x96xbf16, #tpu.memory_space<vmem>>, vector<1x96x96xbf16>
    %198 = vector.shape_cast %197 : vector<1x96x96xbf16> to vector<96x96xbf16>
    %cst_126 = arith.constant dense<0.000000e+00> : vector<8x96xf32>
    %199 = tpu.matmul %196, %198, %cst_126 {dimension_numbers = #tpu.dot_dimension_numbers<[1], [0], [0], [1], [0, 0, 1, 1], [], []>} : vector<8x96xbf16>, vector<96x96xbf16>, vector<8x96xf32> -> vector<8x96xf32>
    %c3_127 = arith.constant 3 : index
    %c0_128 = arith.constant 0 : index
    %c0_129 = arith.constant 0 : index
    %200 = vector.load %arg9[%c3_127, %c0_128, %c0_129] : memref<4x1x96xf32, #tpu.memory_space<vmem>>, vector<1x1x96xf32>
    %201 = vector.shape_cast %200 : vector<1x1x96xf32> to vector<1x96xf32>
    %202 = vector.broadcast %201 : vector<1x96xf32> to vector<8x96xf32>
    %203 = arith.addf %199, %202 : vector<8x96xf32>
    %cst_130 = arith.constant 0.000000e+00 : f32
    %204 = vector.broadcast %cst_130 : f32 to vector<8x96xf32>
    %205 = arith.cmpf oge, %203, %204 : vector<8x96xf32>
    %cst_131 = arith.constant 0.00999999977 : f32
    %206 = vector.broadcast %cst_131 : f32 to vector<8x96xf32>
    %207 = arith.mulf %206, %203 : vector<8x96xf32>
    %208 = arith.select %205, %203, %207 : vector<8x96xi1>, vector<8x96xf32>
    %209 = arith.truncf %208 : vector<8x96xf32> to vector<8x96xbf16>
    %c3_132 = arith.constant 3 : index
    %c0_133 = arith.constant 0 : index
    %c0_134 = arith.constant 0 : index
    %210 = vector.load %arg10[%c3_132, %c0_133, %c0_134] : memref<4x96x24xbf16, #tpu.memory_space<vmem>>, vector<1x96x24xbf16>
    %211 = vector.shape_cast %210 : vector<1x96x24xbf16> to vector<96x24xbf16>
    %cst_135 = arith.constant dense<0.000000e+00> : vector<8x24xf32>
    %212 = tpu.matmul %209, %211, %cst_135 {dimension_numbers = #tpu.dot_dimension_numbers<[1], [0], [0], [1], [0, 0, 1, 1], [], []>} : vector<8x96xbf16>, vector<96x24xbf16>, vector<8x24xf32> -> vector<8x24xf32>
    %c3_136 = arith.constant 3 : index
    %c0_137 = arith.constant 0 : index
    %c0_138 = arith.constant 0 : index
    %213 = vector.load %arg11[%c3_136, %c0_137, %c0_138] : memref<4x1x24xf32, #tpu.memory_space<vmem>>, vector<1x1x24xf32>
    %214 = vector.shape_cast %213 : vector<1x1x24xf32> to vector<1x24xf32>
    %215 = vector.broadcast %214 : vector<1x24xf32> to vector<8x24xf32>
    %216 = arith.addf %212, %215 : vector<8x24xf32>
    %217 = vector.extract_strided_slice %216 {offsets = [0, 0], sizes = [8, 12], strides = [1, 1]} : vector<8x24xf32> to vector<8x12xf32>
    %218 = math.tanh %217 : vector<8x12xf32>
    %219 = vector.extract_strided_slice %216 {offsets = [0, 12], sizes = [8, 12], strides = [1, 1]} : vector<8x24xf32> to vector<8x12xf32>
    %220 = math.exp %218 : vector<8x12xf32>
    %221 = arith.mulf %130, %220 : vector<8x12xf32>
    %222 = arith.addf %221, %219 : vector<8x12xf32>
    %cst_139 = arith.constant dense<0.000000e+00> : vector<8xf32>
    %223 = vector.multi_reduction <add>, %218, %cst_139 [1] : vector<8x12xf32> to vector<8xf32>
    %224 = vector.shape_cast %223 : vector<8xf32> to vector<8x1xf32>
    %225 = arith.addf %178, %224 : vector<8x1xf32>
    %226 = tpu.concatenate %175, %222 in 1 : vector<8x12xf32>, vector<8x12xf32> -> vector<8x24xf32>
    %c1_140 = arith.constant 1 : index
    %c0_141 = arith.constant 0 : index
    %c0_142 = arith.constant 0 : index
    %227 = vector.load %arg4[%c1_140, %c0_141, %c0_142] : memref<2x24x24xf32, #tpu.memory_space<vmem>>, vector<1x24x24xf32>
    %228 = vector.shape_cast %227 : vector<1x24x24xf32> to vector<24x24xf32>
    %cst_143 = arith.constant dense<0.000000e+00> : vector<8x24xf32>
    %229 = tpu.matmul %226, %228, %cst_143 {dimension_numbers = #tpu.dot_dimension_numbers<[1], [0], [0], [1], [0, 0, 1, 1], [], []>} : vector<8x24xf32>, vector<24x24xf32>, vector<8x24xf32> -> vector<8x24xf32>
    %230 = vector.extract_strided_slice %229 {offsets = [0, 0], sizes = [8, 8], strides = [1, 1]} : vector<8x24xf32> to vector<8x8xf32>
    %231 = vector.extract_strided_slice %229 {offsets = [0, 8], sizes = [8, 16], strides = [1, 1]} : vector<8x24xf32> to vector<8x16xf32>
    %c0_144 = arith.constant 0 : index
    %c0_145 = arith.constant 0 : index
    %c0_146 = arith.constant 0 : index
    %232 = vector.load %arg13[%c0_144, %c0_145, %c0_146] : memref<2x1x16xf32, #tpu.memory_space<vmem>>, vector<1x1x16xf32>
    %233 = vector.shape_cast %232 : vector<1x1x16xf32> to vector<1x16xf32>
    %c0_147 = arith.constant 0 : index
    %c0_148 = arith.constant 0 : index
    %c0_149 = arith.constant 0 : index
    %234 = vector.load %arg12[%c0_147, %c0_148, %c0_149] : memref<2x1x16xf32, #tpu.memory_space<vmem>>, vector<1x1x16xf32>
    %235 = vector.shape_cast %234 : vector<1x1x16xf32> to vector<1x16xf32>
    %236 = vector.broadcast %235 : vector<1x16xf32> to vector<8x16xf32>
    %237 = arith.addf %231, %236 : vector<8x16xf32>
    %238 = vector.broadcast %233 : vector<1x16xf32> to vector<8x16xf32>
    %239 = arith.mulf %238, %237 : vector<8x16xf32>
    %cst_150 = arith.constant 0.000000e+00 : f32
    %240 = vector.broadcast %cst_150 : f32 to vector<8x16xf32>
    %241 = arith.cmpf oge, %239, %240 : vector<8x16xf32>
    %cst_151 = arith.constant 0.899999976 : f32
    %242 = vector.broadcast %cst_151 : f32 to vector<8x16xf32>
    %243 = arith.mulf %242, %239 : vector<8x16xf32>
    %244 = arith.select %241, %239, %243 : vector<8x16xi1>, vector<8x16xf32>
    %245 = vector.extract_strided_slice %244 {offsets = [0, 0], sizes = [8, 8], strides = [1, 1]} : vector<8x16xf32> to vector<8x8xf32>
    %246 = vector.extract_strided_slice %244 {offsets = [0, 8], sizes = [8, 8], strides = [1, 1]} : vector<8x16xf32> to vector<8x8xf32>
    %247 = arith.truncf %245 : vector<8x8xf32> to vector<8x8xbf16>
    %c0_152 = arith.constant 0 : index
    %c0_153 = arith.constant 0 : index
    %c0_154 = arith.constant 0 : index
    %248 = vector.load %arg15[%c0_152, %c0_153, %c0_154] : memref<4x8x64xbf16, #tpu.memory_space<vmem>>, vector<1x8x64xbf16>
    %249 = vector.shape_cast %248 : vector<1x8x64xbf16> to vector<8x64xbf16>
    %cst_155 = arith.constant dense<0.000000e+00> : vector<8x64xf32>
    %250 = tpu.matmul %247, %249, %cst_155 {dimension_numbers = #tpu.dot_dimension_numbers<[1], [0], [0], [1], [0, 0, 1, 1], [], []>} : vector<8x8xbf16>, vector<8x64xbf16>, vector<8x64xf32> -> vector<8x64xf32>
    %c0_156 = arith.constant 0 : index
    %c0_157 = arith.constant 0 : index
    %c0_158 = arith.constant 0 : index
    %251 = vector.load %arg16[%c0_156, %c0_157, %c0_158] : memref<4x16x64xbf16, #tpu.memory_space<vmem>>, vector<1x16x64xbf16>
    %252 = vector.shape_cast %251 : vector<1x16x64xbf16> to vector<16x64xbf16>
    %cst_159 = arith.constant dense<0.000000e+00> : vector<8x64xf32>
    %253 = tpu.matmul %1, %252, %cst_159 {dimension_numbers = #tpu.dot_dimension_numbers<[1], [0], [0], [1], [0, 0, 1, 1], [], []>} : vector<8x16xbf16>, vector<16x64xbf16>, vector<8x64xf32> -> vector<8x64xf32>
    %254 = arith.addf %250, %253 : vector<8x64xf32>
    %c0_160 = arith.constant 0 : index
    %c0_161 = arith.constant 0 : index
    %c0_162 = arith.constant 0 : index
    %255 = vector.load %arg17[%c0_160, %c0_161, %c0_162] : memref<4x1x64xf32, #tpu.memory_space<vmem>>, vector<1x1x64xf32>
    %256 = vector.shape_cast %255 : vector<1x1x64xf32> to vector<1x64xf32>
    %257 = vector.broadcast %256 : vector<1x64xf32> to vector<8x64xf32>
    %258 = arith.addf %254, %257 : vector<8x64xf32>
    %cst_163 = arith.constant 0.000000e+00 : f32
    %259 = vector.broadcast %cst_163 : f32 to vector<8x64xf32>
    %260 = arith.cmpf oge, %258, %259 : vector<8x64xf32>
    %cst_164 = arith.constant 0.00999999977 : f32
    %261 = vector.broadcast %cst_164 : f32 to vector<8x64xf32>
    %262 = arith.mulf %261, %258 : vector<8x64xf32>
    %263 = arith.select %260, %258, %262 : vector<8x64xi1>, vector<8x64xf32>
    %264 = arith.truncf %263 : vector<8x64xf32> to vector<8x64xbf16>
    %c0_165 = arith.constant 0 : index
    %c0_166 = arith.constant 0 : index
    %c0_167 = arith.constant 0 : index
    %265 = vector.load %arg18[%c0_165, %c0_166, %c0_167] : memref<4x64x64xbf16, #tpu.memory_space<vmem>>, vector<1x64x64xbf16>
    %266 = vector.shape_cast %265 : vector<1x64x64xbf16> to vector<64x64xbf16>
    %cst_168 = arith.constant dense<0.000000e+00> : vector<8x64xf32>
    %267 = tpu.matmul %264, %266, %cst_168 {dimension_numbers = #tpu.dot_dimension_numbers<[1], [0], [0], [1], [0, 0, 1, 1], [], []>} : vector<8x64xbf16>, vector<64x64xbf16>, vector<8x64xf32> -> vector<8x64xf32>
    %c0_169 = arith.constant 0 : index
    %c0_170 = arith.constant 0 : index
    %c0_171 = arith.constant 0 : index
    %268 = vector.load %arg19[%c0_169, %c0_170, %c0_171] : memref<4x1x64xf32, #tpu.memory_space<vmem>>, vector<1x1x64xf32>
    %269 = vector.shape_cast %268 : vector<1x1x64xf32> to vector<1x64xf32>
    %270 = vector.broadcast %269 : vector<1x64xf32> to vector<8x64xf32>
    %271 = arith.addf %267, %270 : vector<8x64xf32>
    %cst_172 = arith.constant 0.000000e+00 : f32
    %272 = vector.broadcast %cst_172 : f32 to vector<8x64xf32>
    %273 = arith.cmpf oge, %271, %272 : vector<8x64xf32>
    %cst_173 = arith.constant 0.00999999977 : f32
    %274 = vector.broadcast %cst_173 : f32 to vector<8x64xf32>
    %275 = arith.mulf %274, %271 : vector<8x64xf32>
    %276 = arith.select %273, %271, %275 : vector<8x64xi1>, vector<8x64xf32>
    %277 = arith.truncf %276 : vector<8x64xf32> to vector<8x64xbf16>
    %c0_174 = arith.constant 0 : index
    %c0_175 = arith.constant 0 : index
    %c0_176 = arith.constant 0 : index
    %278 = vector.load %arg20[%c0_174, %c0_175, %c0_176] : memref<4x64x16xbf16, #tpu.memory_space<vmem>>, vector<1x64x16xbf16>
    %279 = vector.shape_cast %278 : vector<1x64x16xbf16> to vector<64x16xbf16>
    %cst_177 = arith.constant dense<0.000000e+00> : vector<8x16xf32>
    %280 = tpu.matmul %277, %279, %cst_177 {dimension_numbers = #tpu.dot_dimension_numbers<[1], [0], [0], [1], [0, 0, 1, 1], [], []>} : vector<8x64xbf16>, vector<64x16xbf16>, vector<8x16xf32> -> vector<8x16xf32>
    %c0_178 = arith.constant 0 : index
    %c0_179 = arith.constant 0 : index
    %c0_180 = arith.constant 0 : index
    %281 = vector.load %arg21[%c0_178, %c0_179, %c0_180] : memref<4x1x16xf32, #tpu.memory_space<vmem>>, vector<1x1x16xf32>
    %282 = vector.shape_cast %281 : vector<1x1x16xf32> to vector<1x16xf32>
    %283 = vector.broadcast %282 : vector<1x16xf32> to vector<8x16xf32>
    %284 = arith.addf %280, %283 : vector<8x16xf32>
    %285 = vector.extract_strided_slice %284 {offsets = [0, 0], sizes = [8, 8], strides = [1, 1]} : vector<8x16xf32> to vector<8x8xf32>
    %286 = math.tanh %285 : vector<8x8xf32>
    %287 = vector.extract_strided_slice %284 {offsets = [0, 8], sizes = [8, 8], strides = [1, 1]} : vector<8x16xf32> to vector<8x8xf32>
    %288 = math.exp %286 : vector<8x8xf32>
    %289 = arith.mulf %246, %288 : vector<8x8xf32>
    %290 = arith.addf %289, %287 : vector<8x8xf32>
    %cst_181 = arith.constant dense<0.000000e+00> : vector<8xf32>
    %291 = vector.multi_reduction <add>, %286, %cst_181 [1] : vector<8x8xf32> to vector<8xf32>
    %292 = vector.shape_cast %291 : vector<8xf32> to vector<8x1xf32>
    %293 = arith.addf %225, %292 : vector<8x1xf32>
    %294 = arith.truncf %290 : vector<8x8xf32> to vector<8x8xbf16>
    %c1_182 = arith.constant 1 : index
    %c0_183 = arith.constant 0 : index
    %c0_184 = arith.constant 0 : index
    %295 = vector.load %arg15[%c1_182, %c0_183, %c0_184] : memref<4x8x64xbf16, #tpu.memory_space<vmem>>, vector<1x8x64xbf16>
    %296 = vector.shape_cast %295 : vector<1x8x64xbf16> to vector<8x64xbf16>
    %cst_185 = arith.constant dense<0.000000e+00> : vector<8x64xf32>
    %297 = tpu.matmul %294, %296, %cst_185 {dimension_numbers = #tpu.dot_dimension_numbers<[1], [0], [0], [1], [0, 0, 1, 1], [], []>} : vector<8x8xbf16>, vector<8x64xbf16>, vector<8x64xf32> -> vector<8x64xf32>
    %c1_186 = arith.constant 1 : index
    %c0_187 = arith.constant 0 : index
    %c0_188 = arith.constant 0 : index
    %298 = vector.load %arg16[%c1_186, %c0_187, %c0_188] : memref<4x16x64xbf16, #tpu.memory_space<vmem>>, vector<1x16x64xbf16>
    %299 = vector.shape_cast %298 : vector<1x16x64xbf16> to vector<16x64xbf16>
    %cst_189 = arith.constant dense<0.000000e+00> : vector<8x64xf32>
    %300 = tpu.matmul %1, %299, %cst_189 {dimension_numbers = #tpu.dot_dimension_numbers<[1], [0], [0], [1], [0, 0, 1, 1], [], []>} : vector<8x16xbf16>, vector<16x64xbf16>, vector<8x64xf32> -> vector<8x64xf32>
    %301 = arith.addf %297, %300 : vector<8x64xf32>
    %c1_190 = arith.constant 1 : index
    %c0_191 = arith.constant 0 : index
    %c0_192 = arith.constant 0 : index
    %302 = vector.load %arg17[%c1_190, %c0_191, %c0_192] : memref<4x1x64xf32, #tpu.memory_space<vmem>>, vector<1x1x64xf32>
    %303 = vector.shape_cast %302 : vector<1x1x64xf32> to vector<1x64xf32>
    %304 = vector.broadcast %303 : vector<1x64xf32> to vector<8x64xf32>
    %305 = arith.addf %301, %304 : vector<8x64xf32>
    %cst_193 = arith.constant 0.000000e+00 : f32
    %306 = vector.broadcast %cst_193 : f32 to vector<8x64xf32>
    %307 = arith.cmpf oge, %305, %306 : vector<8x64xf32>
    %cst_194 = arith.constant 0.00999999977 : f32
    %308 = vector.broadcast %cst_194 : f32 to vector<8x64xf32>
    %309 = arith.mulf %308, %305 : vector<8x64xf32>
    %310 = arith.select %307, %305, %309 : vector<8x64xi1>, vector<8x64xf32>
    %311 = arith.truncf %310 : vector<8x64xf32> to vector<8x64xbf16>
    %c1_195 = arith.constant 1 : index
    %c0_196 = arith.constant 0 : index
    %c0_197 = arith.constant 0 : index
    %312 = vector.load %arg18[%c1_195, %c0_196, %c0_197] : memref<4x64x64xbf16, #tpu.memory_space<vmem>>, vector<1x64x64xbf16>
    %313 = vector.shape_cast %312 : vector<1x64x64xbf16> to vector<64x64xbf16>
    %cst_198 = arith.constant dense<0.000000e+00> : vector<8x64xf32>
    %314 = tpu.matmul %311, %313, %cst_198 {dimension_numbers = #tpu.dot_dimension_numbers<[1], [0], [0], [1], [0, 0, 1, 1], [], []>} : vector<8x64xbf16>, vector<64x64xbf16>, vector<8x64xf32> -> vector<8x64xf32>
    %c1_199 = arith.constant 1 : index
    %c0_200 = arith.constant 0 : index
    %c0_201 = arith.constant 0 : index
    %315 = vector.load %arg19[%c1_199, %c0_200, %c0_201] : memref<4x1x64xf32, #tpu.memory_space<vmem>>, vector<1x1x64xf32>
    %316 = vector.shape_cast %315 : vector<1x1x64xf32> to vector<1x64xf32>
    %317 = vector.broadcast %316 : vector<1x64xf32> to vector<8x64xf32>
    %318 = arith.addf %314, %317 : vector<8x64xf32>
    %cst_202 = arith.constant 0.000000e+00 : f32
    %319 = vector.broadcast %cst_202 : f32 to vector<8x64xf32>
    %320 = arith.cmpf oge, %318, %319 : vector<8x64xf32>
    %cst_203 = arith.constant 0.00999999977 : f32
    %321 = vector.broadcast %cst_203 : f32 to vector<8x64xf32>
    %322 = arith.mulf %321, %318 : vector<8x64xf32>
    %323 = arith.select %320, %318, %322 : vector<8x64xi1>, vector<8x64xf32>
    %324 = arith.truncf %323 : vector<8x64xf32> to vector<8x64xbf16>
    %c1_204 = arith.constant 1 : index
    %c0_205 = arith.constant 0 : index
    %c0_206 = arith.constant 0 : index
    %325 = vector.load %arg20[%c1_204, %c0_205, %c0_206] : memref<4x64x16xbf16, #tpu.memory_space<vmem>>, vector<1x64x16xbf16>
    %326 = vector.shape_cast %325 : vector<1x64x16xbf16> to vector<64x16xbf16>
    %cst_207 = arith.constant dense<0.000000e+00> : vector<8x16xf32>
    %327 = tpu.matmul %324, %326, %cst_207 {dimension_numbers = #tpu.dot_dimension_numbers<[1], [0], [0], [1], [0, 0, 1, 1], [], []>} : vector<8x64xbf16>, vector<64x16xbf16>, vector<8x16xf32> -> vector<8x16xf32>
    %c1_208 = arith.constant 1 : index
    %c0_209 = arith.constant 0 : index
    %c0_210 = arith.constant 0 : index
    %328 = vector.load %arg21[%c1_208, %c0_209, %c0_210] : memref<4x1x16xf32, #tpu.memory_space<vmem>>, vector<1x1x16xf32>
    %329 = vector.shape_cast %328 : vector<1x1x16xf32> to vector<1x16xf32>
    %330 = vector.broadcast %329 : vector<1x16xf32> to vector<8x16xf32>
    %331 = arith.addf %327, %330 : vector<8x16xf32>
    %332 = vector.extract_strided_slice %331 {offsets = [0, 0], sizes = [8, 8], strides = [1, 1]} : vector<8x16xf32> to vector<8x8xf32>
    %333 = math.tanh %332 : vector<8x8xf32>
    %334 = vector.extract_strided_slice %331 {offsets = [0, 8], sizes = [8, 8], strides = [1, 1]} : vector<8x16xf32> to vector<8x8xf32>
    %335 = math.exp %333 : vector<8x8xf32>
    %336 = arith.mulf %245, %335 : vector<8x8xf32>
    %337 = arith.addf %336, %334 : vector<8x8xf32>
    %cst_211 = arith.constant dense<0.000000e+00> : vector<8xf32>
    %338 = vector.multi_reduction <add>, %333, %cst_211 [1] : vector<8x8xf32> to vector<8xf32>
    %339 = vector.shape_cast %338 : vector<8xf32> to vector<8x1xf32>
    %340 = arith.addf %293, %339 : vector<8x1xf32>
    %341 = tpu.concatenate %290, %337 in 1 : vector<8x8xf32>, vector<8x8xf32> -> vector<8x16xf32>
    %c0_212 = arith.constant 0 : index
    %c0_213 = arith.constant 0 : index
    %c0_214 = arith.constant 0 : index
    %342 = vector.load %arg14[%c0_212, %c0_213, %c0_214] : memref<2x16x16xf32, #tpu.memory_space<vmem>>, vector<1x16x16xf32>
    %343 = vector.shape_cast %342 : vector<1x16x16xf32> to vector<16x16xf32>
    %cst_215 = arith.constant dense<0.000000e+00> : vector<8x16xf32>
    %344 = tpu.matmul %341, %343, %cst_215 {dimension_numbers = #tpu.dot_dimension_numbers<[1], [0], [0], [1], [0, 0, 1, 1], [], []>} : vector<8x16xf32>, vector<16x16xf32>, vector<8x16xf32> -> vector<8x16xf32>
    %c1_216 = arith.constant 1 : index
    %c0_217 = arith.constant 0 : index
    %c0_218 = arith.constant 0 : index
    %345 = vector.load %arg13[%c1_216, %c0_217, %c0_218] : memref<2x1x16xf32, #tpu.memory_space<vmem>>, vector<1x1x16xf32>
    %346 = vector.shape_cast %345 : vector<1x1x16xf32> to vector<1x16xf32>
    %c1_219 = arith.constant 1 : index
    %c0_220 = arith.constant 0 : index
    %c0_221 = arith.constant 0 : index
    %347 = vector.load %arg12[%c1_219, %c0_220, %c0_221] : memref<2x1x16xf32, #tpu.memory_space<vmem>>, vector<1x1x16xf32>
    %348 = vector.shape_cast %347 : vector<1x1x16xf32> to vector<1x16xf32>
    %349 = vector.broadcast %348 : vector<1x16xf32> to vector<8x16xf32>
    %350 = arith.addf %344, %349 : vector<8x16xf32>
    %351 = vector.broadcast %346 : vector<1x16xf32> to vector<8x16xf32>
    %352 = arith.mulf %351, %350 : vector<8x16xf32>
    %cst_222 = arith.constant 0.000000e+00 : f32
    %353 = vector.broadcast %cst_222 : f32 to vector<8x16xf32>
    %354 = arith.cmpf oge, %352, %353 : vector<8x16xf32>
    %cst_223 = arith.constant 0.899999976 : f32
    %355 = vector.broadcast %cst_223 : f32 to vector<8x16xf32>
    %356 = arith.mulf %355, %352 : vector<8x16xf32>
    %357 = arith.select %354, %352, %356 : vector<8x16xi1>, vector<8x16xf32>
    %358 = vector.extract_strided_slice %357 {offsets = [0, 0], sizes = [8, 8], strides = [1, 1]} : vector<8x16xf32> to vector<8x8xf32>
    %359 = vector.extract_strided_slice %357 {offsets = [0, 8], sizes = [8, 8], strides = [1, 1]} : vector<8x16xf32> to vector<8x8xf32>
    %360 = arith.truncf %358 : vector<8x8xf32> to vector<8x8xbf16>
    %c2_224 = arith.constant 2 : index
    %c0_225 = arith.constant 0 : index
    %c0_226 = arith.constant 0 : index
    %361 = vector.load %arg15[%c2_224, %c0_225, %c0_226] : memref<4x8x64xbf16, #tpu.memory_space<vmem>>, vector<1x8x64xbf16>
    %362 = vector.shape_cast %361 : vector<1x8x64xbf16> to vector<8x64xbf16>
    %cst_227 = arith.constant dense<0.000000e+00> : vector<8x64xf32>
    %363 = tpu.matmul %360, %362, %cst_227 {dimension_numbers = #tpu.dot_dimension_numbers<[1], [0], [0], [1], [0, 0, 1, 1], [], []>} : vector<8x8xbf16>, vector<8x64xbf16>, vector<8x64xf32> -> vector<8x64xf32>
    %c2_228 = arith.constant 2 : index
    %c0_229 = arith.constant 0 : index
    %c0_230 = arith.constant 0 : index
    %364 = vector.load %arg16[%c2_228, %c0_229, %c0_230] : memref<4x16x64xbf16, #tpu.memory_space<vmem>>, vector<1x16x64xbf16>
    %365 = vector.shape_cast %364 : vector<1x16x64xbf16> to vector<16x64xbf16>
    %cst_231 = arith.constant dense<0.000000e+00> : vector<8x64xf32>
    %366 = tpu.matmul %1, %365, %cst_231 {dimension_numbers = #tpu.dot_dimension_numbers<[1], [0], [0], [1], [0, 0, 1, 1], [], []>} : vector<8x16xbf16>, vector<16x64xbf16>, vector<8x64xf32> -> vector<8x64xf32>
    %367 = arith.addf %363, %366 : vector<8x64xf32>
    %c2_232 = arith.constant 2 : index
    %c0_233 = arith.constant 0 : index
    %c0_234 = arith.constant 0 : index
    %368 = vector.load %arg17[%c2_232, %c0_233, %c0_234] : memref<4x1x64xf32, #tpu.memory_space<vmem>>, vector<1x1x64xf32>
    %369 = vector.shape_cast %368 : vector<1x1x64xf32> to vector<1x64xf32>
    %370 = vector.broadcast %369 : vector<1x64xf32> to vector<8x64xf32>
    %371 = arith.addf %367, %370 : vector<8x64xf32>
    %cst_235 = arith.constant 0.000000e+00 : f32
    %372 = vector.broadcast %cst_235 : f32 to vector<8x64xf32>
    %373 = arith.cmpf oge, %371, %372 : vector<8x64xf32>
    %cst_236 = arith.constant 0.00999999977 : f32
    %374 = vector.broadcast %cst_236 : f32 to vector<8x64xf32>
    %375 = arith.mulf %374, %371 : vector<8x64xf32>
    %376 = arith.select %373, %371, %375 : vector<8x64xi1>, vector<8x64xf32>
    %377 = arith.truncf %376 : vector<8x64xf32> to vector<8x64xbf16>
    %c2_237 = arith.constant 2 : index
    %c0_238 = arith.constant 0 : index
    %c0_239 = arith.constant 0 : index
    %378 = vector.load %arg18[%c2_237, %c0_238, %c0_239] : memref<4x64x64xbf16, #tpu.memory_space<vmem>>, vector<1x64x64xbf16>
    %379 = vector.shape_cast %378 : vector<1x64x64xbf16> to vector<64x64xbf16>
    %cst_240 = arith.constant dense<0.000000e+00> : vector<8x64xf32>
    %380 = tpu.matmul %377, %379, %cst_240 {dimension_numbers = #tpu.dot_dimension_numbers<[1], [0], [0], [1], [0, 0, 1, 1], [], []>} : vector<8x64xbf16>, vector<64x64xbf16>, vector<8x64xf32> -> vector<8x64xf32>
    %c2_241 = arith.constant 2 : index
    %c0_242 = arith.constant 0 : index
    %c0_243 = arith.constant 0 : index
    %381 = vector.load %arg19[%c2_241, %c0_242, %c0_243] : memref<4x1x64xf32, #tpu.memory_space<vmem>>, vector<1x1x64xf32>
    %382 = vector.shape_cast %381 : vector<1x1x64xf32> to vector<1x64xf32>
    %383 = vector.broadcast %382 : vector<1x64xf32> to vector<8x64xf32>
    %384 = arith.addf %380, %383 : vector<8x64xf32>
    %cst_244 = arith.constant 0.000000e+00 : f32
    %385 = vector.broadcast %cst_244 : f32 to vector<8x64xf32>
    %386 = arith.cmpf oge, %384, %385 : vector<8x64xf32>
    %cst_245 = arith.constant 0.00999999977 : f32
    %387 = vector.broadcast %cst_245 : f32 to vector<8x64xf32>
    %388 = arith.mulf %387, %384 : vector<8x64xf32>
    %389 = arith.select %386, %384, %388 : vector<8x64xi1>, vector<8x64xf32>
    %390 = arith.truncf %389 : vector<8x64xf32> to vector<8x64xbf16>
    %c2_246 = arith.constant 2 : index
    %c0_247 = arith.constant 0 : index
    %c0_248 = arith.constant 0 : index
    %391 = vector.load %arg20[%c2_246, %c0_247, %c0_248] : memref<4x64x16xbf16, #tpu.memory_space<vmem>>, vector<1x64x16xbf16>
    %392 = vector.shape_cast %391 : vector<1x64x16xbf16> to vector<64x16xbf16>
    %cst_249 = arith.constant dense<0.000000e+00> : vector<8x16xf32>
    %393 = tpu.matmul %390, %392, %cst_249 {dimension_numbers = #tpu.dot_dimension_numbers<[1], [0], [0], [1], [0, 0, 1, 1], [], []>} : vector<8x64xbf16>, vector<64x16xbf16>, vector<8x16xf32> -> vector<8x16xf32>
    %c2_250 = arith.constant 2 : index
    %c0_251 = arith.constant 0 : index
    %c0_252 = arith.constant 0 : index
    %394 = vector.load %arg21[%c2_250, %c0_251, %c0_252] : memref<4x1x16xf32, #tpu.memory_space<vmem>>, vector<1x1x16xf32>
    %395 = vector.shape_cast %394 : vector<1x1x16xf32> to vector<1x16xf32>
    %396 = vector.broadcast %395 : vector<1x16xf32> to vector<8x16xf32>
    %397 = arith.addf %393, %396 : vector<8x16xf32>
    %398 = vector.extract_strided_slice %397 {offsets = [0, 0], sizes = [8, 8], strides = [1, 1]} : vector<8x16xf32> to vector<8x8xf32>
    %399 = math.tanh %398 : vector<8x8xf32>
    %400 = vector.extract_strided_slice %397 {offsets = [0, 8], sizes = [8, 8], strides = [1, 1]} : vector<8x16xf32> to vector<8x8xf32>
    %401 = math.exp %399 : vector<8x8xf32>
    %402 = arith.mulf %359, %401 : vector<8x8xf32>
    %403 = arith.addf %402, %400 : vector<8x8xf32>
    %cst_253 = arith.constant dense<0.000000e+00> : vector<8xf32>
    %404 = vector.multi_reduction <add>, %399, %cst_253 [1] : vector<8x8xf32> to vector<8xf32>
    %405 = vector.shape_cast %404 : vector<8xf32> to vector<8x1xf32>
    %406 = arith.addf %340, %405 : vector<8x1xf32>
    %407 = arith.truncf %403 : vector<8x8xf32> to vector<8x8xbf16>
    %c3_254 = arith.constant 3 : index
    %c0_255 = arith.constant 0 : index
    %c0_256 = arith.constant 0 : index
    %408 = vector.load %arg15[%c3_254, %c0_255, %c0_256] : memref<4x8x64xbf16, #tpu.memory_space<vmem>>, vector<1x8x64xbf16>
    %409 = vector.shape_cast %408 : vector<1x8x64xbf16> to vector<8x64xbf16>
    %cst_257 = arith.constant dense<0.000000e+00> : vector<8x64xf32>
    %410 = tpu.matmul %407, %409, %cst_257 {dimension_numbers = #tpu.dot_dimension_numbers<[1], [0], [0], [1], [0, 0, 1, 1], [], []>} : vector<8x8xbf16>, vector<8x64xbf16>, vector<8x64xf32> -> vector<8x64xf32>
    %c3_258 = arith.constant 3 : index
    %c0_259 = arith.constant 0 : index
    %c0_260 = arith.constant 0 : index
    %411 = vector.load %arg16[%c3_258, %c0_259, %c0_260] : memref<4x16x64xbf16, #tpu.memory_space<vmem>>, vector<1x16x64xbf16>
    %412 = vector.shape_cast %411 : vector<1x16x64xbf16> to vector<16x64xbf16>
    %cst_261 = arith.constant dense<0.000000e+00> : vector<8x64xf32>
    %413 = tpu.matmul %1, %412, %cst_261 {dimension_numbers = #tpu.dot_dimension_numbers<[1], [0], [0], [1], [0, 0, 1, 1], [], []>} : vector<8x16xbf16>, vector<16x64xbf16>, vector<8x64xf32> -> vector<8x64xf32>
    %414 = arith.addf %410, %413 : vector<8x64xf32>
    %c3_262 = arith.constant 3 : index
    %c0_263 = arith.constant 0 : index
    %c0_264 = arith.constant 0 : index
    %415 = vector.load %arg17[%c3_262, %c0_263, %c0_264] : memref<4x1x64xf32, #tpu.memory_space<vmem>>, vector<1x1x64xf32>
    %416 = vector.shape_cast %415 : vector<1x1x64xf32> to vector<1x64xf32>
    %417 = vector.broadcast %416 : vector<1x64xf32> to vector<8x64xf32>
    %418 = arith.addf %414, %417 : vector<8x64xf32>
    %cst_265 = arith.constant 0.000000e+00 : f32
    %419 = vector.broadcast %cst_265 : f32 to vector<8x64xf32>
    %420 = arith.cmpf oge, %418, %419 : vector<8x64xf32>
    %cst_266 = arith.constant 0.00999999977 : f32
    %421 = vector.broadcast %cst_266 : f32 to vector<8x64xf32>
    %422 = arith.mulf %421, %418 : vector<8x64xf32>
    %423 = arith.select %420, %418, %422 : vector<8x64xi1>, vector<8x64xf32>
    %424 = arith.truncf %423 : vector<8x64xf32> to vector<8x64xbf16>
    %c3_267 = arith.constant 3 : index
    %c0_268 = arith.constant 0 : index
    %c0_269 = arith.constant 0 : index
    %425 = vector.load %arg18[%c3_267, %c0_268, %c0_269] : memref<4x64x64xbf16, #tpu.memory_space<vmem>>, vector<1x64x64xbf16>
    %426 = vector.shape_cast %425 : vector<1x64x64xbf16> to vector<64x64xbf16>
    %cst_270 = arith.constant dense<0.000000e+00> : vector<8x64xf32>
    %427 = tpu.matmul %424, %426, %cst_270 {dimension_numbers = #tpu.dot_dimension_numbers<[1], [0], [0], [1], [0, 0, 1, 1], [], []>} : vector<8x64xbf16>, vector<64x64xbf16>, vector<8x64xf32> -> vector<8x64xf32>
    %c3_271 = arith.constant 3 : index
    %c0_272 = arith.constant 0 : index
    %c0_273 = arith.constant 0 : index
    %428 = vector.load %arg19[%c3_271, %c0_272, %c0_273] : memref<4x1x64xf32, #tpu.memory_space<vmem>>, vector<1x1x64xf32>
    %429 = vector.shape_cast %428 : vector<1x1x64xf32> to vector<1x64xf32>
    %430 = vector.broadcast %429 : vector<1x64xf32> to vector<8x64xf32>
    %431 = arith.addf %427, %430 : vector<8x64xf32>
    %cst_274 = arith.constant 0.000000e+00 : f32
    %432 = vector.broadcast %cst_274 : f32 to vector<8x64xf32>
    %433 = arith.cmpf oge, %431, %432 : vector<8x64xf32>
    %cst_275 = arith.constant 0.00999999977 : f32
    %434 = vector.broadcast %cst_275 : f32 to vector<8x64xf32>
    %435 = arith.mulf %434, %431 : vector<8x64xf32>
    %436 = arith.select %433, %431, %435 : vector<8x64xi1>, vector<8x64xf32>
    %437 = arith.truncf %436 : vector<8x64xf32> to vector<8x64xbf16>
    %c3_276 = arith.constant 3 : index
    %c0_277 = arith.constant 0 : index
    %c0_278 = arith.constant 0 : index
    %438 = vector.load %arg20[%c3_276, %c0_277, %c0_278] : memref<4x64x16xbf16, #tpu.memory_space<vmem>>, vector<1x64x16xbf16>
    %439 = vector.shape_cast %438 : vector<1x64x16xbf16> to vector<64x16xbf16>
    %cst_279 = arith.constant dense<0.000000e+00> : vector<8x16xf32>
    %440 = tpu.matmul %437, %439, %cst_279 {dimension_numbers = #tpu.dot_dimension_numbers<[1], [0], [0], [1], [0, 0, 1, 1], [], []>} : vector<8x64xbf16>, vector<64x16xbf16>, vector<8x16xf32> -> vector<8x16xf32>
    %c3_280 = arith.constant 3 : index
    %c0_281 = arith.constant 0 : index
    %c0_282 = arith.constant 0 : index
    %441 = vector.load %arg21[%c3_280, %c0_281, %c0_282] : memref<4x1x16xf32, #tpu.memory_space<vmem>>, vector<1x1x16xf32>
    %442 = vector.shape_cast %441 : vector<1x1x16xf32> to vector<1x16xf32>
    %443 = vector.broadcast %442 : vector<1x16xf32> to vector<8x16xf32>
    %444 = arith.addf %440, %443 : vector<8x16xf32>
    %445 = vector.extract_strided_slice %444 {offsets = [0, 0], sizes = [8, 8], strides = [1, 1]} : vector<8x16xf32> to vector<8x8xf32>
    %446 = math.tanh %445 : vector<8x8xf32>
    %447 = vector.extract_strided_slice %444 {offsets = [0, 8], sizes = [8, 8], strides = [1, 1]} : vector<8x16xf32> to vector<8x8xf32>
    %448 = math.exp %446 : vector<8x8xf32>
    %449 = arith.mulf %358, %448 : vector<8x8xf32>
    %450 = arith.addf %449, %447 : vector<8x8xf32>
    %cst_283 = arith.constant dense<0.000000e+00> : vector<8xf32>
    %451 = vector.multi_reduction <add>, %446, %cst_283 [1] : vector<8x8xf32> to vector<8xf32>
    %452 = vector.shape_cast %451 : vector<8xf32> to vector<8x1xf32>
    %453 = arith.addf %406, %452 : vector<8x1xf32>
    %454 = tpu.concatenate %403, %450 in 1 : vector<8x8xf32>, vector<8x8xf32> -> vector<8x16xf32>
    %c1_284 = arith.constant 1 : index
    %c0_285 = arith.constant 0 : index
    %c0_286 = arith.constant 0 : index
    %455 = vector.load %arg14[%c1_284, %c0_285, %c0_286] : memref<2x16x16xf32, #tpu.memory_space<vmem>>, vector<1x16x16xf32>
    %456 = vector.shape_cast %455 : vector<1x16x16xf32> to vector<16x16xf32>
    %cst_287 = arith.constant dense<0.000000e+00> : vector<8x16xf32>
    %457 = tpu.matmul %454, %456, %cst_287 {dimension_numbers = #tpu.dot_dimension_numbers<[1], [0], [0], [1], [0, 0, 1, 1], [], []>} : vector<8x16xf32>, vector<16x16xf32>, vector<8x16xf32> -> vector<8x16xf32>
    %458 = vector.extract_strided_slice %457 {offsets = [0, 0], sizes = [8, 8], strides = [1, 1]} : vector<8x16xf32> to vector<8x8xf32>
    %459 = vector.extract_strided_slice %457 {offsets = [0, 8], sizes = [8, 8], strides = [1, 1]} : vector<8x16xf32> to vector<8x8xf32>
    %c0_288 = arith.constant 0 : index
    %c0_289 = arith.constant 0 : index
    %c0_290 = arith.constant 0 : index
    %460 = vector.load %arg23[%c0_288, %c0_289, %c0_290] : memref<2x1x8xf32, #tpu.memory_space<vmem>>, vector<1x1x8xf32>
    %461 = vector.shape_cast %460 : vector<1x1x8xf32> to vector<1x8xf32>
    %c0_291 = arith.constant 0 : index
    %c0_292 = arith.constant 0 : index
    %c0_293 = arith.constant 0 : index
    %462 = vector.load %arg22[%c0_291, %c0_292, %c0_293] : memref<2x1x8xf32, #tpu.memory_space<vmem>>, vector<1x1x8xf32>
    %463 = vector.shape_cast %462 : vector<1x1x8xf32> to vector<1x8xf32>
    %464 = vector.broadcast %463 : vector<1x8xf32> to vector<8x8xf32>
    %465 = arith.addf %459, %464 : vector<8x8xf32>
    %466 = vector.broadcast %461 : vector<1x8xf32> to vector<8x8xf32>
    %467 = arith.mulf %466, %465 : vector<8x8xf32>
    %cst_294 = arith.constant 0.000000e+00 : f32
    %468 = vector.broadcast %cst_294 : f32 to vector<8x8xf32>
    %469 = arith.cmpf oge, %467, %468 : vector<8x8xf32>
    %cst_295 = arith.constant 0.899999976 : f32
    %470 = vector.broadcast %cst_295 : f32 to vector<8x8xf32>
    %471 = arith.mulf %470, %467 : vector<8x8xf32>
    %472 = arith.select %469, %467, %471 : vector<8x8xi1>, vector<8x8xf32>
    %473 = vector.extract_strided_slice %472 {offsets = [0, 0], sizes = [8, 4], strides = [1, 1]} : vector<8x8xf32> to vector<8x4xf32>
    %474 = vector.extract_strided_slice %472 {offsets = [0, 4], sizes = [8, 4], strides = [1, 1]} : vector<8x8xf32> to vector<8x4xf32>
    %475 = arith.truncf %473 : vector<8x4xf32> to vector<8x4xbf16>
    %c0_296 = arith.constant 0 : index
    %c0_297 = arith.constant 0 : index
    %c0_298 = arith.constant 0 : index
    %476 = vector.load %arg25[%c0_296, %c0_297, %c0_298] : memref<4x4x32xbf16, #tpu.memory_space<vmem>>, vector<1x4x32xbf16>
    %477 = vector.shape_cast %476 : vector<1x4x32xbf16> to vector<4x32xbf16>
    %cst_299 = arith.constant dense<0.000000e+00> : vector<8x32xf32>
    %478 = tpu.matmul %475, %477, %cst_299 {dimension_numbers = #tpu.dot_dimension_numbers<[1], [0], [0], [1], [0, 0, 1, 1], [], []>} : vector<8x4xbf16>, vector<4x32xbf16>, vector<8x32xf32> -> vector<8x32xf32>
    %c0_300 = arith.constant 0 : index
    %c0_301 = arith.constant 0 : index
    %c0_302 = arith.constant 0 : index
    %479 = vector.load %arg26[%c0_300, %c0_301, %c0_302] : memref<4x16x32xbf16, #tpu.memory_space<vmem>>, vector<1x16x32xbf16>
    %480 = vector.shape_cast %479 : vector<1x16x32xbf16> to vector<16x32xbf16>
    %cst_303 = arith.constant dense<0.000000e+00> : vector<8x32xf32>
    %481 = tpu.matmul %1, %480, %cst_303 {dimension_numbers = #tpu.dot_dimension_numbers<[1], [0], [0], [1], [0, 0, 1, 1], [], []>} : vector<8x16xbf16>, vector<16x32xbf16>, vector<8x32xf32> -> vector<8x32xf32>
    %482 = arith.addf %478, %481 : vector<8x32xf32>
    %c0_304 = arith.constant 0 : index
    %c0_305 = arith.constant 0 : index
    %c0_306 = arith.constant 0 : index
    %483 = vector.load %arg27[%c0_304, %c0_305, %c0_306] : memref<4x1x32xf32, #tpu.memory_space<vmem>>, vector<1x1x32xf32>
    %484 = vector.shape_cast %483 : vector<1x1x32xf32> to vector<1x32xf32>
    %485 = vector.broadcast %484 : vector<1x32xf32> to vector<8x32xf32>
    %486 = arith.addf %482, %485 : vector<8x32xf32>
    %cst_307 = arith.constant 0.000000e+00 : f32
    %487 = vector.broadcast %cst_307 : f32 to vector<8x32xf32>
    %488 = arith.cmpf oge, %486, %487 : vector<8x32xf32>
    %cst_308 = arith.constant 0.00999999977 : f32
    %489 = vector.broadcast %cst_308 : f32 to vector<8x32xf32>
    %490 = arith.mulf %489, %486 : vector<8x32xf32>
    %491 = arith.select %488, %486, %490 : vector<8x32xi1>, vector<8x32xf32>
    %492 = arith.truncf %491 : vector<8x32xf32> to vector<8x32xbf16>
    %c0_309 = arith.constant 0 : index
    %c0_310 = arith.constant 0 : index
    %c0_311 = arith.constant 0 : index
    %493 = vector.load %arg28[%c0_309, %c0_310, %c0_311] : memref<4x32x32xbf16, #tpu.memory_space<vmem>>, vector<1x32x32xbf16>
    %494 = vector.shape_cast %493 : vector<1x32x32xbf16> to vector<32x32xbf16>
    %cst_312 = arith.constant dense<0.000000e+00> : vector<8x32xf32>
    %495 = tpu.matmul %492, %494, %cst_312 {dimension_numbers = #tpu.dot_dimension_numbers<[1], [0], [0], [1], [0, 0, 1, 1], [], []>} : vector<8x32xbf16>, vector<32x32xbf16>, vector<8x32xf32> -> vector<8x32xf32>
    %c0_313 = arith.constant 0 : index
    %c0_314 = arith.constant 0 : index
    %c0_315 = arith.constant 0 : index
    %496 = vector.load %arg29[%c0_313, %c0_314, %c0_315] : memref<4x1x32xf32, #tpu.memory_space<vmem>>, vector<1x1x32xf32>
    %497 = vector.shape_cast %496 : vector<1x1x32xf32> to vector<1x32xf32>
    %498 = vector.broadcast %497 : vector<1x32xf32> to vector<8x32xf32>
    %499 = arith.addf %495, %498 : vector<8x32xf32>
    %cst_316 = arith.constant 0.000000e+00 : f32
    %500 = vector.broadcast %cst_316 : f32 to vector<8x32xf32>
    %501 = arith.cmpf oge, %499, %500 : vector<8x32xf32>
    %cst_317 = arith.constant 0.00999999977 : f32
    %502 = vector.broadcast %cst_317 : f32 to vector<8x32xf32>
    %503 = arith.mulf %502, %499 : vector<8x32xf32>
    %504 = arith.select %501, %499, %503 : vector<8x32xi1>, vector<8x32xf32>
    %505 = arith.truncf %504 : vector<8x32xf32> to vector<8x32xbf16>
    %c0_318 = arith.constant 0 : index
    %c0_319 = arith.constant 0 : index
    %c0_320 = arith.constant 0 : index
    %506 = vector.load %arg30[%c0_318, %c0_319, %c0_320] : memref<4x32x8xbf16, #tpu.memory_space<vmem>>, vector<1x32x8xbf16>
    %507 = vector.shape_cast %506 : vector<1x32x8xbf16> to vector<32x8xbf16>
    %cst_321 = arith.constant dense<0.000000e+00> : vector<8x8xf32>
    %508 = tpu.matmul %505, %507, %cst_321 {dimension_numbers = #tpu.dot_dimension_numbers<[1], [0], [0], [1], [0, 0, 1, 1], [], []>} : vector<8x32xbf16>, vector<32x8xbf16>, vector<8x8xf32> -> vector<8x8xf32>
    %c0_322 = arith.constant 0 : index
    %c0_323 = arith.constant 0 : index
    %c0_324 = arith.constant 0 : index
    %509 = vector.load %arg31[%c0_322, %c0_323, %c0_324] : memref<4x1x8xf32, #tpu.memory_space<vmem>>, vector<1x1x8xf32>
    %510 = vector.shape_cast %509 : vector<1x1x8xf32> to vector<1x8xf32>
    %511 = vector.broadcast %510 : vector<1x8xf32> to vector<8x8xf32>
    %512 = arith.addf %508, %511 : vector<8x8xf32>
    %513 = vector.extract_strided_slice %512 {offsets = [0, 0], sizes = [8, 4], strides = [1, 1]} : vector<8x8xf32> to vector<8x4xf32>
    %514 = math.tanh %513 : vector<8x4xf32>
    %515 = vector.extract_strided_slice %512 {offsets = [0, 4], sizes = [8, 4], strides = [1, 1]} : vector<8x8xf32> to vector<8x4xf32>
    %516 = math.exp %514 : vector<8x4xf32>
    %517 = arith.mulf %474, %516 : vector<8x4xf32>
    %518 = arith.addf %517, %515 : vector<8x4xf32>
    %cst_325 = arith.constant dense<0.000000e+00> : vector<8xf32>
    %519 = vector.multi_reduction <add>, %514, %cst_325 [1] : vector<8x4xf32> to vector<8xf32>
    %520 = vector.shape_cast %519 : vector<8xf32> to vector<8x1xf32>
    %521 = arith.addf %453, %520 : vector<8x1xf32>
    %522 = arith.truncf %518 : vector<8x4xf32> to vector<8x4xbf16>
    %c1_326 = arith.constant 1 : index
    %c0_327 = arith.constant 0 : index
    %c0_328 = arith.constant 0 : index
    %523 = vector.load %arg25[%c1_326, %c0_327, %c0_328] : memref<4x4x32xbf16, #tpu.memory_space<vmem>>, vector<1x4x32xbf16>
    %524 = vector.shape_cast %523 : vector<1x4x32xbf16> to vector<4x32xbf16>
    %cst_329 = arith.constant dense<0.000000e+00> : vector<8x32xf32>
    %525 = tpu.matmul %522, %524, %cst_329 {dimension_numbers = #tpu.dot_dimension_numbers<[1], [0], [0], [1], [0, 0, 1, 1], [], []>} : vector<8x4xbf16>, vector<4x32xbf16>, vector<8x32xf32> -> vector<8x32xf32>
    %c1_330 = arith.constant 1 : index
    %c0_331 = arith.constant 0 : index
    %c0_332 = arith.constant 0 : index
    %526 = vector.load %arg26[%c1_330, %c0_331, %c0_332] : memref<4x16x32xbf16, #tpu.memory_space<vmem>>, vector<1x16x32xbf16>
    %527 = vector.shape_cast %526 : vector<1x16x32xbf16> to vector<16x32xbf16>
    %cst_333 = arith.constant dense<0.000000e+00> : vector<8x32xf32>
    %528 = tpu.matmul %1, %527, %cst_333 {dimension_numbers = #tpu.dot_dimension_numbers<[1], [0], [0], [1], [0, 0, 1, 1], [], []>} : vector<8x16xbf16>, vector<16x32xbf16>, vector<8x32xf32> -> vector<8x32xf32>
    %529 = arith.addf %525, %528 : vector<8x32xf32>
    %c1_334 = arith.constant 1 : index
    %c0_335 = arith.constant 0 : index
    %c0_336 = arith.constant 0 : index
    %530 = vector.load %arg27[%c1_334, %c0_335, %c0_336] : memref<4x1x32xf32, #tpu.memory_space<vmem>>, vector<1x1x32xf32>
    %531 = vector.shape_cast %530 : vector<1x1x32xf32> to vector<1x32xf32>
    %532 = vector.broadcast %531 : vector<1x32xf32> to vector<8x32xf32>
    %533 = arith.addf %529, %532 : vector<8x32xf32>
    %cst_337 = arith.constant 0.000000e+00 : f32
    %534 = vector.broadcast %cst_337 : f32 to vector<8x32xf32>
    %535 = arith.cmpf oge, %533, %534 : vector<8x32xf32>
    %cst_338 = arith.constant 0.00999999977 : f32
    %536 = vector.broadcast %cst_338 : f32 to vector<8x32xf32>
    %537 = arith.mulf %536, %533 : vector<8x32xf32>
    %538 = arith.select %535, %533, %537 : vector<8x32xi1>, vector<8x32xf32>
    %539 = arith.truncf %538 : vector<8x32xf32> to vector<8x32xbf16>
    %c1_339 = arith.constant 1 : index
    %c0_340 = arith.constant 0 : index
    %c0_341 = arith.constant 0 : index
    %540 = vector.load %arg28[%c1_339, %c0_340, %c0_341] : memref<4x32x32xbf16, #tpu.memory_space<vmem>>, vector<1x32x32xbf16>
    %541 = vector.shape_cast %540 : vector<1x32x32xbf16> to vector<32x32xbf16>
    %cst_342 = arith.constant dense<0.000000e+00> : vector<8x32xf32>
    %542 = tpu.matmul %539, %541, %cst_342 {dimension_numbers = #tpu.dot_dimension_numbers<[1], [0], [0], [1], [0, 0, 1, 1], [], []>} : vector<8x32xbf16>, vector<32x32xbf16>, vector<8x32xf32> -> vector<8x32xf32>
    %c1_343 = arith.constant 1 : index
    %c0_344 = arith.constant 0 : index
    %c0_345 = arith.constant 0 : index
    %543 = vector.load %arg29[%c1_343, %c0_344, %c0_345] : memref<4x1x32xf32, #tpu.memory_space<vmem>>, vector<1x1x32xf32>
    %544 = vector.shape_cast %543 : vector<1x1x32xf32> to vector<1x32xf32>
    %545 = vector.broadcast %544 : vector<1x32xf32> to vector<8x32xf32>
    %546 = arith.addf %542, %545 : vector<8x32xf32>
    %cst_346 = arith.constant 0.000000e+00 : f32
    %547 = vector.broadcast %cst_346 : f32 to vector<8x32xf32>
    %548 = arith.cmpf oge, %546, %547 : vector<8x32xf32>
    %cst_347 = arith.constant 0.00999999977 : f32
    %549 = vector.broadcast %cst_347 : f32 to vector<8x32xf32>
    %550 = arith.mulf %549, %546 : vector<8x32xf32>
    %551 = arith.select %548, %546, %550 : vector<8x32xi1>, vector<8x32xf32>
    %552 = arith.truncf %551 : vector<8x32xf32> to vector<8x32xbf16>
    %c1_348 = arith.constant 1 : index
    %c0_349 = arith.constant 0 : index
    %c0_350 = arith.constant 0 : index
    %553 = vector.load %arg30[%c1_348, %c0_349, %c0_350] : memref<4x32x8xbf16, #tpu.memory_space<vmem>>, vector<1x32x8xbf16>
    %554 = vector.shape_cast %553 : vector<1x32x8xbf16> to vector<32x8xbf16>
    %cst_351 = arith.constant dense<0.000000e+00> : vector<8x8xf32>
    %555 = tpu.matmul %552, %554, %cst_351 {dimension_numbers = #tpu.dot_dimension_numbers<[1], [0], [0], [1], [0, 0, 1, 1], [], []>} : vector<8x32xbf16>, vector<32x8xbf16>, vector<8x8xf32> -> vector<8x8xf32>
    %c1_352 = arith.constant 1 : index
    %c0_353 = arith.constant 0 : index
    %c0_354 = arith.constant 0 : index
    %556 = vector.load %arg31[%c1_352, %c0_353, %c0_354] : memref<4x1x8xf32, #tpu.memory_space<vmem>>, vector<1x1x8xf32>
    %557 = vector.shape_cast %556 : vector<1x1x8xf32> to vector<1x8xf32>
    %558 = vector.broadcast %557 : vector<1x8xf32> to vector<8x8xf32>
    %559 = arith.addf %555, %558 : vector<8x8xf32>
    %560 = vector.extract_strided_slice %559 {offsets = [0, 0], sizes = [8, 4], strides = [1, 1]} : vector<8x8xf32> to vector<8x4xf32>
    %561 = math.tanh %560 : vector<8x4xf32>
    %562 = vector.extract_strided_slice %559 {offsets = [0, 4], sizes = [8, 4], strides = [1, 1]} : vector<8x8xf32> to vector<8x4xf32>
    %563 = math.exp %561 : vector<8x4xf32>
    %564 = arith.mulf %473, %563 : vector<8x4xf32>
    %565 = arith.addf %564, %562 : vector<8x4xf32>
    %cst_355 = arith.constant dense<0.000000e+00> : vector<8xf32>
    %566 = vector.multi_reduction <add>, %561, %cst_355 [1] : vector<8x4xf32> to vector<8xf32>
    %567 = vector.shape_cast %566 : vector<8xf32> to vector<8x1xf32>
    %568 = arith.addf %521, %567 : vector<8x1xf32>
    %569 = tpu.concatenate %518, %565 in 1 : vector<8x4xf32>, vector<8x4xf32> -> vector<8x8xf32>
    %c0_356 = arith.constant 0 : index
    %c0_357 = arith.constant 0 : index
    %c0_358 = arith.constant 0 : index
    %570 = vector.load %arg24[%c0_356, %c0_357, %c0_358] : memref<2x8x8xf32, #tpu.memory_space<vmem>>, vector<1x8x8xf32>
    %571 = vector.shape_cast %570 : vector<1x8x8xf32> to vector<8x8xf32>
    %cst_359 = arith.constant dense<0.000000e+00> : vector<8x8xf32>
    %572 = tpu.matmul %569, %571, %cst_359 {dimension_numbers = #tpu.dot_dimension_numbers<[1], [0], [0], [1], [0, 0, 1, 1], [], []>} : vector<8x8xf32>, vector<8x8xf32>, vector<8x8xf32> -> vector<8x8xf32>
    %c1_360 = arith.constant 1 : index
    %c0_361 = arith.constant 0 : index
    %c0_362 = arith.constant 0 : index
    %573 = vector.load %arg23[%c1_360, %c0_361, %c0_362] : memref<2x1x8xf32, #tpu.memory_space<vmem>>, vector<1x1x8xf32>
    %574 = vector.shape_cast %573 : vector<1x1x8xf32> to vector<1x8xf32>
    %c1_363 = arith.constant 1 : index
    %c0_364 = arith.constant 0 : index
    %c0_365 = arith.constant 0 : index
    %575 = vector.load %arg22[%c1_363, %c0_364, %c0_365] : memref<2x1x8xf32, #tpu.memory_space<vmem>>, vector<1x1x8xf32>
    %576 = vector.shape_cast %575 : vector<1x1x8xf32> to vector<1x8xf32>
    %577 = vector.broadcast %576 : vector<1x8xf32> to vector<8x8xf32>
    %578 = arith.addf %572, %577 : vector<8x8xf32>
    %579 = vector.broadcast %574 : vector<1x8xf32> to vector<8x8xf32>
    %580 = arith.mulf %579, %578 : vector<8x8xf32>
    %cst_366 = arith.constant 0.000000e+00 : f32
    %581 = vector.broadcast %cst_366 : f32 to vector<8x8xf32>
    %582 = arith.cmpf oge, %580, %581 : vector<8x8xf32>
    %cst_367 = arith.constant 0.899999976 : f32
    %583 = vector.broadcast %cst_367 : f32 to vector<8x8xf32>
    %584 = arith.mulf %583, %580 : vector<8x8xf32>
    %585 = arith.select %582, %580, %584 : vector<8x8xi1>, vector<8x8xf32>
    %586 = vector.extract_strided_slice %585 {offsets = [0, 0], sizes = [8, 4], strides = [1, 1]} : vector<8x8xf32> to vector<8x4xf32>
    %587 = vector.extract_strided_slice %585 {offsets = [0, 4], sizes = [8, 4], strides = [1, 1]} : vector<8x8xf32> to vector<8x4xf32>
    %588 = arith.truncf %586 : vector<8x4xf32> to vector<8x4xbf16>
    %c2_368 = arith.constant 2 : index
    %c0_369 = arith.constant 0 : index
    %c0_370 = arith.constant 0 : index
    %589 = vector.load %arg25[%c2_368, %c0_369, %c0_370] : memref<4x4x32xbf16, #tpu.memory_space<vmem>>, vector<1x4x32xbf16>
    %590 = vector.shape_cast %589 : vector<1x4x32xbf16> to vector<4x32xbf16>
    %cst_371 = arith.constant dense<0.000000e+00> : vector<8x32xf32>
    %591 = tpu.matmul %588, %590, %cst_371 {dimension_numbers = #tpu.dot_dimension_numbers<[1], [0], [0], [1], [0, 0, 1, 1], [], []>} : vector<8x4xbf16>, vector<4x32xbf16>, vector<8x32xf32> -> vector<8x32xf32>
    %c2_372 = arith.constant 2 : index
    %c0_373 = arith.constant 0 : index
    %c0_374 = arith.constant 0 : index
    %592 = vector.load %arg26[%c2_372, %c0_373, %c0_374] : memref<4x16x32xbf16, #tpu.memory_space<vmem>>, vector<1x16x32xbf16>
    %593 = vector.shape_cast %592 : vector<1x16x32xbf16> to vector<16x32xbf16>
    %cst_375 = arith.constant dense<0.000000e+00> : vector<8x32xf32>
    %594 = tpu.matmul %1, %593, %cst_375 {dimension_numbers = #tpu.dot_dimension_numbers<[1], [0], [0], [1], [0, 0, 1, 1], [], []>} : vector<8x16xbf16>, vector<16x32xbf16>, vector<8x32xf32> -> vector<8x32xf32>
    %595 = arith.addf %591, %594 : vector<8x32xf32>
    %c2_376 = arith.constant 2 : index
    %c0_377 = arith.constant 0 : index
    %c0_378 = arith.constant 0 : index
    %596 = vector.load %arg27[%c2_376, %c0_377, %c0_378] : memref<4x1x32xf32, #tpu.memory_space<vmem>>, vector<1x1x32xf32>
    %597 = vector.shape_cast %596 : vector<1x1x32xf32> to vector<1x32xf32>
    %598 = vector.broadcast %597 : vector<1x32xf32> to vector<8x32xf32>
    %599 = arith.addf %595, %598 : vector<8x32xf32>
    %cst_379 = arith.constant 0.000000e+00 : f32
    %600 = vector.broadcast %cst_379 : f32 to vector<8x32xf32>
    %601 = arith.cmpf oge, %599, %600 : vector<8x32xf32>
    %cst_380 = arith.constant 0.00999999977 : f32
    %602 = vector.broadcast %cst_380 : f32 to vector<8x32xf32>
    %603 = arith.mulf %602, %599 : vector<8x32xf32>
    %604 = arith.select %601, %599, %603 : vector<8x32xi1>, vector<8x32xf32>
    %605 = arith.truncf %604 : vector<8x32xf32> to vector<8x32xbf16>
    %c2_381 = arith.constant 2 : index
    %c0_382 = arith.constant 0 : index
    %c0_383 = arith.constant 0 : index
    %606 = vector.load %arg28[%c2_381, %c0_382, %c0_383] : memref<4x32x32xbf16, #tpu.memory_space<vmem>>, vector<1x32x32xbf16>
    %607 = vector.shape_cast %606 : vector<1x32x32xbf16> to vector<32x32xbf16>
    %cst_384 = arith.constant dense<0.000000e+00> : vector<8x32xf32>
    %608 = tpu.matmul %605, %607, %cst_384 {dimension_numbers = #tpu.dot_dimension_numbers<[1], [0], [0], [1], [0, 0, 1, 1], [], []>} : vector<8x32xbf16>, vector<32x32xbf16>, vector<8x32xf32> -> vector<8x32xf32>
    %c2_385 = arith.constant 2 : index
    %c0_386 = arith.constant 0 : index
    %c0_387 = arith.constant 0 : index
    %609 = vector.load %arg29[%c2_385, %c0_386, %c0_387] : memref<4x1x32xf32, #tpu.memory_space<vmem>>, vector<1x1x32xf32>
    %610 = vector.shape_cast %609 : vector<1x1x32xf32> to vector<1x32xf32>
    %611 = vector.broadcast %610 : vector<1x32xf32> to vector<8x32xf32>
    %612 = arith.addf %608, %611 : vector<8x32xf32>
    %cst_388 = arith.constant 0.000000e+00 : f32
    %613 = vector.broadcast %cst_388 : f32 to vector<8x32xf32>
    %614 = arith.cmpf oge, %612, %613 : vector<8x32xf32>
    %cst_389 = arith.constant 0.00999999977 : f32
    %615 = vector.broadcast %cst_389 : f32 to vector<8x32xf32>
    %616 = arith.mulf %615, %612 : vector<8x32xf32>
    %617 = arith.select %614, %612, %616 : vector<8x32xi1>, vector<8x32xf32>
    %618 = arith.truncf %617 : vector<8x32xf32> to vector<8x32xbf16>
    %c2_390 = arith.constant 2 : index
    %c0_391 = arith.constant 0 : index
    %c0_392 = arith.constant 0 : index
    %619 = vector.load %arg30[%c2_390, %c0_391, %c0_392] : memref<4x32x8xbf16, #tpu.memory_space<vmem>>, vector<1x32x8xbf16>
    %620 = vector.shape_cast %619 : vector<1x32x8xbf16> to vector<32x8xbf16>
    %cst_393 = arith.constant dense<0.000000e+00> : vector<8x8xf32>
    %621 = tpu.matmul %618, %620, %cst_393 {dimension_numbers = #tpu.dot_dimension_numbers<[1], [0], [0], [1], [0, 0, 1, 1], [], []>} : vector<8x32xbf16>, vector<32x8xbf16>, vector<8x8xf32> -> vector<8x8xf32>
    %c2_394 = arith.constant 2 : index
    %c0_395 = arith.constant 0 : index
    %c0_396 = arith.constant 0 : index
    %622 = vector.load %arg31[%c2_394, %c0_395, %c0_396] : memref<4x1x8xf32, #tpu.memory_space<vmem>>, vector<1x1x8xf32>
    %623 = vector.shape_cast %622 : vector<1x1x8xf32> to vector<1x8xf32>
    %624 = vector.broadcast %623 : vector<1x8xf32> to vector<8x8xf32>
    %625 = arith.addf %621, %624 : vector<8x8xf32>
    %626 = vector.extract_strided_slice %625 {offsets = [0, 0], sizes = [8, 4], strides = [1, 1]} : vector<8x8xf32> to vector<8x4xf32>
    %627 = math.tanh %626 : vector<8x4xf32>
    %628 = vector.extract_strided_slice %625 {offsets = [0, 4], sizes = [8, 4], strides = [1, 1]} : vector<8x8xf32> to vector<8x4xf32>
    %629 = math.exp %627 : vector<8x4xf32>
    %630 = arith.mulf %587, %629 : vector<8x4xf32>
    %631 = arith.addf %630, %628 : vector<8x4xf32>
    %cst_397 = arith.constant dense<0.000000e+00> : vector<8xf32>
    %632 = vector.multi_reduction <add>, %627, %cst_397 [1] : vector<8x4xf32> to vector<8xf32>
    %633 = vector.shape_cast %632 : vector<8xf32> to vector<8x1xf32>
    %634 = arith.addf %568, %633 : vector<8x1xf32>
    %635 = arith.truncf %631 : vector<8x4xf32> to vector<8x4xbf16>
    %c3_398 = arith.constant 3 : index
    %c0_399 = arith.constant 0 : index
    %c0_400 = arith.constant 0 : index
    %636 = vector.load %arg25[%c3_398, %c0_399, %c0_400] : memref<4x4x32xbf16, #tpu.memory_space<vmem>>, vector<1x4x32xbf16>
    %637 = vector.shape_cast %636 : vector<1x4x32xbf16> to vector<4x32xbf16>
    %cst_401 = arith.constant dense<0.000000e+00> : vector<8x32xf32>
    %638 = tpu.matmul %635, %637, %cst_401 {dimension_numbers = #tpu.dot_dimension_numbers<[1], [0], [0], [1], [0, 0, 1, 1], [], []>} : vector<8x4xbf16>, vector<4x32xbf16>, vector<8x32xf32> -> vector<8x32xf32>
    %c3_402 = arith.constant 3 : index
    %c0_403 = arith.constant 0 : index
    %c0_404 = arith.constant 0 : index
    %639 = vector.load %arg26[%c3_402, %c0_403, %c0_404] : memref<4x16x32xbf16, #tpu.memory_space<vmem>>, vector<1x16x32xbf16>
    %640 = vector.shape_cast %639 : vector<1x16x32xbf16> to vector<16x32xbf16>
    %cst_405 = arith.constant dense<0.000000e+00> : vector<8x32xf32>
    %641 = tpu.matmul %1, %640, %cst_405 {dimension_numbers = #tpu.dot_dimension_numbers<[1], [0], [0], [1], [0, 0, 1, 1], [], []>} : vector<8x16xbf16>, vector<16x32xbf16>, vector<8x32xf32> -> vector<8x32xf32>
    %642 = arith.addf %638, %641 : vector<8x32xf32>
    %c3_406 = arith.constant 3 : index
    %c0_407 = arith.constant 0 : index
    %c0_408 = arith.constant 0 : index
    %643 = vector.load %arg27[%c3_406, %c0_407, %c0_408] : memref<4x1x32xf32, #tpu.memory_space<vmem>>, vector<1x1x32xf32>
    %644 = vector.shape_cast %643 : vector<1x1x32xf32> to vector<1x32xf32>
    %645 = vector.broadcast %644 : vector<1x32xf32> to vector<8x32xf32>
    %646 = arith.addf %642, %645 : vector<8x32xf32>
    %cst_409 = arith.constant 0.000000e+00 : f32
    %647 = vector.broadcast %cst_409 : f32 to vector<8x32xf32>
    %648 = arith.cmpf oge, %646, %647 : vector<8x32xf32>
    %cst_410 = arith.constant 0.00999999977 : f32
    %649 = vector.broadcast %cst_410 : f32 to vector<8x32xf32>
    %650 = arith.mulf %649, %646 : vector<8x32xf32>
    %651 = arith.select %648, %646, %650 : vector<8x32xi1>, vector<8x32xf32>
    %652 = arith.truncf %651 : vector<8x32xf32> to vector<8x32xbf16>
    %c3_411 = arith.constant 3 : index
    %c0_412 = arith.constant 0 : index
    %c0_413 = arith.constant 0 : index
    %653 = vector.load %arg28[%c3_411, %c0_412, %c0_413] : memref<4x32x32xbf16, #tpu.memory_space<vmem>>, vector<1x32x32xbf16>
    %654 = vector.shape_cast %653 : vector<1x32x32xbf16> to vector<32x32xbf16>
    %cst_414 = arith.constant dense<0.000000e+00> : vector<8x32xf32>
    %655 = tpu.matmul %652, %654, %cst_414 {dimension_numbers = #tpu.dot_dimension_numbers<[1], [0], [0], [1], [0, 0, 1, 1], [], []>} : vector<8x32xbf16>, vector<32x32xbf16>, vector<8x32xf32> -> vector<8x32xf32>
    %c3_415 = arith.constant 3 : index
    %c0_416 = arith.constant 0 : index
    %c0_417 = arith.constant 0 : index
    %656 = vector.load %arg29[%c3_415, %c0_416, %c0_417] : memref<4x1x32xf32, #tpu.memory_space<vmem>>, vector<1x1x32xf32>
    %657 = vector.shape_cast %656 : vector<1x1x32xf32> to vector<1x32xf32>
    %658 = vector.broadcast %657 : vector<1x32xf32> to vector<8x32xf32>
    %659 = arith.addf %655, %658 : vector<8x32xf32>
    %cst_418 = arith.constant 0.000000e+00 : f32
    %660 = vector.broadcast %cst_418 : f32 to vector<8x32xf32>
    %661 = arith.cmpf oge, %659, %660 : vector<8x32xf32>
    %cst_419 = arith.constant 0.00999999977 : f32
    %662 = vector.broadcast %cst_419 : f32 to vector<8x32xf32>
    %663 = arith.mulf %662, %659 : vector<8x32xf32>
    %664 = arith.select %661, %659, %663 : vector<8x32xi1>, vector<8x32xf32>
    %665 = arith.truncf %664 : vector<8x32xf32> to vector<8x32xbf16>
    %c3_420 = arith.constant 3 : index
    %c0_421 = arith.constant 0 : index
    %c0_422 = arith.constant 0 : index
    %666 = vector.load %arg30[%c3_420, %c0_421, %c0_422] : memref<4x32x8xbf16, #tpu.memory_space<vmem>>, vector<1x32x8xbf16>
    %667 = vector.shape_cast %666 : vector<1x32x8xbf16> to vector<32x8xbf16>
    %cst_423 = arith.constant dense<0.000000e+00> : vector<8x8xf32>
    %668 = tpu.matmul %665, %667, %cst_423 {dimension_numbers = #tpu.dot_dimension_numbers<[1], [0], [0], [1], [0, 0, 1, 1], [], []>} : vector<8x32xbf16>, vector<32x8xbf16>, vector<8x8xf32> -> vector<8x8xf32>
    %c3_424 = arith.constant 3 : index
    %c0_425 = arith.constant 0 : index
    %c0_426 = arith.constant 0 : index
    %669 = vector.load %arg31[%c3_424, %c0_425, %c0_426] : memref<4x1x8xf32, #tpu.memory_space<vmem>>, vector<1x1x8xf32>
    %670 = vector.shape_cast %669 : vector<1x1x8xf32> to vector<1x8xf32>
    %671 = vector.broadcast %670 : vector<1x8xf32> to vector<8x8xf32>
    %672 = arith.addf %668, %671 : vector<8x8xf32>
    %673 = vector.extract_strided_slice %672 {offsets = [0, 0], sizes = [8, 4], strides = [1, 1]} : vector<8x8xf32> to vector<8x4xf32>
    %674 = math.tanh %673 : vector<8x4xf32>
    %675 = vector.extract_strided_slice %672 {offsets = [0, 4], sizes = [8, 4], strides = [1, 1]} : vector<8x8xf32> to vector<8x4xf32>
    %676 = math.exp %674 : vector<8x4xf32>
    %677 = arith.mulf %586, %676 : vector<8x4xf32>
    %678 = arith.addf %677, %675 : vector<8x4xf32>
    %cst_427 = arith.constant dense<0.000000e+00> : vector<8xf32>
    %679 = vector.multi_reduction <add>, %674, %cst_427 [1] : vector<8x4xf32> to vector<8xf32>
    %680 = vector.shape_cast %679 : vector<8xf32> to vector<8x1xf32>
    %681 = arith.addf %634, %680 : vector<8x1xf32>
    %682 = tpu.concatenate %631, %678 in 1 : vector<8x4xf32>, vector<8x4xf32> -> vector<8x8xf32>
    %c1_428 = arith.constant 1 : index
    %c0_429 = arith.constant 0 : index
    %c0_430 = arith.constant 0 : index
    %683 = vector.load %arg24[%c1_428, %c0_429, %c0_430] : memref<2x8x8xf32, #tpu.memory_space<vmem>>, vector<1x8x8xf32>
    %684 = vector.shape_cast %683 : vector<1x8x8xf32> to vector<8x8xf32>
    %cst_431 = arith.constant dense<0.000000e+00> : vector<8x8xf32>
    %685 = tpu.matmul %682, %684, %cst_431 {dimension_numbers = #tpu.dot_dimension_numbers<[1], [0], [0], [1], [0, 0, 1, 1], [], []>} : vector<8x8xf32>, vector<8x8xf32>, vector<8x8xf32> -> vector<8x8xf32>
    %686 = tpu.concatenate %230, %458, %685 in 1 : vector<8x8xf32>, vector<8x8xf32>, vector<8x8xf32> -> vector<8x24xf32>
    %c0_432 = arith.constant 0 : index
    %c0_433 = arith.constant 0 : index
    %687 = vector.load %arg32[%c0_432, %c0_433] : memref<8x24xf32, #tpu.memory_space<vmem>>, vector<8x24xf32>
    tpu.vector_store %arg32[%c0_432, %c0_433], %686 {strides = array<i32>} : memref<8x24xf32, #tpu.memory_space<vmem>>, vector<8x24xf32>,
    %c0_434 = arith.constant 0 : index
    %c0_435 = arith.constant 0 : index
    %688 = vector.load %arg33[%c0_434, %c0_435] : memref<8x1xf32, #tpu.memory_space<vmem>>, vector<8x1xf32>
    tpu.vector_store %arg33[%c0_434, %c0_435], %681 {strides = array<i32>} : memref<8x1xf32, #tpu.memory_space<vmem>>, vector<8x1xf32>,
    return
  }
}

</mosaic_0001>

<bundles_post_ra>
// kernel: fwd.1
= control target key start
LH: loop header
LB: loop body
LE: loop exit
PB: predicated region body
PF: predicated region fallthrough
CT: control target
= control target key end

     0   :  { %s6387_s6 = smov 1   ;;  %s6388_s10 = smov 2   ;;  %s7292_s0 = inlined_call_operand.smem [shape: u32[34], index: -1, kind: input, shape index: {}] }
   0x1   :  { %s6462_s5 = sld [smem:[%s7292_s0]]   ;;  %s6389_s14 = smov 3  }
   0x2   :  { %s6467_s9 = sld [smem:[%s7292_s0 + %s6387_s6]]   ;;  %s6390_s18 = smov 4  }
   0x3   :  { %s6472_s13 = sld [smem:[%s7292_s0 + %s6388_s10]]   ;;  %s6391_s22 = smov 5  }
   0x4   :  { %s6477_s17 = sld [smem:[%s7292_s0 + %s6389_s14]]   ;;  %s6392_s26 = smov 6  }
   0x5   :  { %s6482_s21 = sld [smem:[%s7292_s0 + %s6390_s18]]   ;;  %s6393_s30 = smov 7  }
   0x6   :  { %s6487_s25 = sld [smem:[%s7292_s0 + %s6391_s22]]   ;;  %s6394_s4 = smov 8  }
   0x7   :  { %s6492_s29 = sld [smem:[%s7292_s0 + %s6392_s26]]   ;;  %s6395_s10 = smov 9  }
   0x8   :  { %s6497_s3 = sld [smem:[%s7292_s0 + %s6393_s30]]   ;;  %s6396_s15 = smov 10  }
   0x9   :  { %7304 = sst [smem:[#allocation44_spill]] %s6472_s13  ;;  %s6397_s20 = smov 11  }
   0xa   :  { %s6502_s8 = sld [smem:[%s7292_s0 + %s6394_s4]]   ;;  %s6398_s26 = smov 12  }
   0xb   :  { %7305 = sst [smem:[#allocation45_spill]] %s6482_s21  ;;  %s6399_s1 = smov 13  }
   0xc   :  { %7306 = sst [smem:[#allocation46_spill]] %s6487_s25  ;;  %s6400_s7 = smov 14  }
   0xd   :  { %7307 = sst [smem:[#allocation47_spill]] %s6492_s29  ;;  %s6402_s22 = smov 16  }
   0xe   :  { %s6507_s14 = sld [smem:[%s7292_s0 + %s6395_s10]]   ;;  %s6403_s28 = smov 17  }
   0xf   :  { %s6512_s19 = sld [smem:[%s7292_s0 + %s6396_s15]]   ;;  %s6401_s15 = smov 15  }
  0x10   :  { %7308 = sst [smem:[#allocation48_spill]] %s6502_s8 }
  0x11   :  { %s6517_s24 = sld [smem:[%s7292_s0 + %s6397_s20]]  }
  0x12   :  { %s6522_s30 = sld [smem:[%s7292_s0 + %s6398_s26]]  }
  0x13   :  { %s6527_s6 = sld [smem:[%s7292_s0 + %s6399_s1]]  }
  0x14   :  { %s6532_s12 = sld [smem:[%s7292_s0 + %s6400_s7]]   ;;  %s6404_s7 = smov 18  }
  0x15   :  { %7309 = sst [smem:[#allocation49_spill]] %s6512_s19 }
  0x16   :  { %s6537_s20 = sld [smem:[%s7292_s0 + %s6401_s15]]   ;;  %s6405_s15 = smov 19  }
  0x17   :  { %s6542_s27 = sld [smem:[%s7292_s0 + %s6402_s22]]   ;;  %s6406_s22 = smov 20  }
  0x18   :  { %s6547_s4 = sld [smem:[%s7292_s0 + %s6403_s28]]   ;;  %s6407_s28 = smov 21  }
  0x19   :  { %s6552_s21 = sld [smem:[%s7292_s0 + %s6404_s7]]   ;;  %s6408_s7 = smov 22  }
  0x1a   :  { %s6557_s19 = sld [smem:[%s7292_s0 + %s6405_s15]]   ;;  %s6409_s15 = smov 23  }
  0x1b   :  { %s6562_s8 = sld [smem:[%s7292_s0 + %s6406_s22]]   ;;  %s6410_s22 = smov 24  }
  0x1c   :  { %s6567_s13 = sld [smem:[%s7292_s0 + %s6407_s28]]   ;;  %s6411_s28 = smov 25  }
  0x1d   :  { %7310 = sst [smem:[#allocation50_spill]] %s6542_s27 }
  0x1e   :  { %s6577_s25 = sld [smem:[%s7292_s0 + %s6409_s15]]   ;;  %s6413_s15 = smov 27  }
  0x1f   :  { %7311 = sst [smem:[#allocation51_spill]] %s6552_s21 }
  0x20   :  { %7312 = sst [smem:[#allocation52_spill]] %s6557_s19 }
  0x21   :  { %7313 = sst [smem:[#allocation53_spill]] %s6562_s8 }
  0x22   :  { %s6572_s21 = sld [smem:[%s7292_s0 + %s6408_s7]]   ;;  %s6412_s7 = smov 26  }
  0x23   :  { %s6582_s8 = sld [smem:[%s7292_s0 + %s6410_s22]]   ;;  %s6414_s22 = smov 28  }
  0x24   :  { %s6587_s29 = sld [smem:[%s7292_s0 + %s6411_s28]]   ;;  %s6415_s28 = smov 29  }
  0x25   :  { %s6597_s19 = sld [smem:[%s7292_s0 + %s6413_s15]]   ;;  %s6417_s15 = smov 31  }
  0x26   :  { %s6607_s27 = sld [smem:[%s7292_s0 + %s6415_s28]]   ;;  %s6419_s28 = smov 33  }
  0x28   :  { %7314 = sst [smem:[#allocation54_spill]] %s6572_s21 }
  0x29   :  { %7315 = sst [smem:[#allocation55_spill]] %s6582_s8 }
  0x2a   :  { %s6592_s21 = sld [smem:[%s7292_s0 + %s6412_s7]]   ;;  %s6416_s7 = smov 30  }
  0x2b   :  { %7317 = sst [smem:[#allocation57_spill]] %s6597_s19 }
  0x2c   :  { %s6602_s8 = sld [smem:[%s7292_s0 + %s6414_s22]]   ;;  %s6418_s22 = smov 32  }
  0x2d   :  { %7319 = sst [smem:[#allocation59_spill]] %s6607_s27 }
  0x2e   :  { %s6617_s19 = sld [smem:[%s7292_s0 + %s6417_s15]]  }
  0x2f   :  { %s6627_s27 = sld [smem:[%s7292_s0 + %s6419_s28]]  }
  0x30   :  { %7316 = sst [smem:[#allocation56_spill]] %s6592_s21 }
  0x31   :  { %s6612_s21 = sld [smem:[%s7292_s0 + %s6416_s7]]  }
  0x32   :  { %7318 = sst [smem:[#allocation58_spill]] %s6602_s8 }
  0x33   :  { %s6622_s8 = sld [smem:[%s7292_s0 + %s6418_s22]]  }
  0x34   :  { %73 = vsyncpa [#allocation3], 0 }
  0x35   :  { %74 = vsyncpa [#allocation6], 0 }
  0x36   :  { %75 = vsyncpa [#allocation9], 0 }
  0x37   :  { %76 = vsyncpa [#allocation12], 0 }
  0x38   :  { %77 = vsyncpa [#allocation15], 0 }
  0x39   :  { %78 = vsyncpa [#allocation18], 0 }
  0x3a   :  { %79 = vsyncpa [#allocation21], 0 }
  0x3b   :  { %80 = vsyncpa [#allocation24], 0 }
  0x3c   :  { %81 = vsyncpa [#allocation27], 0 }
  0x3d   :  { %82 = vsyncpa [#allocation30], 0 }
  0x3e   :  { %83 = vsyncpa [#allocation4], 0  ;;  %s6420_s7 = smov [#allocation5]  }
  0x3f   :  { %s100_s10 = sshll.u32 %s6420_s7, 4  ;;  %s101_s10 = int_to_ptr.vmem [resolvable:$true] %s100_s10 }
  0x40   :  { %s5973_s11 = scalar_lea.vmem %s101_s10, 128  ;;  %p5978_p1 = scmp.lt.s32.totalorder %s101_s10, %s101_s10 }
  0x41   :  { %p5974_p0 = scmp.ne.s32.totalorder %s101_s10, %s5973_s11  ;;  %p5979_p2 = scmp.lt.s32.totalorder %s5973_s11, %s5973_s11 }
  0x43   :  { %p5980_p3 = por %p5979_p2, %p5978_p1 }
  0x45   :  { %p5981_p4 = pnand %p5980_p3, %p5974_p0 }
  0x47   :  { %5984 = shalt.err (!%p5981_p4)
}
  0x48   :  { %103 = dma.hbm_to_vmem [thread:$0]  %s6467_s9, 128, %s101_s10, [#allocation6]  }
  0x49   :  { %s6421_s0 = smov [#allocation8]   ;;  %s6422_s16 = smov [#allocation11]  }
  0x4a   :  { %s129_s15 = sshll.u32 %s6421_s0, 4  ;;  %s157_s18 = sshll.u32 %s6422_s16, 4  ;;  %s130_s15 = int_to_ptr.vmem [resolvable:$true] %s129_s15  ;;  %s158_s18 = int_to_ptr.vmem [resolvable:$true] %s157_s18 }
  0x4b   :  { %s5993_s22 = scalar_lea.vmem %s130_s15, 64  ;;  %p5998_p6 = scmp.lt.s32.totalorder %s130_s15, %s130_s15 }
  0x4c   :  { %p5994_p5 = scmp.ne.s32.totalorder %s130_s15, %s5993_s22  ;;  %p5999_p7 = scmp.lt.s32.totalorder %s5993_s22, %s5993_s22 }
  0x4e   :  { %p6000_p8 = por %p5999_p7, %p5998_p6 }
  0x50   :  { %p6001_p9 = pnand %p6000_p8, %p5994_p5 }
  0x52   :  { %6004 = shalt.err (!%p6001_p9)
}
  0x53   :  { %s6423_s23 = smov 16   ;;  %s6424_s26 = smov 1  }
  0x54   :  { %135 = dma.hbm_to_vmem [thread:$0]  %s6497_s3, 64, %s130_s15, [#allocation9], %s6423_s23, %s6423_s23, %s6424_s26  }
  0x55   :  { %s6013_s9 = scalar_lea.vmem %s158_s18, 64  ;;  %p6018_p11 = scmp.lt.s32.totalorder %s158_s18, %s158_s18 }
  0x56   :  { %p6014_p10 = scmp.ne.s32.totalorder %s158_s18, %s6013_s9  ;;  %p6019_p12 = scmp.lt.s32.totalorder %s6013_s9, %s6013_s9 }
  0x58   :  { %p6020_p13 = por %p6019_p12, %p6018_p11 }
  0x5a   :  { %p6021_p0 = pnand %p6020_p13, %p6014_p10 }
  0x5c   :  { %6024 = shalt.err (!%p6021_p0)
}
  0x5d   :  { %163 = dma.hbm_to_vmem [thread:$0]  %s6517_s24, 64, %s158_s18, [#allocation12], %s6423_s23, %s6423_s23, %s6424_s26  }
  0x5e   :  { %s6425_s28 = smov [#allocation14]   ;;  %s6426_s2 = smov [#allocation17]  }
  0x5f   :  { %s181_s1 = sshll.u32 %s6425_s28, 4  ;;  %s205_s7 = sshll.u32 %s6426_s2, 4  ;;  %s182_s1 = int_to_ptr.vmem [resolvable:$true] %s181_s1  ;;  %s206_s7 = int_to_ptr.vmem [resolvable:$true] %s205_s7 }
  0x60   :  { %s6033_s10 = scalar_lea.vmem %s182_s1, 32  ;;  %p6038_p2 = scmp.lt.s32.totalorder %s182_s1, %s182_s1 }
  0x61   :  { %p6034_p1 = scmp.ne.s32.totalorder %s182_s1, %s6033_s10  ;;  %p6039_p3 = scmp.lt.s32.totalorder %s6033_s10, %s6033_s10 }
  0x63   :  { %p6040_p4 = por %p6039_p3, %p6038_p2 }
  0x65   :  { %p6041_p5 = pnand %p6040_p4, %p6034_p1 }
  0x67   :  { %6044 = shalt.err (!%p6041_p5)
}
  0x68   :  { %187 = dma.hbm_to_vmem [thread:$0]  %s6527_s6, 32, %s182_s1, [#allocation15], %s6423_s23, %s6423_s23, %s6424_s26  }
  0x69   :  { %s6053_s3 = scalar_lea.vmem %s206_s7, 256  ;;  %p6058_p7 = scmp.lt.s32.totalorder %s206_s7, %s206_s7 }
  0x6a   :  { %p6054_p6 = scmp.ne.s32.totalorder %s206_s7, %s6053_s3  ;;  %p6059_p8 = scmp.lt.s32.totalorder %s6053_s3, %s6053_s3 }
  0x6c   :  { %p6060_p9 = por %p6059_p8, %p6058_p7 }
  0x6e   :  { %p6061_p10 = pnand %p6060_p9, %p6054_p6 }
  0x70   :  { %6064 = shalt.err (!%p6061_p10)
}
  0x71   :  { %s6427_s24 = smov 64   ;;  %s6428_s11 = smov 4  }
  0x72   :  { %211 = dma.hbm_to_vmem [thread:$0]  %s6537_s20, 256, %s206_s7, [#allocation18], %s6427_s24, %s6427_s24, %s6428_s11  }
  0x73   :  { %s6429_s0 = smov [#allocation20]   ;;  %s6430_s16 = smov [#allocation23]  }
  0x74   :  { %s229_s15 = sshll.u32 %s6429_s0, 4  ;;  %s257_s6 = sshll.u32 %s6430_s16, 4  ;;  %s230_s15 = int_to_ptr.vmem [resolvable:$true] %s229_s15  ;;  %s258_s6 = int_to_ptr.vmem [resolvable:$true] %s257_s6 }
  0x75   :  { %s6073_s18 = scalar_lea.vmem %s230_s15, 64  ;;  %p6078_p12 = scmp.lt.s32.totalorder %s230_s15, %s230_s15 }
  0x76   :  { %p6074_p11 = scmp.ne.s32.totalorder %s230_s15, %s6073_s18  ;;  %p6079_p13 = scmp.lt.s32.totalorder %s6073_s18, %s6073_s18 }
  0x78   :  { %p6080_p0 = por %p6079_p13, %p6078_p12 }
  0x7a   :  { %p6081_p1 = pnand %p6080_p0, %p6074_p11 }
  0x7c   :  { %6084 = shalt.err (!%p6081_p1)
}
  0x7d   :  { %235 = dma.hbm_to_vmem [thread:$0]  %s6547_s4, 64, %s230_s15, [#allocation21], %s6423_s23, %s6423_s23, %s6424_s26  }
  0x7e   :  { %s6093_s22 = scalar_lea.vmem %s258_s6, 64  ;;  %p6098_p3 = scmp.lt.s32.totalorder %s258_s6, %s258_s6 }
  0x7f   :  { %p6094_p2 = scmp.ne.s32.totalorder %s258_s6, %s6093_s22  ;;  %p6099_p4 = scmp.lt.s32.totalorder %s6093_s22, %s6093_s22 }
  0x81   :  { %p6100_p5 = por %p6099_p4, %p6098_p3 }
  0x83   :  { %p6101_p6 = pnand %p6100_p5, %p6094_p2 }
  0x85   :  { %6104 = shalt.err (!%p6101_p6)
}
  0x86   :  { %263 = dma.hbm_to_vmem [thread:$0]  %s6567_s13, 64, %s258_s6, [#allocation24], %s6423_s23, %s6423_s23, %s6424_s26  }
  0x87   :  { %s6431_s20 = smov [#allocation26]   ;;  %s6432_s28 = smov [#allocation29]  }
  0x88   :  { %s281_s9 = sshll.u32 %s6431_s20, 4  ;;  %s305_s1 = sshll.u32 %s6432_s28, 4  ;;  %s282_s9 = int_to_ptr.vmem [resolvable:$true] %s281_s9  ;;  %s306_s1 = int_to_ptr.vmem [resolvable:$true] %s305_s1 }
  0x89   :  { %s6113_s2 = scalar_lea.vmem %s282_s9, 32  ;;  %p6118_p8 = scmp.lt.s32.totalorder %s282_s9, %s282_s9 }
  0x8a   :  { %p6114_p7 = scmp.ne.s32.totalorder %s282_s9, %s6113_s2  ;;  %p6119_p9 = scmp.lt.s32.totalorder %s6113_s2, %s6113_s2 }
  0x8c   :  { %p6120_p10 = por %p6119_p9, %p6118_p8 }
  0x8e   :  { %p6121_p11 = pnand %p6120_p10, %p6114_p7 }
  0x90   :  { %6124 = shalt.err (!%p6121_p11)
}
  0x91   :  { %287 = dma.hbm_to_vmem [thread:$0]  %s6577_s25, 32, %s282_s9, [#allocation27], %s6423_s23, %s6423_s23, %s6424_s26  }
  0x92   :  { %s6133_s4 = scalar_lea.vmem %s306_s1, 128  ;;  %p6138_p13 = scmp.lt.s32.totalorder %s306_s1, %s306_s1 }
  0x93   :  { %p6134_p12 = scmp.ne.s32.totalorder %s306_s1, %s6133_s4  ;;  %p6139_p0 = scmp.lt.s32.totalorder %s6133_s4, %s6133_s4 }
  0x95   :  { %p6140_p1 = por %p6139_p0, %p6138_p13 }
  0x97   :  { %p6141_p2 = pnand %p6140_p1, %p6134_p12 }
  0x99   :  { %6144 = shalt.err (!%p6141_p2)
}
  0x9a   :  { %s6433_s13 = smov 32   ;;  %s6434_s7 = smov 2  }
  0x9b   :  { %311 = dma.hbm_to_vmem [thread:$0]  %s6587_s29, 128, %s306_s1, [#allocation30], %s6433_s13, %s6433_s13, %s6434_s7  }
  0x9c   :  { %s6435_s10 = smov [#allocation2]   ;;  %s6436_s0 = smov [#allocation7]  }
  0x9d   :  { %s90_s3 = sshll.u32 %s6435_s10, 4  ;;  %s111_s15 = sshll.u32 %s6436_s0, 4  ;;  %s91_s3 = int_to_ptr.vmem [resolvable:$true] %s90_s3  ;;  %s112_s15 = int_to_ptr.vmem [resolvable:$true] %s111_s15 }
  0x9e   :  { %s6153_s16 = scalar_lea.vmem %s91_s3, 128  ;;  %p6158_p4 = scmp.lt.s32.totalorder %s91_s3, %s91_s3 }
  0x9f   :  { %p6154_p3 = scmp.ne.s32.totalorder %s91_s3, %s6153_s16  ;;  %p6159_p5 = scmp.lt.s32.totalorder %s6153_s16, %s6153_s16 }
  0xa1   :  { %p6160_p6 = por %p6159_p5, %p6158_p4 }
  0xa3   :  { %p6161_p7 = pnand %p6160_p6, %p6154_p3 }
  0xa5   :  { %6164 = shalt.err (!%p6161_p7)
}
  0xa6   :  { %93 = dma.hbm_to_vmem [thread:$0]  %s6462_s5, 128, %s91_s3, [#allocation3]  }
  0xa7   :  { %s6173_s25 = scalar_lea.vmem %s112_s15, 32  ;;  %p6178_p9 = scmp.lt.s32.totalorder %s112_s15, %s112_s15 }
  0xa8   :  { %p6174_p8 = scmp.ne.s32.totalorder %s112_s15, %s6173_s25  ;;  %p6179_p10 = scmp.lt.s32.totalorder %s6173_s25, %s6173_s25 }
  0xaa   :  { %p6180_p11 = por %p6179_p10, %p6178_p9 }
  0xac   :  { %p6181_p12 = pnand %p6180_p11, %p6174_p8 }
  0xae   :  { %6184 = shalt.err (!%p6181_p12)
}
  0xaf   :  { %117 = dma.hbm_to_vmem [thread:$0]  %s6477_s17, 32, %s112_s15, [#allocation6], %s6423_s23, %s6423_s23, %s6424_s26  }
  0xb0   :  { %s6437_s29 = smov [#allocation10]   ;;  %s6438_s18 = smov [#allocation13]  }
  0xb1   :  { %s143_s6 = sshll.u32 %s6437_s29, 4  ;;  %s169_s22 = sshll.u32 %s6438_s18, 4  ;;  %s144_s6 = int_to_ptr.vmem [resolvable:$true] %s143_s6  ;;  %s170_s22 = int_to_ptr.vmem [resolvable:$true] %s169_s22 }
  0xb2   :  { %s6193_s20 = scalar_lea.vmem %s144_s6, 64  ;;  %p6198_p0 = scmp.lt.s32.totalorder %s144_s6, %s144_s6 }
  0xb3   :  { %p6194_p13 = scmp.ne.s32.totalorder %s144_s6, %s6193_s20  ;;  %p6199_p1 = scmp.lt.s32.totalorder %s6193_s20, %s6193_s20 }
  0xb5   :  { %p6200_p2 = por %p6199_p1, %p6198_p0 }
  0xb7   :  { %p6201_p3 = pnand %p6200_p2, %p6194_p13 }
  0xb9   :  { %6204 = shalt.err (!%p6201_p3)
}
  0xba   :  { %149 = dma.hbm_to_vmem [thread:$0]  %s6507_s14, 64, %s144_s6, [#allocation9], %s6423_s23, %s6423_s23, %s6424_s26  }
  0xbb   :  { %s6213_s5 = scalar_lea.vmem %s170_s22, 32  ;;  %p6218_p5 = scmp.lt.s32.totalorder %s170_s22, %s170_s22 }
  0xbc   :  { %p6214_p4 = scmp.ne.s32.totalorder %s170_s22, %s6213_s5  ;;  %p6219_p6 = scmp.lt.s32.totalorder %s6213_s5, %s6213_s5 }
  0xbe   :  { %p6220_p7 = por %p6219_p6, %p6218_p5 }
  0xc0   :  { %p6221_p8 = pnand %p6220_p7, %p6214_p4 }
  0xc2   :  { %6224 = shalt.err (!%p6221_p8)
}
  0xc3   :  { %175 = dma.hbm_to_vmem [thread:$0]  %s6522_s30, 32, %s170_s22, [#allocation12], %s6423_s23, %s6423_s23, %s6424_s26  }
  0xc4   :  { %s6439_s17 = smov [#allocation16]  }
  0xc5   :  { %s193_s9 = sshll.u32 %s6439_s17, 4  ;;  %s194_s9 = int_to_ptr.vmem [resolvable:$true] %s193_s9 }
  0xc6   :  { %s6233_s28 = scalar_lea.vmem %s194_s9, 512  ;;  %p6238_p10 = scmp.lt.s32.totalorder %s194_s9, %s194_s9 }
  0xc7   :  { %p6234_p9 = scmp.ne.s32.totalorder %s194_s9, %s6233_s28  ;;  %p6239_p11 = scmp.lt.s32.totalorder %s6233_s28, %s6233_s28 }
  0xc9   :  { %p6240_p12 = por %p6239_p11, %p6238_p10 }
  0xcb   :  { %p6241_p13 = pnand %p6240_p12, %p6234_p9 }
  0xcd   :  { %6244 = shalt.err (!%p6241_p13)
}
  0xce   :  { %s6440_s14 = smov 128   ;;  %s6441_s1 = smov 8  }
  0xcf   :  { %199 = dma.hbm_to_vmem [thread:$0]  %s6532_s12, 512, %s194_s9, [#allocation15], %s6440_s14, %s6440_s14, %s6441_s1  }
  0xd0   :  { %s6442_s2 = smov [#allocation19]   ;;  %s6443_s30 = smov [#allocation22]  }
  0xd1   :  { %s217_s4 = sshll.u32 %s6442_s2, 4  ;;  %s243_s13 = sshll.u32 %s6443_s30, 4  ;;  %s218_s4 = int_to_ptr.vmem [resolvable:$true] %s217_s4  ;;  %s244_s13 = int_to_ptr.vmem [resolvable:$true] %s243_s13 }
  0xd2   :  { %s6253_s7 = scalar_lea.vmem %s218_s4, 512  ;;  %p6258_p1 = scmp.lt.s32.totalorder %s218_s4, %s218_s4 }
  0xd3   :  { %p6254_p0 = scmp.ne.s32.totalorder %s218_s4, %s6253_s7  ;;  %p6259_p2 = scmp.lt.s32.totalorder %s6253_s7, %s6253_s7 }
  0xd5   :  { %p6260_p3 = por %p6259_p2, %p6258_p1 }
  0xd7   :  { %p6261_p4 = pnand %p6260_p3, %p6254_p0 }
  0xd9   :  { %6264 = shalt.err (!%p6261_p4)
}
  0xda   :  { %s7320_s10 = sld [smem:[#allocation50_spill]]  ;;  %s6273_s3 = scalar_lea.vmem %s244_s13, 64 }
  0xdb   :  { %p6274_p5 = scmp.ne.s32.totalorder %s244_s13, %s6273_s3  ;;  %p6278_p6 = scmp.lt.s32.totalorder %s244_s13, %s244_s13 }
  0xdc   :  { %p6279_p7 = scmp.lt.s32.totalorder %s6273_s3, %s6273_s3 }
  0xde   :  { %p6280_p8 = por %p6279_p7, %p6278_p6 }
  0xe0   :  { %223 = dma.hbm_to_vmem [thread:$0]  %s7320_s10, 512, %s218_s4, [#allocation18], %s6427_s24, %s6427_s24, %s6428_s11  }
  0xe1   :  { %p6281_p9 = pnand %p6280_p8, %p6274_p5 }
  0xe3   :  { %6284 = shalt.err (!%p6281_p9)
}
  0xe4   :  { %s7321_s12 = sld [smem:[#allocation52_spill]]  ;;  %s6444_s0 = smov [#allocation25]  }
  0xe5   :  { %s269_s15 = sshll.u32 %s6444_s0, 4  ;;  %s6445_s16 = smov [#allocation28]   ;;  %s270_s15 = int_to_ptr.vmem [resolvable:$true] %s269_s15 }
  0xe6   :  { %s293_s25 = sshll.u32 %s6445_s16, 4  ;;  %s6293_s29 = scalar_lea.vmem %s270_s15, 32  ;;  %s294_s25 = int_to_ptr.vmem [resolvable:$true] %s293_s25 }
  0xe7   :  { %p6294_p10 = scmp.ne.s32.totalorder %s270_s15, %s6293_s29  ;;  %p6298_p11 = scmp.lt.s32.totalorder %s270_s15, %s270_s15 }
  0xe8   :  { %p6299_p12 = scmp.lt.s32.totalorder %s6293_s29, %s6293_s29 }
  0xea   :  { %249 = dma.hbm_to_vmem [thread:$0]  %s7321_s12, 64, %s244_s13, [#allocation21], %s6423_s23, %s6423_s23, %s6424_s26  }
  0xeb   :  { %p6300_p13 = por %p6299_p12, %p6298_p11 }
  0xed   :  { %p6301_p0 = pnand %p6300_p13, %p6294_p10 }
  0xef   :  { %6304 = shalt.err (!%p6301_p0)
}
  0xf0   :  { %s7322_s24 = sld [smem:[#allocation54_spill]]  ;;  %s6313_s6 = scalar_lea.vmem %s294_s25, 256 }
  0xf1   :  { %p6314_p1 = scmp.ne.s32.totalorder %s294_s25, %s6313_s6  ;;  %p6318_p2 = scmp.lt.s32.totalorder %s294_s25, %s294_s25 }
  0xf2   :  { %p6319_p3 = scmp.lt.s32.totalorder %s6313_s6, %s6313_s6 }
  0xf4   :  { %p6320_p4 = por %p6319_p3, %p6318_p2 }
  0xf6   :  { %275 = dma.hbm_to_vmem [thread:$0]  %s7322_s24, 32, %s270_s15, [#allocation24], %s6423_s23, %s6423_s23, %s6424_s26  }
  0xf7   :  { %p6321_p5 = pnand %p6320_p4, %p6314_p1 }
  0xf9   :  { %6324 = shalt.err (!%p6321_p5)
}
  0xfa   :  { %s7323_s18 = sld [smem:[#allocation55_spill]]  ;;  %s6446_s22 = smov [#allocation31]  }
  0xfb   :  { %s319_s20 = sshll.u32 %s6446_s22, 4  ;;  %s320_s20 = int_to_ptr.vmem [resolvable:$true] %s319_s20 }
  0xfc   :  { %s6333_s5 = scalar_lea.vmem %s320_s20, 64  ;;  %p6338_p7 = scmp.lt.s32.totalorder %s320_s20, %s320_s20 }
  0xfd   :  { %p6334_p6 = scmp.ne.s32.totalorder %s320_s20, %s6333_s5  ;;  %p6339_p8 = scmp.lt.s32.totalorder %s6333_s5, %s6333_s5 }
  0xff   :  { %p6340_p9 = por %p6339_p8, %p6338_p7 }
 0x100   :  { %299 = dma.hbm_to_vmem [thread:$0]  %s7323_s18, 256, %s294_s25, [#allocation27], %s6440_s14, %s6440_s14, %s6441_s1  }
 0x101   :  { %p6341_p10 = pnand %p6340_p9, %p6334_p6 }
 0x103   :  { %6344 = shalt.err (!%p6341_p10)
}
 0x104   :  { %s7324_s17 = sld [smem:[#allocation57_spill]] }
 0x10a   :  { %325 = dma.hbm_to_vmem [thread:$0]  %s7324_s17, 64, %s320_s20, [#allocation30], %s6423_s23, %s6423_s23, %s6424_s26  }
 0x10b   :  { %6365 = dma.done.wait [#allocation3], 128  }
 0x10c   :  { %6366 = vsyncadd [#allocation3], 4294967168 }
 0x10d   :  { %6367 = dma.done.wait [#allocation6], 160  }
 0x10e   :  { %6368 = vsyncadd [#allocation6], 4294967136 }
 0x10f   :  { %6369 = dma.done.wait [#allocation9], 128  }
 0x110   :  { %6370 = vsyncadd [#allocation9], 4294967168 }
 0x111   :  { %6371 = dma.done.wait [#allocation12], 96  }
 0x112   :  { %6372 = vsyncadd [#allocation12], 4294967200 }
 0x113   :  { %6373 = dma.done.wait [#allocation15], 544  }
 0x114   :  { %6374 = vsyncadd [#allocation15], 4294966752 }
 0x115   :  { %6375 = dma.done.wait [#allocation18], 768  }
 0x116   :  { %6376 = vsyncadd [#allocation18], 4294966528 }
 0x117   :  { %6377 = dma.done.wait [#allocation21], 128  }
 0x118   :  { %6378 = vsyncadd [#allocation21], 4294967168 }
 0x119   :  { %6379 = dma.done.wait [#allocation24], 96  }
 0x11a   :  { %6380 = vsyncadd [#allocation24], 4294967200 }
 0x11b   :  { %6381 = dma.done.wait [#allocation27], 288  }
 0x11c   :  { %6382 = vsyncadd [#allocation27], 4294967008 }
 0x11d   :  { %6383 = dma.done.wait [#allocation30], 192  }
 0x11e   :  { %6384 = vsyncadd [#allocation30], 4294967104  ;;  %s7325_s26 = sld [smem:[#allocation47_spill]]  ;;  %v6447_v0 = vmov 0.0   ;;  %vm6448_vm0 = vmmov 0   ;;  %v392_v2 = vld [vmem:[#allocation5] sm:$0xff] }
 0x11f   :  { %s7326_s9 = sld [smem:[#allocation46_spill]]  ;;  %5264 = vmatprep.subr.bf16.mxu0 %v6447_v0  ;;  %5266 = vmatprep.mubr.msk.bf16.mxu0 %vm6448_vm0, %v6447_v0  ;;  %vm478_vm1 = vcmask 1045504   ;;  %v6703_v3 = vpack.c.bf16 %v392_v2, %v392_v2  ;;  %vm425_vm2 = vcmask 130048   ;;  %v394_v5 = vld [vmem:[#allocation2] sm:$0xff]  ;;  %v4693_v6 = vld [vmem:[#allocation7] ss:$0 sm:$0xff] }
 0x120   :  { %s7327_s28 = sld [smem:[#allocation44_spill]]  ;;  %5270 = vmatprep.subr.bf16.mxu1 %v6447_v0  ;;  %5272 = vmatprep.mubr.msk.bf16.mxu1 %vm6448_vm0, %v6447_v0  ;;  %vm474_vm3 = vcmask 97280   ;;  %v4698_v29 = vld [vmem:[#allocation8] ss:$0 sm:$0xff]  ;;  %vm589_vm6 = vcmask 785408   ;;  %s6449_s4 = smov 12  }
 0x121   :  { %s7328_s14 = sld [smem:[#allocation48_spill]]  ;;  %v4699_v40 = vld [vmem:[#allocation10] ss:$0 sm:$0xff]  ;;  %v4707_v49 = vld [vmem:[#allocation11] ss:$0 sm:$0xff]  ;;  %s6450_s30 = smov 116  }
 0x122   :  { %s7329_s2 = sld [smem:[#allocation49_spill]]  ;;  %vm1107_vm10 = vcmask 195584   ;;  %s6451_s10 = smov 120  }
 0x123   :  { %s7330_s13 = sld [smem:[#allocation45_spill]]  ;;  %s6452_s16 = smov 124  }
 0x124   :  { %v5805_v1 = vld [vmem:[%s7325_s26] sm:$0xff]   ;;  %v5819_v57 = vld [vmem:[%s7325_s26 + $0x8] sm:$0xff]   ;;  %s7331_s7 = sld [smem:[#allocation51_spill]] }
 0x125   :  { %5265 = vmatpush3.bf16.msra.mxu0 %v5805_v1  ;;  %v5806_v4 = vld [vmem:[%s7326_s9] sm:$0x3f]   ;;  %v5820_v58 = vld [vmem:[%s7326_s9 + $0x8] sm:$0x3f]   ;;  %s7332_s3 = sld [smem:[#allocation53_spill]] }
 0x126   :  { %v4692_v7 = vld [vmem:[%s7327_s28] ss:$0 sm:$0xff]  ;;  %5276 = vmatprep.subr.bf16.mxu0 %v6447_v0  ;;  %v480_v8 = vsel %vm478_vm1, %v5806_v4, 0  ;;  %v813_v59 = vsel %vm478_vm1, %v5820_v58, 0  ;;  %s7333_s12 = sld [smem:[#allocation56_spill]] }
 0x127   :  { %v403_v9 = vadd.f32 %v4692_v7, %v394_v5  ;;  %v5807_v10 = vld [vmem:[%s7328_s14 + $0x28] sm:$0xff]   ;;  %5271 = vmatpush3.bf16.msra.mxu1 %v480_v8  ;;  %v5808_v12 = vld [vmem:[%s7328_s14 + $0x20] sm:$0xff]   ;;  %v5809_v14 = vld [vmem:[%s7328_s14 + $0x18] sm:$0xff]   ;;  %s7334_s0 = sld [smem:[#allocation58_spill]] }
 0x128   :  { %5267 = vmatmul.mubr.msk.bf16.vlgmr.msra.gmra.mxu0 %vm425_vm2, %v6703_v3  ;;  %5292 = vmatprep.subr.bf16.mxu1 %v6447_v0  ;;  %v5810_v17 = vld [vmem:[%s7328_s14 + $0x10] sm:$0xff]   ;;  %v5811_v18 = vld [vmem:[%s7328_s14 + $0x8] sm:$0xff]   ;;  %v5812_v19 = vld [vmem:[%s7328_s14] sm:$0xff]   ;;  %s7335_s15 = sld [smem:[#allocation59_spill]] }
 0x129   :  { %v410_v11 = vmul.f32 %v4693_v6, %v403_v9  ;;  %5277 = vmatpush3.bf16.msra.mxu0 %v5807_v10  ;;  %5288 = vmatprep.mubr.msk.bf16.mxu0 %vm6448_vm0, %v6447_v0  ;;  %v5813_v20 = vld [vmem:[%s7329_s2 + $0x28] sm:$0xff]   ;;  %v5814_v21 = vld [vmem:[%s7329_s2 + $0x20] sm:$0xff]   ;;  %v5815_v22 = vld [vmem:[%s7329_s2 + $0x18] sm:$0xff]  }
 0x12a   :  { %5278 = vmatprep.subr.bf16.mxu0 %v6447_v0  ;;  %v5816_v23 = vld [vmem:[%s7329_s2 + $0x10] sm:$0xff]   ;;  %v5817_v38 = vld [vmem:[%s7329_s2 + $0x8] sm:$0xff]   ;;  %v5818_v39 = vld [vmem:[%s7329_s2] sm:$0xff]  }
 0x12b   :  { %vm411_vm4 = vcmp.ge.f32.partialorder %v410_v11, 0.0  ;;  %v412_v13 = vmul.f32 0.9, %v410_v11  ;;  %v5821_v61 = vld [vmem:[%s7328_s14 + $0x58] sm:$0xff]   ;;  %v5822_v62 = vld [vmem:[%s7328_s14 + $0x50] sm:$0xff]   ;;  %v5823_v1 = vld [vmem:[%s7328_s14 + $0x48] sm:$0xff]  }
 0x12c   :  { %v5824_v5 = vld [vmem:[%s7328_s14 + $0x40] sm:$0xff]  }
 0x12d   :  { %v6718_v15 = vsel %vm411_vm4, %v410_v11, %v412_v13  ;;  %5279 = vmatpush3.bf16.msra.mxu0 %v5808_v12  ;;  %v5825_v12 = vld [vmem:[%s7328_s14 + $0x38] sm:$0xff]   ;;  %v5826_v13 = vld [vmem:[%s7328_s14 + $0x30] sm:$0xff]  }
 0x12e   :  { %v414_v16 = vpack.c.bf16 %v6718_v15, %v6718_v15  ;;  %5280 = vmatprep.subr.bf16.mxu0 %v6447_v0 }
 0x130   :  { %5273 = vmatmul.mubr.msk.bf16.vlgmr.msra.gmra.mxu1 %vm474_vm3, %v414_v16  ;;  %v5828_v16 = vld [vmem:[%s7329_s2 + $0x50] sm:$0xff]  }
 0x131   :  { %5281 = vmatpush3.bf16.msra.mxu0 %v5809_v14  ;;  %5304 = vmatprep.mubr.msk.bf16.mxu1 %vm6448_vm0, %v6447_v0  ;;  %v5827_v14 = vld [vmem:[%s7329_s2 + $0x58] sm:$0xff]  }
 0x132   :  { %5282 = vmatprep.subr.bf16.mxu0 %v6447_v0  ;;  %5293 = vmatpush3.bf16.msra.mxu1 %v5813_v20  ;;  %v4723_v20 = vld [vmem:[#allocation8 + $0x1] ss:$0 sm:$0xff] }
 0x133   :  { %5294 = vmatprep.subr.bf16.mxu1 %v6447_v0 }
 0x135   :  { %5283 = vmatpush3.bf16.msra.mxu0 %v5810_v17  ;;  %v5829_v17 = vld [vmem:[%s7329_s2 + $0x48] sm:$0xff]  }
 0x136   :  { %5284 = vmatprep.subr.bf16.mxu0 %v6447_v0  ;;  %5295 = vmatpush3.bf16.msra.mxu1 %v5814_v21 }
 0x137   :  { %5296 = vmatprep.subr.bf16.mxu1 %v6447_v0 }
 0x139   :  { %5285 = vmatpush3.bf16.msra.mxu0 %v5811_v18  ;;  %v5830_v18 = vld [vmem:[%s7329_s2 + $0x40] sm:$0xff]  }
 0x13a   :  { %5286 = vmatprep.subr.bf16.mxu0 %v6447_v0  ;;  %5297 = vmatpush3.bf16.msra.mxu1 %v5815_v22 }
 0x13b   :  { %5298 = vmatprep.subr.bf16.mxu1 %v6447_v0 }
 0x13d   :  { %5287 = vmatpush3.bf16.msra.mxu0 %v5812_v19 }
 0x13e   :  { %5308 = vmatprep.subr.bf16.mxu0 %v6447_v0  ;;  %5299 = vmatpush3.bf16.msra.mxu1 %v5816_v23 }
 0x13f   :  { %5300 = vmatprep.subr.bf16.mxu1 %v6447_v0 }
 0x142   :  { %5301 = vmatpush3.bf16.msra.mxu1 %v5817_v38 }
 0x143   :  { %5302 = vmatprep.subr.bf16.mxu1 %v6447_v0 }
 0x146   :  { %5303 = vmatpush3.bf16.msra.mxu1 %v5818_v39 }
 0x147   :  { %5314 = vmatprep.subr.bf16.mxu1 %v6447_v0 }
 0x1e8   :  { %v463_v24 = vpop.f32.mrf.mxu0 }
 0x1ea   :  { %v5268_v25 = vpop.f32.mrf.mxu0 }
 0x1ec   :  { %v466_v26 = vpop.f32.mrf.mxu0 }
 0x1ee   :  { %v5269_v27 = vpop.f32.mrf.mxu0 }
 0x1f0   :  { %v516_v28 = vpop.f32.mrf.mxu1 }
 0x1f1   :  { %v517_v30 = vadd.f32 %v516_v28, %v463_v24 }
 0x1f2   :  { %v5274_v31 = vpop.f32.mrf.mxu1 }
 0x1f3   :  { %v529_v32 = vadd.f32 %v4698_v29, %v517_v30  ;;  %v5831_v29 = vld [vmem:[%s7329_s2 + $0x38] sm:$0xff]   ;;  %v5832_v30 = vld [vmem:[%s7329_s2 + $0x30] sm:$0xff]  }
 0x1f4   :  { %v519_v33 = vpop.f32.mrf.mxu1  ;;  %v4736_v31 = vld [vmem:[#allocation10 + $0x1] ss:$0 sm:$0xff] }
 0x1f5   :  { %vm530_vm5 = vcmp.ge.f32.partialorder %v529_v32, 0.0  ;;  %v531_v34 = vmul.f32 0.01, %v529_v32 }
 0x1f6   :  { %v5275_v35 = vpop.f32.mrf.mxu1 }
 0x1f7   :  { %v532_v36 = vsel %vm530_vm5, %v529_v32, %v531_v34  ;;  %vm2023_vm5 = vcmask 64512  }
 0x1f8   :  { %v533_v37 = vpack.c.bf16 %v532_v36, %v532_v36 }
 0x1fa   :  { %5289 = vmatmul.mubr.msk.bf16.vlgmr.msra.gmra.mxu0 %vm589_vm6, %v533_v37 }
 0x1fb   :  { %5310 = vmatprep.mubr.msk.bf16.mxu0 %vm6448_vm0, %v6447_v0  ;;  %5309 = vmatpush3.bf16.msra.mxu0 %v5819_v57 }
 0x1fc   :  { %5320 = vmatprep.subr.bf16.mxu0 %v6447_v0 }
 0x202   :  { %5311 = vmatmul.mubr.msk.bf16.vlgmr.msra.gmra.mxu0 %vm425_vm2, %v6703_v3 }
 0x203   :  { %5332 = vmatprep.mubr.msk.bf16.mxu0 %vm6448_vm0, %v6447_v0  ;;  %5321 = vmatpush3.bf16.msra.mxu0 %v5821_v61  ;;  %v5835_v61 = vld [vmem:[%s7328_s14 + $0x88] sm:$0xff]  }
 0x204   :  { %5322 = vmatprep.subr.bf16.mxu0 %v6447_v0 }
 0x207   :  { %5323 = vmatpush3.bf16.msra.mxu0 %v5822_v62  ;;  %v5836_v62 = vld [vmem:[%s7328_s14 + $0x80] sm:$0xff]  }
 0x208   :  { %5324 = vmatprep.subr.bf16.mxu0 %v6447_v0 }
 0x20b   :  { %5325 = vmatpush3.bf16.msra.mxu0 %v5823_v1  ;;  %v5838_v1 = vld [vmem:[%s7328_s14 + $0x70] sm:$0xff]  }
 0x20c   :  { %5326 = vmatprep.subr.bf16.mxu0 %v6447_v0 }
 0x20f   :  { %5327 = vmatpush3.bf16.msra.mxu0 %v5824_v5 }
 0x210   :  { %5328 = vmatprep.subr.bf16.mxu0 %v6447_v0 }
 0x213   :  { %5329 = vmatpush3.bf16.msra.mxu0 %v5825_v12 }
 0x214   :  { %5330 = vmatprep.subr.bf16.mxu0 %v6447_v0 }
 0x217   :  { %5331 = vmatpush3.bf16.msra.mxu0 %v5826_v13 }
 0x218   :  { %5352 = vmatprep.subr.mxu0 %v6447_v0 }
 0x2ba   :  { %v627_v41 = vpop.f32.mrf.mxu0 }
 0x2bb   :  { %v628_v42 = vadd.f32 %v4699_v40, %v627_v41  ;;  %v1096_v40 = vld [vmem:[%s7330_s13 + $0x10] sm:$0xff]  ;;  %v1095_v41 = vld [vmem:[%s7330_s13 + $0x8] sm:$0xff] }
 0x2bc   :  { %v5290_v43 = vpop.f32.mrf.mxu0 }
 0x2bd   :  { %vm633_vm7 = vcmp.ge.f32.partialorder %v628_v42, 0.0  ;;  %v634_v44 = vmul.f32 0.01, %v628_v42  ;;  %v4756_v43 = vld [vmem:[#allocation11 + $0x1] ss:$0 sm:$0xff] }
 0x2be   :  { %v630_v45 = vpop.f32.mrf.mxu0 }
 0x2bf   :  { %v635_v46 = vsel %vm633_vm7, %v628_v42, %v634_v44  ;;  %v1094_v42 = vld [vmem:[%s7330_s13] sm:$0xff]  ;;  %vm2122_vm7 = vcmask 523264  }
 0x2c0   :  { %v636_v47 = vpack.c.bf16 %v635_v46, %v635_v46  ;;  %v5291_v48 = vpop.f32.mrf.mxu0 }
 0x2c2   :  { %5305 = vmatmul.mubr.msk.bf16.vlgmr.msra.gmra.mxu1 %vm589_vm6, %v636_v47  ;;  %v795_v7 = vpop.f32.mrf.mxu0 }
 0x2c3   :  { %5316 = vmatprep.mubr.msk.bf16.mxu1 %vm6448_vm0, %v6447_v0  ;;  %5315 = vmatpush3.bf16.msra.mxu1 %v813_v59  ;;  %v5833_v59 = vld [vmem:[%s7325_s26 + $0x10] sm:$0xff]  }
 0x2c4   :  { %5336 = vmatprep.subr.bf16.mxu1 %v6447_v0  ;;  %v5312_v8 = vpop.f32.mrf.mxu0 }
 0x2c6   :  { %v798_v9 = vpop.f32.mrf.mxu0 }
 0x2c8   :  { %v5313_v10 = vpop.f32.mrf.mxu0 }
 0x382   :  { %v729_v50 = vpop.f32.mrf.mxu1 }
 0x383   :  { %v730_v51 = vadd.f32 %v4707_v49, %v729_v50 }
 0x384   :  { %v5306_v52 = vpop.f32.mrf.mxu1 }
 0x385   :  { %5917 = vtanh.f32 %v730_v51 }
 0x386   :  { %v732_v53 = vpop.f32.mrf.mxu1 }
 0x388   :  { %v5307_v54 = vpop.f32.mrf.mxu1 }
 0x392   :  { %v6751_v55 = vpop.eup %5917 }
 0x393   :  { %v736_v56 = vmul.f32 1.442695, %v6751_v55 }
 0x395   :  { %5919 = vpow2.f32 %v736_v56 }
 0x3a2   :  { %v5920_v60 = vpop.eup %5919 }
 0x3a3   :  { %739 = vrot.lane.b32.xlu0 %v5920_v60, %s6449_s4 }
 0x415   :  { %v740_v63 = vpop.permute.xlu0 %739 }
 0x416   :  { %v742_v2 = vmul.f32 %v740_v63, %v6718_v15  ;;  %v5837_v63 = vld [vmem:[%s7328_s14 + $0x78] sm:$0xff]  }
 0x418   :  { %v6770_v4 = vadd.f32 %v742_v2, %v730_v51  ;;  %v4765_v2 = vld [vmem:[%s7327_s28 + $0x1] ss:$0 sm:$0xff] }
 0x41a   :  { %v748_v6 = vpack.c.bf16 %v6770_v4, %v6770_v4 }
 0x41c   :  { %802 = vrot.lane.b32.xlu0 %v748_v6, %s6450_s30 }
 0x48e   :  { %v803_v11 = vpop.permute.xlu0 %802 }
 0x48f   :  { %5317 = vmatmul.mubr.msk.bf16.vlgmr.msra.gmra.mxu1 %vm474_vm3, %v803_v11 }
 0x490   :  { %5348 = vmatprep.mubr.msk.bf16.mxu1 %vm6448_vm0, %v6447_v0  ;;  %5337 = vmatpush3.bf16.msra.mxu1 %v5827_v14 }
 0x491   :  { %5338 = vmatprep.subr.bf16.mxu1 %v6447_v0 }
 0x494   :  { %5339 = vmatpush3.bf16.msra.mxu1 %v5828_v16 }
 0x495   :  { %5340 = vmatprep.subr.bf16.mxu1 %v6447_v0 }
 0x498   :  { %5341 = vmatpush3.bf16.msra.mxu1 %v5829_v17  ;;  %v5839_v17 = vld [vmem:[%s7328_s14 + $0x68] sm:$0xff]  }
 0x499   :  { %5342 = vmatprep.subr.bf16.mxu1 %v6447_v0 }
 0x49c   :  { %5343 = vmatpush3.bf16.msra.mxu1 %v5830_v18  ;;  %v5840_v18 = vld [vmem:[%s7328_s14 + $0x60] sm:$0xff]  }
 0x49d   :  { %5344 = vmatprep.subr.bf16.mxu1 %v6447_v0 }
 0x4a0   :  { %5345 = vmatpush3.bf16.msra.mxu1 %v5831_v29 }
 0x4a1   :  { %5346 = vmatprep.subr.bf16.mxu1 %v6447_v0 }
 0x4a4   :  { %5347 = vmatpush3.bf16.msra.mxu1 %v5832_v30 }
 0x4a5   :  { %5361 = vmatprep.subr.bf16.mxu1 %v6447_v0 }
 0x54f   :  { %v849_v19 = vpop.f32.mrf.mxu1 }
 0x550   :  { %v850_v21 = vadd.f32 %v849_v19, %v795_v7  ;;  %v5841_v19 = vld [vmem:[%s7329_s2 + $0x88] sm:$0xff]  }
 0x551   :  { %v5318_v22 = vpop.f32.mrf.mxu1 }
 0x552   :  { %v863_v23 = vadd.f32 %v4723_v20, %v850_v21  ;;  %v5842_v20 = vld [vmem:[%s7329_s2 + $0x80] sm:$0xff]   ;;  %v5843_v21 = vld [vmem:[%s7329_s2 + $0x78] sm:$0xff]   ;;  %v5844_v22 = vld [vmem:[%s7329_s2 + $0x70] sm:$0xff]  }
 0x553   :  { %v852_v24 = vpop.f32.mrf.mxu1 }
 0x554   :  { %vm864_vm8 = vcmp.ge.f32.partialorder %v863_v23, 0.0  ;;  %v865_v25 = vmul.f32 0.01, %v863_v23  ;;  %v4776_v24 = vld [vmem:[#allocation8 + $0x2] ss:$0 sm:$0xff] }
 0x555   :  { %v5319_v26 = vpop.f32.mrf.mxu1 }
 0x556   :  { %v866_v27 = vsel %vm864_vm8, %v863_v23, %v865_v25 }
 0x557   :  { %v867_v28 = vpack.c.bf16 %v866_v27, %v866_v27 }
 0x559   :  { %5333 = vmatmul.mubr.msk.bf16.vlgmr.msra.gmra.mxu0 %vm589_vm6, %v867_v28 }
 0x55a   :  { %5358 = vmatprep.mubr.msk.f32.mxu0 %vm6448_vm0, %v6447_v0  ;;  %5353 = vmatpush3.msra.mxu0 %v1096_v40 }
 0x55b   :  { %5354 = vmatprep.subr.mxu0 %v6447_v0 }
 0x55c   :  { %5355 = vmatpush3.msra.mxu0 %v1095_v41 }
 0x55d   :  { %5356 = vmatprep.subr.mxu0 %v6447_v0 }
 0x55e   :  { %5357 = vmatpush3.msra.mxu0 %v1094_v42 }
 0x55f   :  { %5367 = vmatprep.subr.bf16.mxu0 %v6447_v0 }
 0x619   :  { %v962_v32 = vpop.f32.mrf.mxu0 }
 0x61a   :  { %v963_v33 = vadd.f32 %v4736_v31, %v962_v32 }
 0x61b   :  { %v5334_v34 = vpop.f32.mrf.mxu0 }
 0x61c   :  { %vm968_vm9 = vcmp.ge.f32.partialorder %v963_v33, 0.0  ;;  %v969_v35 = vmul.f32 0.01, %v963_v33  ;;  %v5846_v34 = vld [vmem:[%s7329_s2 + $0x60] sm:$0xff]  }
 0x61d   :  { %v965_v36 = vpop.f32.mrf.mxu0 }
 0x61e   :  { %v970_v37 = vsel %vm968_vm9, %v963_v33, %v969_v35  ;;  %v5845_v33 = vld [vmem:[%s7329_s2 + $0x68] sm:$0xff]   ;;  %v4789_v35 = vld [vmem:[#allocation10 + $0x2] ss:$0 sm:$0xff] }
 0x61f   :  { %v971_v38 = vpack.c.bf16 %v970_v37, %v970_v37  ;;  %v5335_v39 = vpop.f32.mrf.mxu0 }
 0x621   :  { %5349 = vmatmul.mubr.msk.bf16.vlgmr.msra.gmra.mxu1 %vm589_vm6, %v971_v38 }
 0x622   :  { %5363 = vmatprep.mubr.msk.bf16.mxu1 %vm6448_vm0, %v6447_v0  ;;  %5362 = vmatpush3.bf16.msra.mxu1 %v5833_v59  ;;  %v5850_v59 = vld [vmem:[%s7328_s14 + $0xb0] sm:$0xff]  }
 0x623   :  { %5373 = vmatprep.subr.bf16.mxu1 %v6447_v0 }
 0x629   :  { %5364 = vmatmul.mubr.msk.bf16.vlgmr.msra.gmra.mxu1 %vm425_vm2, %v6703_v3 }
 0x62a   :  { %5385 = vmatprep.mubr.msk.bf16.mxu1 %vm6448_vm0, %v6447_v0  ;;  %5374 = vmatpush3.bf16.msra.mxu1 %v5835_v61 }
 0x62b   :  { %5375 = vmatprep.subr.bf16.mxu1 %v6447_v0 }
 0x62e   :  { %5376 = vmatpush3.bf16.msra.mxu1 %v5836_v62  ;;  %v5851_v62 = vld [vmem:[%s7328_s14 + $0xa8] sm:$0xff]  }
 0x62f   :  { %5377 = vmatprep.subr.bf16.mxu1 %v6447_v0 }
 0x632   :  { %5378 = vmatpush3.bf16.msra.mxu1 %v5837_v63 }
 0x633   :  { %5379 = vmatprep.subr.bf16.mxu1 %v6447_v0 }
 0x636   :  { %5380 = vmatpush3.bf16.msra.mxu1 %v5838_v1  ;;  %v5852_v1 = vld [vmem:[%s7328_s14 + $0xa0] sm:$0xff]  }
 0x637   :  { %5381 = vmatprep.subr.bf16.mxu1 %v6447_v0 }
 0x63a   :  { %5382 = vmatpush3.bf16.msra.mxu1 %v5839_v17  ;;  %v4825_v17 = vld [vmem:[#allocation8 + $0x3] ss:$0 sm:$0xff] }
 0x63b   :  { %5383 = vmatprep.subr.bf16.mxu1 %v6447_v0 }
 0x63e   :  { %5384 = vmatpush3.bf16.msra.mxu1 %v5840_v18 }
 0x63f   :  { %5405 = vmatprep.subr.bf16.mxu1 %v6447_v0 }
 0x6e1   :  { %v1066_v44 = vpop.f32.mrf.mxu1 }
 0x6e2   :  { %v1067_v45 = vadd.f32 %v4756_v43, %v1066_v44  ;;  %v4809_v44 = vld [vmem:[#allocation11 + $0x2] ss:$0 sm:$0xff] }
 0x6e3   :  { %v5350_v46 = vpop.f32.mrf.mxu1 }
 0x6e4   :  { %1077 = vrot.lane.b32.xlu1 %v1067_v45, %s6450_s30  ;;  %5921 = vtanh.f32 %v1067_v45 }
 0x6e5   :  { %v1069_v47 = vpop.f32.mrf.mxu1 }
 0x6e7   :  { %v5351_v48 = vpop.f32.mrf.mxu1 }
 0x6e8   :  { %1086 = vrot.lane.b32.xlu1 %v6770_v4, %s6450_s30  ;;  %v4767_v4 = vld [vmem:[#allocation7 + $0x1] ss:$0 sm:$0xff] }
 0x6e9   :  { %v1238_v12 = vpop.f32.mrf.mxu1 }
 0x6eb   :  { %v5365_v13 = vpop.f32.mrf.mxu1 }
 0x6ec   :  { %v5857_v13 = vld [vmem:[%s7329_s2 + $0xa8] sm:$0xff]  }
 0x6ed   :  { %v1241_v14 = vpop.f32.mrf.mxu1 }
 0x6ee   :  { %v5858_v14 = vld [vmem:[%s7329_s2 + $0xa0] sm:$0xff]  }
 0x6ef   :  { %v5366_v16 = vpop.f32.mrf.mxu1 }
 0x6f1   :  { %v6812_v49 = vpop.eup %5921 }
 0x6f2   :  { %v1073_v50 = vmul.f32 1.442695, %v6812_v49 }
 0x6f4   :  { %5923 = vpow2.f32 %v1073_v50 }
 0x701   :  { %v5924_v51 = vpop.eup %5923 }
 0x702   :  { %v1075_v52 = vmul.f32 %v5924_v51, %v6718_v15  ;;  %v5834_v15 = vld [vmem:[%s7326_s9 + $0x10] sm:$0x3f]  }
 0x703   :  { %v1253_v60 = vsel %vm478_vm1, %v5834_v15, 0 }
 0x756   :  { %v1078_v53 = vpop.permute.xlu1 %1077 }
 0x757   :  { %v1080_v54 = vadd.f32 %v1078_v53, %v1075_v52  ;;  %v5847_v53 = vld [vmem:[%s7325_s26 + $0x18] sm:$0xff]  }
 0x759   :  { %1090 = vrot.lane.b32.xlu0 %v1080_v54, %s6449_s4  ;;  %v5848_v54 = vld [vmem:[%s7326_s9 + $0x18] sm:$0x3f]  }
 0x75a   :  { %v1087_v56 = vpop.permute.xlu1 %1086 }
 0x7cb   :  { %v1091_v57 = vpop.permute.xlu0 %1090 }
 0x7cc   :  { %v1093_v58 = vsel %vm474_vm3, %v1087_v56, %v1091_v57  ;;  %v1590_v57 = vsel %vm478_vm1, %v5848_v54, 0  ;;  %vm2027_vm1 = vcmask 1043456  }
 0x7cd   :  { %5359 = vmatmul.mubr.msk.f32.vlgmr.msra.gmra.mxu0 %vm1107_vm10, %v1093_v58  ;;  %v5849_v58 = vld [vmem:[%s7328_s14 + $0xb8] sm:$0xff]  }
 0x7ce   :  { %5369 = vmatprep.mubr.msk.bf16.mxu0 %vm6448_vm0, %v6447_v0  ;;  %5368 = vmatpush3.bf16.msra.mxu0 %v1253_v60 }
 0x7cf   :  { %5389 = vmatprep.subr.bf16.mxu0 %v6447_v0 }
 0x88d   :  { %v1177_v5 = vpop.f32.mrf.mxu0 }
 0x88e   :  { %v1178_v6 = vadd.f32 %v4765_v2, %v1177_v5 }
 0x88f   :  { %v5360_v7 = vpop.f32.mrf.mxu0 }
 0x890   :  { %v1187_v8 = vmul.f32 %v4767_v4, %v1178_v6 }
 0x892   :  { %vm1188_vm11 = vcmp.ge.f32.partialorder %v1187_v8, 0.0  ;;  %v1189_v9 = vmul.f32 0.9, %v1187_v8 }
 0x894   :  { %v6839_v10 = vsel %vm1188_vm11, %v1187_v8, %v1189_v9  ;;  %v5853_v8 = vld [vmem:[%s7328_s14 + $0x98] sm:$0xff]   ;;  %v5854_v9 = vld [vmem:[%s7328_s14 + $0x90] sm:$0xff]  }
 0x895   :  { %v1191_v11 = vpack.c.bf16 %v6839_v10, %v6839_v10 }
 0x897   :  { %5370 = vmatmul.mubr.msk.bf16.vlgmr.msra.gmra.mxu0 %vm474_vm3, %v1191_v11  ;;  %v5855_v11 = vld [vmem:[%s7329_s2 + $0xb8] sm:$0xff]  }
 0x898   :  { %5401 = vmatprep.mubr.msk.bf16.mxu0 %vm6448_vm0, %v6447_v0  ;;  %5390 = vmatpush3.bf16.msra.mxu0 %v5841_v19 }
 0x899   :  { %5391 = vmatprep.subr.bf16.mxu0 %v6447_v0 }
 0x89c   :  { %5392 = vmatpush3.bf16.msra.mxu0 %v5842_v20 }
 0x89d   :  { %5393 = vmatprep.subr.bf16.mxu0 %v6447_v0 }
 0x8a0   :  { %5394 = vmatpush3.bf16.msra.mxu0 %v5843_v21 }
 0x8a1   :  { %5395 = vmatprep.subr.bf16.mxu0 %v6447_v0 }
 0x8a4   :  { %5396 = vmatpush3.bf16.msra.mxu0 %v5844_v22 }
 0x8a5   :  { %5397 = vmatprep.subr.bf16.mxu0 %v6447_v0 }
 0x8a8   :  { %5398 = vmatpush3.bf16.msra.mxu0 %v5845_v33 }
 0x8a9   :  { %5399 = vmatprep.subr.bf16.mxu0 %v6447_v0 }
 0x8ac   :  { %5400 = vmatpush3.bf16.msra.mxu0 %v5846_v34 }
 0x8ad   :  { %5411 = vmatprep.subr.bf16.mxu0 %v6447_v0 }
 0x957   :  { %v1289_v23 = vpop.f32.mrf.mxu0 }
 0x958   :  { %v1290_v25 = vadd.f32 %v1289_v23, %v1238_v12  ;;  %v5856_v12 = vld [vmem:[%s7329_s2 + $0xb0] sm:$0xff]  }
 0x959   :  { %v5371_v26 = vpop.f32.mrf.mxu0 }
 0x95a   :  { %v1303_v27 = vadd.f32 %v4776_v24, %v1290_v25  ;;  %v5859_v26 = vld [vmem:[%s7329_s2 + $0x98] sm:$0xff]  }
 0x95b   :  { %v1292_v28 = vpop.f32.mrf.mxu0 }
 0x95c   :  { %vm1304_vm12 = vcmp.ge.f32.partialorder %v1303_v27, 0.0  ;;  %v1305_v29 = vmul.f32 0.01, %v1303_v27  ;;  %v4838_v28 = vld [vmem:[#allocation10 + $0x3] ss:$0 sm:$0xff] }
 0x95d   :  { %v5372_v30 = vpop.f32.mrf.mxu0 }
 0x95e   :  { %v1306_v31 = vsel %vm1304_vm12, %v1303_v27, %v1305_v29  ;;  %v5860_v27 = vld [vmem:[%s7329_s2 + $0x90] sm:$0xff]  }
 0x95f   :  { %v1307_v32 = vpack.c.bf16 %v1306_v31, %v1306_v31 }
 0x961   :  { %5386 = vmatmul.mubr.msk.bf16.vlgmr.msra.gmra.mxu1 %vm589_vm6, %v1307_v32 }
 0x962   :  { %5407 = vmatprep.mubr.msk.bf16.mxu1 %vm6448_vm0, %v6447_v0  ;;  %5406 = vmatpush3.bf16.msra.mxu1 %v5847_v53 }
 0x963   :  { %5417 = vmatprep.subr.bf16.mxu1 %v6447_v0 }
 0x969   :  { %5408 = vmatmul.mubr.msk.bf16.vlgmr.msra.gmra.mxu1 %vm425_vm2, %v6703_v3 }
 0x96a   :  { %5429 = vmatprep.mubr.msk.bf16.mxu1 %vm6448_vm0, %v6447_v0  ;;  %5418 = vmatpush3.bf16.msra.mxu1 %v5849_v58 }
 0x96b   :  { %5419 = vmatprep.subr.bf16.mxu1 %v6447_v0 }
 0x96e   :  { %5420 = vmatpush3.bf16.msra.mxu1 %v5850_v59  ;;  %v5861_v59 = vld [vmem:[#allocation19] sm:$0xff]  }
 0x96f   :  { %5421 = vmatprep.subr.bf16.mxu1 %v6447_v0 }
 0x972   :  { %5422 = vmatpush3.bf16.msra.mxu1 %v5851_v62  ;;  %v5863_v62 = vld [vmem:[%s7331_s7 + $0x10] sm:$0xff]  }
 0x973   :  { %5423 = vmatprep.subr.bf16.mxu1 %v6447_v0 }
 0x976   :  { %5424 = vmatpush3.bf16.msra.mxu1 %v5852_v1 }
 0x977   :  { %5425 = vmatprep.subr.bf16.mxu1 %v6447_v0 }
 0x97a   :  { %5426 = vmatpush3.bf16.msra.mxu1 %v5853_v8  ;;  %v4871_v8 = vld [vmem:[#allocation14] ss:$0 sm:$0xff] }
 0x97b   :  { %5427 = vmatprep.subr.bf16.mxu1 %v6447_v0 }
 0x97e   :  { %5428 = vmatpush3.bf16.msra.mxu1 %v5854_v9 }
 0x97f   :  { %5449 = vmatprep.subr.mxu1 %v6447_v0 }
 0xa21   :  { %v1402_v36 = vpop.f32.mrf.mxu1 }
 0xa22   :  { %v1403_v37 = vadd.f32 %v4789_v35, %v1402_v36 }
 0xa23   :  { %v5387_v38 = vpop.f32.mrf.mxu1 }
 0xa24   :  { %vm1408_vm13 = vcmp.ge.f32.partialorder %v1403_v37, 0.0  ;;  %v1409_v39 = vmul.f32 0.01, %v1403_v37  ;;  %v4867_v38 = vld [vmem:[%s7330_s13 + $0x20] sm:$0xff] }
 0xa25   :  { %v1405_v40 = vpop.f32.mrf.mxu1 }
 0xa26   :  { %v1410_v41 = vsel %vm1408_vm13, %v1403_v37, %v1409_v39  ;;  %v4868_v37 = vld [vmem:[%s7330_s13 + $0x28] sm:$0xff]  ;;  %v4866_v39 = vld [vmem:[%s7330_s13 + $0x18] sm:$0xff] }
 0xa27   :  { %v1411_v42 = vpack.c.bf16 %v1410_v41, %v1410_v41  ;;  %v5388_v43 = vpop.f32.mrf.mxu1  ;;  %v4858_v40 = vld [vmem:[#allocation11 + $0x3] ss:$0 sm:$0xff] }
 0xa29   :  { %5402 = vmatmul.mubr.msk.bf16.vlgmr.msra.gmra.mxu0 %vm589_vm6, %v1411_v42  ;;  %v1572_v2 = vpop.f32.mrf.mxu1 }
 0xa2a   :  { %5413 = vmatprep.mubr.msk.bf16.mxu0 %vm6448_vm0, %v6447_v0  ;;  %5412 = vmatpush3.bf16.msra.mxu0 %v1590_v57 }
 0xa2b   :  { %5433 = vmatprep.subr.bf16.mxu0 %v6447_v0  ;;  %v5409_v4 = vpop.f32.mrf.mxu1 }
 0xa2d   :  { %v1575_v5 = vpop.f32.mrf.mxu1 }
 0xa2f   :  { %v5410_v6 = vpop.f32.mrf.mxu1 }
 0xae9   :  { %v1506_v45 = vpop.f32.mrf.mxu0 }
 0xaea   :  { %v1507_v46 = vadd.f32 %v4809_v44, %v1506_v45 }
 0xaeb   :  { %v5403_v47 = vpop.f32.mrf.mxu0 }
 0xaec   :  { %5925 = vtanh.f32 %v1507_v46 }
 0xaed   :  { %v1509_v48 = vpop.f32.mrf.mxu0 }
 0xaee   :  { %v4870_v48 = vld [vmem:[#allocation13] ss:$0 sm:$0xff] }
 0xaef   :  { %v5404_v50 = vpop.f32.mrf.mxu0 }
 0xaf9   :  { %v6868_v51 = vpop.eup %5925 }
 0xafa   :  { %v1513_v52 = vmul.f32 1.442695, %v6868_v51 }
 0xafc   :  { %5927 = vpow2.f32 %v1513_v52 }
 0xb09   :  { %v5928_v56 = vpop.eup %5927 }
 0xb0a   :  { %1516 = vrot.lane.b32.xlu1 %v5928_v56, %s6449_s4 }
 0xb7c   :  { %v1517_v15 = vpop.permute.xlu1 %1516 }
 0xb7d   :  { %v1519_v60 = vmul.f32 %v1517_v15, %v6839_v10 }
 0xb7f   :  { %v1520_v61 = vadd.f32 %v1519_v60, %v1507_v46  ;;  %v5862_v60 = vld [vmem:[%s7331_s7 + $0x18] sm:$0xff]  }
 0xb81   :  { %v1525_v63 = vpack.c.bf16 %v1520_v61, %v1520_v61 }
 0xb83   :  { %1579 = vrot.lane.b32.xlu0 %v1525_v63, %s6450_s30 }
 0xb87   :  { %1863 = vrot.lane.b32.xlu0 %v1520_v61, %s6450_s30 }
 0xb8b   :  { %1955 = vrot.lane.b32.xlu0 %v4870_v48, %s6441_s1 }
 0xbf5   :  { %v1580_v7 = vpop.permute.xlu0 %1579 }
 0xbf6   :  { %5414 = vmatmul.mubr.msk.bf16.vlgmr.msra.gmra.mxu0 %vm474_vm3, %v1580_v7 }
 0xbf7   :  { %5445 = vmatprep.mubr.msk.bf16.mxu0 %vm6448_vm0, %v6447_v0  ;;  %5434 = vmatpush3.bf16.msra.mxu0 %v5855_v11 }
 0xbf8   :  { %5435 = vmatprep.subr.bf16.mxu0 %v6447_v0 }
 0xbf9   :  { %v1864_v56 = vpop.permute.xlu0 %1863 }
 0xbfb   :  { %5436 = vmatpush3.bf16.msra.mxu0 %v5856_v12 }
 0xbfc   :  { %5437 = vmatprep.subr.bf16.mxu0 %v6447_v0 }
 0xbfd   :  { %v1956_v61 = vpop.permute.xlu0 %1955 }
 0xbff   :  { %5438 = vmatpush3.bf16.msra.mxu0 %v5857_v13 }
 0xc00   :  { %5439 = vmatprep.subr.bf16.mxu0 %v6447_v0 }
 0xc03   :  { %5440 = vmatpush3.bf16.msra.mxu0 %v5858_v14 }
 0xc04   :  { %5441 = vmatprep.subr.bf16.mxu0 %v6447_v0 }
 0xc07   :  { %5442 = vmatpush3.bf16.msra.mxu0 %v5859_v26 }
 0xc08   :  { %5443 = vmatprep.subr.bf16.mxu0 %v6447_v0 }
 0xc0b   :  { %5444 = vmatpush3.bf16.msra.mxu0 %v5860_v27 }
 0xc0c   :  { %5458 = vmatprep.subr.bf16.mxu0 %v6447_v0 }
 0xcb6   :  { %v1626_v16 = vpop.f32.mrf.mxu0 }
 0xcb7   :  { %v1627_v18 = vadd.f32 %v1626_v16, %v1572_v2  ;;  %v5864_v16 = vld [vmem:[%s7331_s7 + $0x8] sm:$0xff]  }
 0xcb8   :  { %v5415_v19 = vpop.f32.mrf.mxu0 }
 0xcb9   :  { %v1640_v20 = vadd.f32 %v4825_v17, %v1627_v18  ;;  %v5865_v17 = vld [vmem:[%s7331_s7] sm:$0xff]   ;;  %v5866_v18 = vld [vmem:[%s7332_s3 + $0x18] sm:$0xff]   ;;  %v5867_v19 = vld [vmem:[%s7332_s3 + $0x10] sm:$0xff]  }
 0xcba   :  { %v1629_v21 = vpop.f32.mrf.mxu0 }
 0xcbb   :  { %vm1641_vm14 = vcmp.ge.f32.partialorder %v1640_v20, 0.0  ;;  %v1642_v22 = vmul.f32 0.01, %v1640_v20  ;;  %v4875_v21 = vld [vmem:[#allocation20] ss:$0 sm:$0xff] }
 0xcbc   :  { %v5416_v23 = vpop.f32.mrf.mxu0 }
 0xcbd   :  { %v1643_v24 = vsel %vm1641_vm14, %v1640_v20, %v1642_v22 }
 0xcbe   :  { %v1644_v25 = vpack.c.bf16 %v1643_v24, %v1643_v24 }
 0xcc0   :  { %5430 = vmatmul.mubr.msk.bf16.vlgmr.msra.gmra.mxu1 %vm589_vm6, %v1644_v25 }
 0xcc1   :  { %5455 = vmatprep.mubr.msk.f32.mxu1 %vm6448_vm0, %v6447_v0  ;;  %5450 = vmatpush3.msra.mxu1 %v4868_v37 }
 0xcc2   :  { %5451 = vmatprep.subr.mxu1 %v6447_v0 }
 0xcc3   :  { %5452 = vmatpush3.msra.mxu1 %v4867_v38 }
 0xcc4   :  { %5453 = vmatprep.subr.mxu1 %v6447_v0 }
 0xcc5   :  { %5454 = vmatpush3.msra.mxu1 %v4866_v39 }
 0xcc6   :  { %5464 = vmatprep.subr.bf16.mxu1 %v6447_v0 }
 0xd80   :  { %v1739_v29 = vpop.f32.mrf.mxu1 }
 0xd81   :  { %v1740_v30 = vadd.f32 %v4838_v28, %v1739_v29 }
 0xd82   :  { %v5431_v31 = vpop.f32.mrf.mxu1 }
 0xd83   :  { %vm1745_vm15 = vcmp.ge.f32.partialorder %v1740_v30, 0.0  ;;  %v1746_v32 = vmul.f32 0.01, %v1740_v30  ;;  %v5869_v31 = vld [vmem:[%s7332_s3] sm:$0xff]  }
 0xd84   :  { %v1742_v33 = vpop.f32.mrf.mxu1 }
 0xd85   :  { %v1747_v34 = vsel %vm1745_vm15, %v1740_v30, %v1746_v32  ;;  %v5868_v30 = vld [vmem:[%s7332_s3 + $0x8] sm:$0xff]   ;;  %v4876_v32 = vld [vmem:[#allocation22] ss:$0 sm:$0xff] }
 0xd86   :  { %v1748_v35 = vpack.c.bf16 %v1747_v34, %v1747_v34  ;;  %v5432_v36 = vpop.f32.mrf.mxu1 }
 0xd88   :  { %5446 = vmatmul.mubr.msk.bf16.vlgmr.msra.gmra.mxu0 %vm589_vm6, %v1748_v35 }
 0xd89   :  { %5460 = vmatprep.mubr.msk.bf16.mxu0 %vm6448_vm0, %v6447_v0  ;;  %5459 = vmatpush3.bf16.msra.mxu0 %v5861_v59 }
 0xd8a   :  { %5470 = vmatprep.subr.bf16.mxu0 %v6447_v0 }
 0xd90   :  { %5461 = vmatmul.mubr.msk.bf16.vlgmr.msra.gmra.mxu0 %vm425_vm2, %v6703_v3 }
 0xd91   :  { %5478 = vmatprep.mubr.msk.bf16.mxu0 %vm6448_vm0, %v6447_v0  ;;  %5471 = vmatpush3.bf16.msra.mxu0 %v5862_v60 }
 0xd92   :  { %5472 = vmatprep.subr.bf16.mxu0 %v6447_v0 }
 0xd95   :  { %5473 = vmatpush3.bf16.msra.mxu0 %v5863_v62 }
 0xd96   :  { %5474 = vmatprep.subr.bf16.mxu0 %v6447_v0 }
 0xd99   :  { %5475 = vmatpush3.bf16.msra.mxu0 %v5864_v16 }
 0xd9a   :  { %5476 = vmatprep.subr.bf16.mxu0 %v6447_v0 }
 0xd9d   :  { %5477 = vmatpush3.bf16.msra.mxu0 %v5865_v17 }
 0xd9e   :  { %5494 = vmatprep.subr.bf16.mxu0 %v6447_v0 }
 0xe48   :  { %v1843_v41 = vpop.f32.mrf.mxu0 }
 0xe49   :  { %v1844_v42 = vadd.f32 %v4858_v40, %v1843_v41  ;;  %v4882_v41 = vld [vmem:[#allocation23] ss:$0 sm:$0xff] }
 0xe4a   :  { %v5447_v43 = vpop.f32.mrf.mxu0 }
 0xe4b   :  { %1854 = vrot.lane.b32.xlu1 %v1844_v42, %s6450_s30  ;;  %5929 = vtanh.f32 %v1844_v42 }
 0xe4c   :  { %v1846_v44 = vpop.f32.mrf.mxu0 }
 0xe4e   :  { %v5448_v45 = vpop.f32.mrf.mxu0 }
 0xe50   :  { %v2017_v4 = vpop.f32.mrf.mxu0 }
 0xe52   :  { %v5462_v5 = vpop.f32.mrf.mxu0 }
 0xe53   :  { %v5873_v5 = vld [vmem:[%s7331_s7 + $0x28] sm:$0xff]  }
 0xe54   :  { %v2020_v6 = vpop.f32.mrf.mxu0 }
 0xe55   :  { %v5874_v6 = vld [vmem:[%s7331_s7 + $0x20] sm:$0xff]  }
 0xe56   :  { %v5463_v7 = vpop.f32.mrf.mxu0 }
 0xe57   :  { %v5875_v7 = vld [vmem:[%s7332_s3 + $0x38] sm:$0xff]  }
 0xe58   :  { %v6924_v46 = vpop.eup %5929 }
 0xe59   :  { %v1850_v47 = vmul.f32 1.442695, %v6924_v46 }
 0xe5b   :  { %5931 = vpow2.f32 %v1850_v47 }
 0xe68   :  { %v5932_v50 = vpop.eup %5931 }
 0xe69   :  { %v1852_v52 = vmul.f32 %v5932_v50, %v6839_v10  ;;  %v1974_v10 = vld [vmem:[#allocation17] sm:$0xf] }
 0xe6a   :  { %v2029_v15 = vsel %vm2027_vm1, %v1974_v10, 0 }
 0xebd   :  { %v1855_v53 = vpop.permute.xlu1 %1854 }
 0xebe   :  { %v1857_v54 = vadd.f32 %v1855_v53, %v1852_v52  ;;  %v5870_v52 = vld [vmem:[#allocation19 + $0x8] sm:$0xff]   ;;  %v2267_v53 = vld [vmem:[#allocation17 + $0x4] sm:$0xf] }
 0xec0   :  { %1867 = vrot.lane.b32.xlu1 %v1857_v54, %s6449_s4  ;;  %v2324_v54 = vsel %vm2027_vm1, %v2267_v53, 0 }
 0xf32   :  { %v1868_v57 = vpop.permute.xlu1 %1867 }
 0xf33   :  { %v1870_v58 = vsel %vm474_vm3, %v1864_v56, %v1868_v57  ;;  %v5871_v57 = vld [vmem:[%s7331_s7 + $0x38] sm:$0xff]  }
 0xf34   :  { %5456 = vmatmul.mubr.msk.f32.vlgmr.msra.gmra.mxu1 %vm1107_vm10, %v1870_v58  ;;  %v5872_v58 = vld [vmem:[%s7331_s7 + $0x30] sm:$0xff]  }
 0xf35   :  { %5466 = vmatprep.mubr.msk.bf16.mxu1 %vm6448_vm0, %v6447_v0  ;;  %5465 = vmatpush3.bf16.msra.mxu1 %v2029_v15 }
 0xf36   :  { %5482 = vmatprep.subr.bf16.mxu1 %v6447_v0 }
 0xff4   :  { %v6943_v63 = vpop.f32.mrf.mxu1 }
 0xff5   :  { %v1958_v1 = vadd.f32 %v1956_v61, %v6943_v63 }
 0xff6   :  { %v5457_v2 = vpop.f32.mrf.mxu1 }
 0xff7   :  { %1966 = vrot.lane.b32.xlu1 %v1958_v1, %s6451_s10 }
0x1069   :  { %v1967_v9 = vpop.permute.xlu1 %1966 }
0x106a   :  { %v1969_v11 = vmul.f32 %v4871_v8, %v1967_v9  ;;  %v5876_v8 = vld [vmem:[%s7332_s3 + $0x30] sm:$0xff]  }
0x106c   :  { %vm1970_vm4 = vcmp.ge.f32.partialorder %v1969_v11, 0.0  ;;  %v1971_v12 = vmul.f32 0.9, %v1969_v11 }
0x106e   :  { %v6949_v13 = vsel %vm1970_vm4, %v1969_v11, %v1971_v12  ;;  %v4891_v11 = vld [vmem:[#allocation20 + $0x1] ss:$0 sm:$0xff]  ;;  %vm3427_vm4 = vcmask 1041408  }
0x106f   :  { %v1973_v14 = vpack.c.bf16 %v6949_v13, %v6949_v13 }
0x1071   :  { %5467 = vmatmul.mubr.msk.bf16.vlgmr.msra.gmra.mxu1 %vm2023_vm5, %v1973_v14 }
0x1072   :  { %5490 = vmatprep.mubr.msk.bf16.mxu1 %vm6448_vm0, %v6447_v0  ;;  %5483 = vmatpush3.bf16.msra.mxu1 %v5866_v18 }
0x1073   :  { %5484 = vmatprep.subr.bf16.mxu1 %v6447_v0 }
0x1076   :  { %5485 = vmatpush3.bf16.msra.mxu1 %v5867_v19 }
0x1077   :  { %5486 = vmatprep.subr.bf16.mxu1 %v6447_v0 }
0x107a   :  { %5487 = vmatpush3.bf16.msra.mxu1 %v5868_v30 }
0x107b   :  { %5488 = vmatprep.subr.bf16.mxu1 %v6447_v0 }
0x107e   :  { %5489 = vmatpush3.bf16.msra.mxu1 %v5869_v31 }
0x107f   :  { %5500 = vmatprep.subr.bf16.mxu1 %v6447_v0 }
0x1131   :  { %v2065_v20 = vpop.f32.mrf.mxu1 }
0x1132   :  { %v2066_v22 = vadd.f32 %v2065_v20, %v2017_v4 }
0x1133   :  { %v5468_v23 = vpop.f32.mrf.mxu1 }
0x1134   :  { %v2078_v24 = vadd.f32 %v4875_v21, %v2066_v22  ;;  %v5877_v22 = vld [vmem:[%s7332_s3 + $0x28] sm:$0xff]   ;;  %v5878_v23 = vld [vmem:[%s7332_s3 + $0x20] sm:$0xff]  }
0x1135   :  { %v2068_v25 = vpop.f32.mrf.mxu1 }
0x1136   :  { %vm2079_vm6 = vcmp.ge.f32.partialorder %v2078_v24, 0.0  ;;  %v2080_v26 = vmul.f32 0.01, %v2078_v24 }
0x1137   :  { %v5469_v27 = vpop.f32.mrf.mxu1 }
0x1138   :  { %v2081_v28 = vsel %vm2079_vm6, %v2078_v24, %v2080_v26  ;;  %v4900_v24 = vld [vmem:[#allocation22 + $0x1] ss:$0 sm:$0xff] }
0x1139   :  { %v2082_v29 = vpack.c.bf16 %v2081_v28, %v2081_v28 }
0x113b   :  { %5479 = vmatmul.mubr.msk.bf16.vlgmr.msra.gmra.mxu0 %vm2122_vm7, %v2082_v29 }
0x113c   :  { %5496 = vmatprep.mubr.msk.bf16.mxu0 %vm6448_vm0, %v6447_v0  ;;  %5495 = vmatpush3.bf16.msra.mxu0 %v5870_v52 }
0x113d   :  { %5506 = vmatprep.subr.bf16.mxu0 %v6447_v0 }
0x1143   :  { %5497 = vmatmul.mubr.msk.bf16.vlgmr.msra.gmra.mxu0 %vm425_vm2, %v6703_v3 }
0x1144   :  { %5514 = vmatprep.mubr.msk.bf16.mxu0 %vm6448_vm0, %v6447_v0  ;;  %5507 = vmatpush3.bf16.msra.mxu0 %v5871_v57  ;;  %v5880_v57 = vld [vmem:[%s7331_s7 + $0x58] sm:$0xff]  }
0x1145   :  { %5508 = vmatprep.subr.bf16.mxu0 %v6447_v0 }
0x1148   :  { %5509 = vmatpush3.bf16.msra.mxu0 %v5872_v58  ;;  %v5881_v58 = vld [vmem:[%s7331_s7 + $0x50] sm:$0xff]  }
0x1149   :  { %5510 = vmatprep.subr.bf16.mxu0 %v6447_v0 }
0x114c   :  { %5511 = vmatpush3.bf16.msra.mxu0 %v5873_v5 }
0x114d   :  { %5512 = vmatprep.subr.bf16.mxu0 %v6447_v0 }
0x1150   :  { %5513 = vmatpush3.bf16.msra.mxu0 %v5874_v6 }
0x1151   :  { %5530 = vmatprep.subr.mxu0 %v6447_v0 }
0x11fb   :  { %v2160_v33 = vpop.f32.mrf.mxu0 }
0x11fc   :  { %v2161_v34 = vadd.f32 %v4876_v32, %v2160_v33  ;;  %v2574_v33 = vld [vmem:[#allocation16 + $0x8] sm:$0xff] }
0x11fd   :  { %v5480_v35 = vpop.f32.mrf.mxu0 }
0x11fe   :  { %vm2166_vm8 = vcmp.ge.f32.partialorder %v2161_v34, 0.0  ;;  %v2167_v36 = vmul.f32 0.01, %v2161_v34  ;;  %v4914_v35 = vld [vmem:[#allocation23 + $0x1] ss:$0 sm:$0xff] }
0x11ff   :  { %v2163_v37 = vpop.f32.mrf.mxu0 }
0x1200   :  { %v2168_v38 = vsel %vm2166_vm8, %v2161_v34, %v2167_v36  ;;  %v2573_v34 = vld [vmem:[#allocation16] sm:$0xff] }
0x1201   :  { %v2169_v39 = vpack.c.bf16 %v2168_v38, %v2168_v38  ;;  %v5481_v40 = vpop.f32.mrf.mxu0 }
0x1203   :  { %5491 = vmatmul.mubr.msk.bf16.vlgmr.msra.gmra.mxu1 %vm2122_vm7, %v2169_v39  ;;  %v2311_v61 = vpop.f32.mrf.mxu0 }
0x1204   :  { %5502 = vmatprep.mubr.msk.bf16.mxu1 %vm6448_vm0, %v6447_v0  ;;  %5501 = vmatpush3.bf16.msra.mxu1 %v2324_v54  ;;  %v5879_v54 = vld [vmem:[#allocation19 + $0x10] sm:$0xff]  }
0x1205   :  { %5518 = vmatprep.subr.bf16.mxu1 %v6447_v0  ;;  %v5498_v62 = vpop.f32.mrf.mxu0 }
0x1207   :  { %v2314_v1 = vpop.f32.mrf.mxu0 }
0x1209   :  { %v5499_v2 = vpop.f32.mrf.mxu0 }
0x12c3   :  { %v2246_v42 = vpop.f32.mrf.mxu1 }
0x12c4   :  { %v2247_v43 = vadd.f32 %v4882_v41, %v2246_v42 }
0x12c5   :  { %v5492_v44 = vpop.f32.mrf.mxu1 }
0x12c6   :  { %5933 = vtanh.f32 %v2247_v43 }
0x12c7   :  { %v2249_v45 = vpop.f32.mrf.mxu1 }
0x12c9   :  { %v5493_v47 = vpop.f32.mrf.mxu1 }
0x12d3   :  { %v6974_v48 = vpop.eup %5933 }
0x12d4   :  { %v2253_v50 = vmul.f32 1.442695, %v6974_v48 }
0x12d6   :  { %5935 = vpow2.f32 %v2253_v50 }
0x12e3   :  { %v5936_v56 = vpop.eup %5935 }
0x12e4   :  { %2256 = vrot.lane.b32.xlu0 %v5936_v56, %s6441_s1 }
0x1356   :  { %v2257_v59 = vpop.permute.xlu0 %2256 }
0x1357   :  { %v2259_v10 = vmul.f32 %v2257_v59, %v6949_v13  ;;  %v4920_v59 = vld [vmem:[#allocation13 + $0x1] ss:$0 sm:$0xff] }
0x1359   :  { %v2260_v15 = vadd.f32 %v2259_v10, %v2247_v43  ;;  %v4922_v10 = vld [vmem:[#allocation14 + $0x1] ss:$0 sm:$0xff] }
0x135b   :  { %v2265_v60 = vpack.c.bf16 %v2260_v15, %v2260_v15 }
0x135d   :  { %2318 = vrot.lane.b32.xlu1 %v2265_v60, %s6451_s10 }
0x1361   :  { %2565 = vrot.lane.b32.xlu1 %v2260_v15, %s6451_s10 }
0x13cf   :  { %v2319_v4 = vpop.permute.xlu1 %2318 }
0x13d0   :  { %5503 = vmatmul.mubr.msk.bf16.vlgmr.msra.gmra.mxu1 %vm2023_vm5, %v2319_v4 }
0x13d1   :  { %5526 = vmatprep.mubr.msk.bf16.mxu1 %vm6448_vm0, %v6447_v0  ;;  %5519 = vmatpush3.bf16.msra.mxu1 %v5875_v7 }
0x13d2   :  { %5520 = vmatprep.subr.bf16.mxu1 %v6447_v0 }
0x13d3   :  { %v2566_v50 = vpop.permute.xlu1 %2565 }
0x13d5   :  { %5521 = vmatpush3.bf16.msra.mxu1 %v5876_v8 }
0x13d6   :  { %5522 = vmatprep.subr.bf16.mxu1 %v6447_v0 }
0x13d9   :  { %5523 = vmatpush3.bf16.msra.mxu1 %v5877_v22 }
0x13da   :  { %5524 = vmatprep.subr.bf16.mxu1 %v6447_v0 }
0x13dd   :  { %5525 = vmatpush3.bf16.msra.mxu1 %v5878_v23 }
0x13de   :  { %5537 = vmatprep.subr.bf16.mxu1 %v6447_v0 }
0x1490   :  { %v2360_v9 = vpop.f32.mrf.mxu1 }
0x1491   :  { %v2361_v12 = vadd.f32 %v2360_v9, %v2311_v61  ;;  %v5882_v9 = vld [vmem:[%s7331_s7 + $0x48] sm:$0xff]  }
0x1492   :  { %v5504_v14 = vpop.f32.mrf.mxu1 }
0x1493   :  { %v2374_v16 = vadd.f32 %v4891_v11, %v2361_v12  ;;  %v5883_v11 = vld [vmem:[%s7331_s7 + $0x40] sm:$0xff]   ;;  %v5884_v12 = vld [vmem:[%s7332_s3 + $0x58] sm:$0xff]   ;;  %v5885_v14 = vld [vmem:[%s7332_s3 + $0x50] sm:$0xff]  }
0x1494   :  { %v2363_v17 = vpop.f32.mrf.mxu1 }
0x1495   :  { %vm2375_vm9 = vcmp.ge.f32.partialorder %v2374_v16, 0.0  ;;  %v2376_v18 = vmul.f32 0.01, %v2374_v16  ;;  %v4926_v17 = vld [vmem:[#allocation20 + $0x2] ss:$0 sm:$0xff] }
0x1496   :  { %v5505_v19 = vpop.f32.mrf.mxu1 }
0x1497   :  { %v2377_v20 = vsel %vm2375_vm9, %v2374_v16, %v2376_v18  ;;  %vm3506_vm9 = vcmask 261120  }
0x1498   :  { %v2378_v21 = vpack.c.bf16 %v2377_v20, %v2377_v20 }
0x149a   :  { %5515 = vmatmul.mubr.msk.bf16.vlgmr.msra.gmra.mxu0 %vm2122_vm7, %v2378_v21 }
0x149b   :  { %5534 = vmatprep.mubr.msk.f32.mxu0 %vm6448_vm0, %v6447_v0  ;;  %5531 = vmatpush3.msra.mxu0 %v2574_v33 }
0x149c   :  { %5532 = vmatprep.subr.mxu0 %v6447_v0 }
0x149d   :  { %5533 = vmatpush3.msra.mxu0 %v2573_v34 }
0x149e   :  { %5543 = vmatprep.subr.bf16.mxu0 %v6447_v0 }
0x155a   :  { %v2457_v25 = vpop.f32.mrf.mxu0 }
0x155b   :  { %v2458_v26 = vadd.f32 %v4900_v24, %v2457_v25 }
0x155c   :  { %v5516_v27 = vpop.f32.mrf.mxu0 }
0x155d   :  { %vm2463_vm11 = vcmp.ge.f32.partialorder %v2458_v26, 0.0  ;;  %v2464_v28 = vmul.f32 0.01, %v2458_v26  ;;  %v5887_v27 = vld [vmem:[%s7332_s3 + $0x40] sm:$0xff]  }
0x155e   :  { %v2460_v29 = vpop.f32.mrf.mxu0 }
0x155f   :  { %v2465_v30 = vsel %vm2463_vm11, %v2458_v26, %v2464_v28  ;;  %v5886_v26 = vld [vmem:[%s7332_s3 + $0x48] sm:$0xff]   ;;  %v4935_v28 = vld [vmem:[#allocation22 + $0x2] ss:$0 sm:$0xff] }
0x1560   :  { %v2466_v31 = vpack.c.bf16 %v2465_v30, %v2465_v30  ;;  %v5517_v32 = vpop.f32.mrf.mxu0 }
0x1562   :  { %5527 = vmatmul.mubr.msk.bf16.vlgmr.msra.gmra.mxu1 %vm2122_vm7, %v2466_v31 }
0x1563   :  { %5539 = vmatprep.mubr.msk.bf16.mxu1 %vm6448_vm0, %v6447_v0  ;;  %5538 = vmatpush3.bf16.msra.mxu1 %v5879_v54  ;;  %v5889_v54 = vld [vmem:[%s7331_s7 + $0x78] sm:$0xff]  }
0x1564   :  { %5549 = vmatprep.subr.bf16.mxu1 %v6447_v0 }
0x156a   :  { %5540 = vmatmul.mubr.msk.bf16.vlgmr.msra.gmra.mxu1 %vm425_vm2, %v6703_v3 }
0x156b   :  { %5557 = vmatprep.mubr.msk.bf16.mxu1 %vm6448_vm0, %v6447_v0  ;;  %5550 = vmatpush3.bf16.msra.mxu1 %v5880_v57 }
0x156c   :  { %5551 = vmatprep.subr.bf16.mxu1 %v6447_v0 }
0x156f   :  { %5552 = vmatpush3.bf16.msra.mxu1 %v5881_v58 }
0x1570   :  { %5553 = vmatprep.subr.bf16.mxu1 %v6447_v0 }
0x1573   :  { %5554 = vmatpush3.bf16.msra.mxu1 %v5882_v9 }
0x1574   :  { %5555 = vmatprep.subr.bf16.mxu1 %v6447_v0 }
0x1577   :  { %5556 = vmatpush3.bf16.msra.mxu1 %v5883_v11 }
0x1578   :  { %5573 = vmatprep.subr.bf16.mxu1 %v6447_v0 }
0x1622   :  { %v2545_v36 = vpop.f32.mrf.mxu1 }
0x1623   :  { %v2546_v37 = vadd.f32 %v4914_v35, %v2545_v36 }
0x1624   :  { %v5528_v38 = vpop.f32.mrf.mxu1 }
0x1625   :  { %2556 = vrot.lane.b32.xlu0 %v2546_v37, %s6451_s10  ;;  %5937 = vtanh.f32 %v2546_v37  ;;  %v4949_v37 = vld [vmem:[#allocation23 + $0x2] ss:$0 sm:$0xff] }
0x1626   :  { %v2548_v39 = vpop.f32.mrf.mxu1 }
0x1628   :  { %v5529_v40 = vpop.f32.mrf.mxu1 }
0x162a   :  { %v2714_v5 = vpop.f32.mrf.mxu1 }
0x162c   :  { %v5541_v6 = vpop.f32.mrf.mxu1 }
0x162d   :  { %v5894_v6 = vld [vmem:[%s7332_s3 + $0x70] sm:$0xff]  }
0x162e   :  { %v2717_v7 = vpop.f32.mrf.mxu1 }
0x1630   :  { %v5542_v8 = vpop.f32.mrf.mxu1 }
0x1631   :  { %v4958_v8 = vld [vmem:[#allocation20 + $0x3] ss:$0 sm:$0xff] }
0x1632   :  { %v7016_v41 = vpop.eup %5937 }
0x1633   :  { %v2552_v42 = vmul.f32 1.442695, %v7016_v41 }
0x1635   :  { %5939 = vpow2.f32 %v2552_v42 }
0x1642   :  { %v5940_v43 = vpop.eup %5939 }
0x1643   :  { %v2554_v44 = vmul.f32 %v5940_v43, %v6949_v13  ;;  %v2670_v13 = vld [vmem:[#allocation17 + $0x8] sm:$0xf] }
0x1644   :  { %v2724_v56 = vsel %vm2027_vm1, %v2670_v13, 0  ;;  %v5890_v13 = vld [vmem:[%s7331_s7 + $0x70] sm:$0xff]  }
0x1697   :  { %v2557_v45 = vpop.permute.xlu0 %2556 }
0x1698   :  { %v2559_v47 = vadd.f32 %v2557_v45, %v2554_v44 }
0x169a   :  { %2569 = vrot.lane.b32.xlu0 %v2559_v47, %s6441_s1  ;;  %v5888_v47 = vld [vmem:[#allocation19 + $0x18] sm:$0xff]  }
0x170c   :  { %v2570_v52 = vpop.permute.xlu0 %2569 }
0x170d   :  { %v2572_v53 = vsel %vm2023_vm5, %v2566_v50, %v2570_v52  ;;  %v2966_v50 = vld [vmem:[#allocation17 + $0xc] sm:$0xf] }
0x170e   :  { %5535 = vmatmul.mubr.msk.f32.vlgmr.msra.gmra.mxu0 %vm425_vm2, %v2572_v53  ;;  %v3023_v52 = vsel %vm2027_vm1, %v2966_v50, 0 }
0x170f   :  { %5545 = vmatprep.mubr.msk.bf16.mxu0 %vm6448_vm0, %v6447_v0  ;;  %5544 = vmatpush3.bf16.msra.mxu0 %v2724_v56 }
0x1710   :  { %5561 = vmatprep.subr.bf16.mxu0 %v6447_v0 }
0x17ce   :  { %v2654_v15 = vpop.f32.mrf.mxu0 }
0x17cf   :  { %v2655_v60 = vadd.f32 %v4920_v59, %v2654_v15 }
0x17d0   :  { %v5536_v61 = vpop.f32.mrf.mxu0 }
0x17d1   :  { %v2664_v62 = vmul.f32 %v4922_v10, %v2655_v60 }
0x17d3   :  { %vm2665_vm12 = vcmp.ge.f32.partialorder %v2664_v62, 0.0  ;;  %v2666_v1 = vmul.f32 0.9, %v2664_v62 }
0x17d5   :  { %v7036_v2 = vsel %vm2665_vm12, %v2664_v62, %v2666_v1  ;;  %v5891_v1 = vld [vmem:[%s7331_s7 + $0x68] sm:$0xff]  }
0x17d6   :  { %v2668_v4 = vpack.c.bf16 %v7036_v2, %v7036_v2 }
0x17d8   :  { %5546 = vmatmul.mubr.msk.bf16.vlgmr.msra.gmra.mxu0 %vm2023_vm5, %v2668_v4  ;;  %v5892_v4 = vld [vmem:[%s7331_s7 + $0x60] sm:$0xff]  }
0x17d9   :  { %5569 = vmatprep.mubr.msk.bf16.mxu0 %vm6448_vm0, %v6447_v0  ;;  %5562 = vmatpush3.bf16.msra.mxu0 %v5884_v12 }
0x17da   :  { %5563 = vmatprep.subr.bf16.mxu0 %v6447_v0 }
0x17dd   :  { %5564 = vmatpush3.bf16.msra.mxu0 %v5885_v14 }
0x17de   :  { %5565 = vmatprep.subr.bf16.mxu0 %v6447_v0 }
0x17e1   :  { %5566 = vmatpush3.bf16.msra.mxu0 %v5886_v26 }
0x17e2   :  { %5567 = vmatprep.subr.bf16.mxu0 %v6447_v0 }
0x17e5   :  { %5568 = vmatpush3.bf16.msra.mxu0 %v5887_v27 }
0x17e6   :  { %5579 = vmatprep.subr.bf16.mxu0 %v6447_v0 }
0x1898   :  { %v2760_v16 = vpop.f32.mrf.mxu0 }
0x1899   :  { %v2761_v18 = vadd.f32 %v2760_v16, %v2714_v5  ;;  %v5893_v5 = vld [vmem:[%s7332_s3 + $0x78] sm:$0xff]  }
0x189a   :  { %v5547_v19 = vpop.f32.mrf.mxu0 }
0x189b   :  { %v2774_v20 = vadd.f32 %v4926_v17, %v2761_v18 }
0x189c   :  { %v2763_v21 = vpop.f32.mrf.mxu0 }
0x189d   :  { %vm2775_vm13 = vcmp.ge.f32.partialorder %v2774_v20, 0.0  ;;  %v2776_v22 = vmul.f32 0.01, %v2774_v20  ;;  %v5896_v21 = vld [vmem:[%s7332_s3 + $0x60] sm:$0xff]  }
0x189e   :  { %v5548_v23 = vpop.f32.mrf.mxu0 }
0x189f   :  { %v2777_v24 = vsel %vm2775_vm13, %v2774_v20, %v2776_v22  ;;  %v5895_v20 = vld [vmem:[%s7332_s3 + $0x68] sm:$0xff]   ;;  %v4967_v22 = vld [vmem:[#allocation22 + $0x3] ss:$0 sm:$0xff] }
0x18a0   :  { %v2778_v25 = vpack.c.bf16 %v2777_v24, %v2777_v24 }
0x18a2   :  { %5558 = vmatmul.mubr.msk.bf16.vlgmr.msra.gmra.mxu1 %vm2122_vm7, %v2778_v25 }
0x18a3   :  { %5575 = vmatprep.mubr.msk.bf16.mxu1 %vm6448_vm0, %v6447_v0  ;;  %5574 = vmatpush3.bf16.msra.mxu1 %v5888_v47 }
0x18a4   :  { %5585 = vmatprep.subr.bf16.mxu1 %v6447_v0 }
0x18aa   :  { %5576 = vmatmul.mubr.msk.bf16.vlgmr.msra.gmra.mxu1 %vm425_vm2, %v6703_v3 }
0x18ab   :  { %5593 = vmatprep.mubr.msk.bf16.mxu1 %vm6448_vm0, %v6447_v0  ;;  %5586 = vmatpush3.bf16.msra.mxu1 %v5889_v54 }
0x18ac   :  { %5587 = vmatprep.subr.bf16.mxu1 %v6447_v0 }
0x18af   :  { %5588 = vmatpush3.bf16.msra.mxu1 %v5890_v13  ;;  %v5897_v13 = vld [vmem:[%s7333_s12] sm:$0xff]  }
0x18b0   :  { %5589 = vmatprep.subr.bf16.mxu1 %v6447_v0 }
0x18b3   :  { %5590 = vmatpush3.bf16.msra.mxu1 %v5891_v1  ;;  %v4989_v1 = vld [vmem:[#allocation26] ss:$0 sm:$0xff] }
0x18b4   :  { %5591 = vmatprep.subr.bf16.mxu1 %v6447_v0 }
0x18b7   :  { %5592 = vmatpush3.bf16.msra.mxu1 %v5892_v4 }
0x18b8   :  { %5609 = vmatprep.subr.mxu1 %v6447_v0 }
0x1962   :  { %v2857_v29 = vpop.f32.mrf.mxu1 }
0x1963   :  { %v2858_v30 = vadd.f32 %v4935_v28, %v2857_v29 }
0x1964   :  { %v5559_v31 = vpop.f32.mrf.mxu1 }
0x1965   :  { %vm2863_vm14 = vcmp.ge.f32.partialorder %v2858_v30, 0.0  ;;  %v2864_v32 = vmul.f32 0.01, %v2858_v30  ;;  %v3274_v31 = vld [vmem:[#allocation16 + $0x18] sm:$0xff] }
0x1966   :  { %v2860_v33 = vpop.f32.mrf.mxu1 }
0x1967   :  { %v2865_v34 = vsel %vm2863_vm14, %v2858_v30, %v2864_v32  ;;  %v3273_v32 = vld [vmem:[#allocation16 + $0x10] sm:$0xff]  ;;  %v4981_v33 = vld [vmem:[#allocation23 + $0x3] ss:$0 sm:$0xff] }
0x1968   :  { %v2866_v35 = vpack.c.bf16 %v2865_v34, %v2865_v34  ;;  %v5560_v36 = vpop.f32.mrf.mxu1 }
0x196a   :  { %5570 = vmatmul.mubr.msk.bf16.vlgmr.msra.gmra.mxu0 %vm2122_vm7, %v2866_v35  ;;  %v3010_v10 = vpop.f32.mrf.mxu1 }
0x196b   :  { %5581 = vmatprep.mubr.msk.bf16.mxu0 %vm6448_vm0, %v6447_v0  ;;  %5580 = vmatpush3.bf16.msra.mxu0 %v3023_v52 }
0x196c   :  { %5597 = vmatprep.subr.bf16.mxu0 %v6447_v0  ;;  %v5577_v15 = vpop.f32.mrf.mxu1 }
0x196e   :  { %v3013_v60 = vpop.f32.mrf.mxu1 }
0x1970   :  { %v5578_v61 = vpop.f32.mrf.mxu1 }
0x1a2a   :  { %v2945_v38 = vpop.f32.mrf.mxu0 }
0x1a2b   :  { %v2946_v39 = vadd.f32 %v4949_v37, %v2945_v38 }
0x1a2c   :  { %v5571_v40 = vpop.f32.mrf.mxu0 }
0x1a2d   :  { %5941 = vtanh.f32 %v2946_v39 }
0x1a2e   :  { %v2948_v42 = vpop.f32.mrf.mxu0 }
0x1a2f   :  { %v4988_v42 = vld [vmem:[#allocation25] ss:$0 sm:$0xff] }
0x1a30   :  { %v5572_v43 = vpop.f32.mrf.mxu0 }
0x1a3a   :  { %v7061_v44 = vpop.eup %5941 }
0x1a3b   :  { %v2952_v45 = vmul.f32 1.442695, %v7061_v44 }
0x1a3d   :  { %5943 = vpow2.f32 %v2952_v45 }
0x1a4a   :  { %v5944_v53 = vpop.eup %5943 }
0x1a4b   :  { %2955 = vrot.lane.b32.xlu1 %v5944_v53, %s6441_s1 }
0x1abd   :  { %v2956_v56 = vpop.permute.xlu1 %2955 }
0x1abe   :  { %v2958_v57 = vmul.f32 %v2956_v56, %v7036_v2 }
0x1ac0   :  { %v2959_v58 = vadd.f32 %v2958_v57, %v2946_v39 }
0x1ac2   :  { %v2964_v59 = vpack.c.bf16 %v2959_v58, %v2959_v58 }
0x1ac4   :  { %3017 = vrot.lane.b32.xlu0 %v2964_v59, %s6451_s10 }
0x1ac8   :  { %3264 = vrot.lane.b32.xlu0 %v2959_v58, %s6451_s10 }
0x1acc   :  { %3355 = vrot.lane.b32.xlu0 %v4988_v42, %s6441_s1 }
0x1b36   :  { %v3018_v62 = vpop.permute.xlu0 %3017 }
0x1b37   :  { %5582 = vmatmul.mubr.msk.bf16.vlgmr.msra.gmra.mxu0 %vm2023_vm5, %v3018_v62 }
0x1b38   :  { %5605 = vmatprep.mubr.msk.bf16.mxu0 %vm6448_vm0, %v6447_v0  ;;  %5598 = vmatpush3.bf16.msra.mxu0 %v5893_v5 }
0x1b39   :  { %5599 = vmatprep.subr.bf16.mxu0 %v6447_v0 }
0x1b3a   :  { %v3265_v52 = vpop.permute.xlu0 %3264 }
0x1b3c   :  { %5600 = vmatpush3.bf16.msra.mxu0 %v5894_v6 }
0x1b3d   :  { %5601 = vmatprep.subr.bf16.mxu0 %v6447_v0 }
0x1b3e   :  { %v3356_v57 = vpop.permute.xlu0 %3355 }
0x1b40   :  { %5602 = vmatpush3.bf16.msra.mxu0 %v5895_v20 }
0x1b41   :  { %5603 = vmatprep.subr.bf16.mxu0 %v6447_v0 }
0x1b44   :  { %5604 = vmatpush3.bf16.msra.mxu0 %v5896_v21 }
0x1b45   :  { %5616 = vmatprep.subr.bf16.mxu0 %v6447_v0 }
0x1bf7   :  { %v3059_v7 = vpop.f32.mrf.mxu0 }
0x1bf8   :  { %v3060_v9 = vadd.f32 %v3059_v7, %v3010_v10 }
0x1bf9   :  { %v5583_v11 = vpop.f32.mrf.mxu0 }
0x1bfa   :  { %v3073_v12 = vadd.f32 %v4958_v8, %v3060_v9  ;;  %v5898_v9 = vld [vmem:[%s7334_s0 + $0x8] sm:$0xff]   ;;  %v5899_v11 = vld [vmem:[%s7334_s0] sm:$0xff]  }
0x1bfb   :  { %v3062_v14 = vpop.f32.mrf.mxu0 }
0x1bfc   :  { %vm3074_vm15 = vcmp.ge.f32.partialorder %v3073_v12, 0.0  ;;  %v3075_v16 = vmul.f32 0.01, %v3073_v12  ;;  %v4993_v14 = vld [vmem:[#allocation31] ss:$0 sm:$0xff] }
0x1bfd   :  { %v5584_v17 = vpop.f32.mrf.mxu0 }
0x1bfe   :  { %v3076_v18 = vsel %vm3074_vm15, %v3073_v12, %v3075_v16 }
0x1bff   :  { %v3077_v19 = vpack.c.bf16 %v3076_v18, %v3076_v18 }
0x1c01   :  { %5594 = vmatmul.mubr.msk.bf16.vlgmr.msra.gmra.mxu1 %vm2122_vm7, %v3077_v19 }
0x1c02   :  { %5613 = vmatprep.mubr.msk.f32.mxu1 %vm6448_vm0, %v6447_v0  ;;  %5610 = vmatpush3.msra.mxu1 %v3274_v31 }
0x1c03   :  { %5611 = vmatprep.subr.mxu1 %v6447_v0 }
0x1c04   :  { %5612 = vmatpush3.msra.mxu1 %v3273_v32 }
0x1c05   :  { %5622 = vmatprep.subr.bf16.mxu1 %v6447_v0 }
0x1cc1   :  { %v3156_v23 = vpop.f32.mrf.mxu1 }
0x1cc2   :  { %v3157_v24 = vadd.f32 %v4967_v22, %v3156_v23 }
0x1cc3   :  { %v5595_v25 = vpop.f32.mrf.mxu1 }
0x1cc4   :  { %vm3162_vm1 = vcmp.ge.f32.partialorder %v3157_v24, 0.0  ;;  %v3163_v26 = vmul.f32 0.01, %v3157_v24  ;;  %v5901_v25 = vld [vmem:[%s6612_s21] sm:$0xff]  }
0x1cc5   :  { %v3159_v27 = vpop.f32.mrf.mxu1 }
0x1cc6   :  { %v3164_v28 = vsel %vm3162_vm1, %v3157_v24, %v3163_v26  ;;  %v5900_v24 = vld [vmem:[%s6612_s21 + $0x8] sm:$0xff]   ;;  %v4994_v26 = vld [vmem:[%s7335_s15] ss:$0 sm:$0xff] }
0x1cc7   :  { %v3165_v29 = vpack.c.bf16 %v3164_v28, %v3164_v28  ;;  %v5596_v30 = vpop.f32.mrf.mxu1 }
0x1cc9   :  { %5606 = vmatmul.mubr.msk.bf16.vlgmr.msra.gmra.mxu0 %vm2122_vm7, %v3165_v29  ;;  %vm3423_vm7 = vcmask 31744  }
0x1cca   :  { %5618 = vmatprep.mubr.msk.bf16.mxu0 %vm6448_vm0, %v6447_v0  ;;  %5617 = vmatpush3.bf16.msra.mxu0 %v5897_v13 }
0x1ccb   :  { %5628 = vmatprep.subr.bf16.mxu0 %v6447_v0 }
0x1cd1   :  { %5619 = vmatmul.mubr.msk.bf16.vlgmr.msra.gmra.mxu0 %vm425_vm2, %v6703_v3 }
0x1cd2   :  { %5632 = vmatprep.mubr.msk.bf16.mxu0 %vm6448_vm0, %v6447_v0  ;;  %5629 = vmatpush3.bf16.msra.mxu0 %v5898_v9 }
0x1cd3   :  { %5630 = vmatprep.subr.bf16.mxu0 %v6447_v0 }
0x1cd6   :  { %5631 = vmatpush3.bf16.msra.mxu0 %v5899_v11 }
0x1cd7   :  { %5644 = vmatprep.subr.bf16.mxu0 %v6447_v0 }
0x1d89   :  { %v3244_v34 = vpop.f32.mrf.mxu0 }
0x1d8a   :  { %v3245_v35 = vadd.f32 %v4981_v33, %v3244_v34 }
0x1d8b   :  { %v5607_v36 = vpop.f32.mrf.mxu0 }
0x1d8c   :  { %3255 = vrot.lane.b32.xlu1 %v3245_v35, %s6451_s10  ;;  %5945 = vtanh.f32 %v3245_v35  ;;  %v4998_v35 = vld [vmem:[%s6617_s19] ss:$0 sm:$0xff] }
0x1d8d   :  { %v3247_v37 = vpop.f32.mrf.mxu0 }
0x1d8f   :  { %v5608_v38 = vpop.f32.mrf.mxu0 }
0x1d91   :  { %v3417_v15 = vpop.f32.mrf.mxu0 }
0x1d93   :  { %v5620_v60 = vpop.f32.mrf.mxu0 }
0x1d95   :  { %v3420_v61 = vpop.f32.mrf.mxu0 }
0x1d96   :  { %v5903_v61 = vld [vmem:[%s7334_s0 + $0x18] sm:$0xff]  }
0x1d97   :  { %v5621_v62 = vpop.f32.mrf.mxu0 }
0x1d98   :  { %v5904_v62 = vld [vmem:[%s7334_s0 + $0x10] sm:$0xff]  }
0x1d99   :  { %v7103_v39 = vpop.eup %5945 }
0x1d9a   :  { %v3251_v40 = vmul.f32 1.442695, %v7103_v39 }
0x1d9c   :  { %5947 = vpow2.f32 %v3251_v40 }
0x1da9   :  { %v5948_v43 = vpop.eup %5947 }
0x1daa   :  { %v3253_v45 = vmul.f32 %v5948_v43, %v7036_v2  ;;  %v3374_v2 = vld [vmem:[#allocation29] sm:$0x3] }
0x1dab   :  { %v3429_v56 = vsel %vm3427_vm4, %v3374_v2, 0 }
0x1dfe   :  { %v3256_v47 = vpop.permute.xlu1 %3255 }
0x1dff   :  { %v3258_v50 = vadd.f32 %v3256_v47, %v3253_v45  ;;  %v5902_v47 = vld [vmem:[%s7333_s12 + $0x8] sm:$0xff]  }
0x1e01   :  { %3268 = vrot.lane.b32.xlu1 %v3258_v50, %s6441_s1  ;;  %v3635_v50 = vld [vmem:[#allocation29 + $0x2] sm:$0x3] }
0x1e73   :  { %v3269_v53 = vpop.permute.xlu1 %3268 }
0x1e74   :  { %v3271_v54 = vsel %vm2023_vm5, %v3265_v52, %v3269_v53  ;;  %v3692_v52 = vsel %vm3427_vm4, %v3635_v50, 0 }
0x1e75   :  { %5614 = vmatmul.mubr.msk.f32.vlgmr.msra.gmra.mxu1 %vm425_vm2, %v3271_v54 }
0x1e76   :  { %5624 = vmatprep.mubr.msk.bf16.mxu1 %vm6448_vm0, %v6447_v0  ;;  %5623 = vmatpush3.bf16.msra.mxu1 %v3429_v56 }
0x1e77   :  { %5636 = vmatprep.subr.bf16.mxu1 %v6447_v0 }
0x1f35   :  { %v7121_v58 = vpop.f32.mrf.mxu1 }
0x1f36   :  { %v3358_v59 = vadd.f32 %v3356_v57, %v7121_v58 }
0x1f37   :  { %v5615_v10 = vpop.f32.mrf.mxu1 }
0x1f38   :  { %3366 = vrot.lane.b32.xlu1 %v3358_v59, %s6451_s10 }
0x1faa   :  { %v3367_v4 = vpop.permute.xlu1 %3366 }
0x1fab   :  { %v3369_v5 = vmul.f32 %v4989_v1, %v3367_v4  ;;  %v5007_v4 = vld [vmem:[#allocation31 + $0x1] ss:$0 sm:$0xff] }
0x1fad   :  { %vm3370_vm6 = vcmp.ge.f32.partialorder %v3369_v5, 0.0  ;;  %v3371_v6 = vmul.f32 0.9, %v3369_v5 }
0x1faf   :  { %v7125_v7 = vsel %vm3370_vm6, %v3369_v5, %v3371_v6 }
0x1fb0   :  { %v3373_v8 = vpack.c.bf16 %v7125_v7, %v7125_v7 }
0x1fb2   :  { %5625 = vmatmul.mubr.msk.bf16.vlgmr.msra.gmra.mxu1 %vm3423_vm7, %v3373_v8 }
0x1fb3   :  { %5640 = vmatprep.mubr.msk.bf16.mxu1 %vm6448_vm0, %v6447_v0  ;;  %5637 = vmatpush3.bf16.msra.mxu1 %v5900_v24 }
0x1fb4   :  { %5638 = vmatprep.subr.bf16.mxu1 %v6447_v0 }
0x1fb7   :  { %5639 = vmatpush3.bf16.msra.mxu1 %v5901_v25 }
0x1fb8   :  { %5650 = vmatprep.subr.bf16.mxu1 %v6447_v0 }
0x2072   :  { %v3465_v12 = vpop.f32.mrf.mxu1 }
0x2073   :  { %v3466_v16 = vadd.f32 %v3465_v12, %v3417_v15 }
0x2074   :  { %v5626_v17 = vpop.f32.mrf.mxu1 }
0x2075   :  { %v3478_v18 = vadd.f32 %v4993_v14, %v3466_v16  ;;  %v5905_v17 = vld [vmem:[%s6612_s21 + $0x18] sm:$0xff]  }
0x2076   :  { %v3468_v19 = vpop.f32.mrf.mxu1 }
0x2077   :  { %vm3479_vm8 = vcmp.ge.f32.partialorder %v3478_v18, 0.0  ;;  %v3480_v20 = vmul.f32 0.01, %v3478_v18  ;;  %v5013_v19 = vld [vmem:[%s7335_s15 + $0x1] ss:$0 sm:$0xff] }
0x2078   :  { %v5627_v21 = vpop.f32.mrf.mxu1 }
0x2079   :  { %v3481_v22 = vsel %vm3479_vm8, %v3478_v18, %v3480_v20  ;;  %v5906_v18 = vld [vmem:[%s6612_s21 + $0x10] sm:$0xff]  }
0x207a   :  { %v3482_v23 = vpack.c.bf16 %v3481_v22, %v3481_v22 }
0x207c   :  { %5633 = vmatmul.mubr.msk.bf16.vlgmr.msra.gmra.mxu0 %vm3506_vm9, %v3482_v23 }
0x207d   :  { %5646 = vmatprep.mubr.msk.bf16.mxu0 %vm6448_vm0, %v6447_v0  ;;  %5645 = vmatpush3.bf16.msra.mxu0 %v5902_v47 }
0x207e   :  { %5656 = vmatprep.subr.bf16.mxu0 %v6447_v0 }
0x2084   :  { %5647 = vmatmul.mubr.msk.bf16.vlgmr.msra.gmra.mxu0 %vm425_vm2, %v6703_v3 }
0x2085   :  { %5660 = vmatprep.mubr.msk.bf16.mxu0 %vm6448_vm0, %v6447_v0  ;;  %5657 = vmatpush3.bf16.msra.mxu0 %v5903_v61 }
0x2086   :  { %5658 = vmatprep.subr.bf16.mxu0 %v6447_v0 }
0x2089   :  { %5659 = vmatpush3.bf16.msra.mxu0 %v5904_v62 }
0x208a   :  { %5672 = vmatprep.subr.mxu0 %v6447_v0 }
0x213c   :  { %v3544_v27 = vpop.f32.mrf.mxu0 }
0x213d   :  { %v3545_v28 = vadd.f32 %v4994_v26, %v3544_v27 }
0x213e   :  { %v5634_v29 = vpop.f32.mrf.mxu0 }
0x213f   :  { %vm3550_vm11 = vcmp.ge.f32.partialorder %v3545_v28, 0.0  ;;  %v3551_v30 = vmul.f32 0.01, %v3545_v28  ;;  %v5022_v29 = vld [vmem:[%s6617_s19 + $0x1] ss:$0 sm:$0xff] }
0x2140   :  { %v3547_v31 = vpop.f32.mrf.mxu0 }
0x2141   :  { %v3552_v32 = vsel %vm3550_vm11, %v3545_v28, %v3551_v30  ;;  %v3909_v28 = vld [vmem:[#allocation28] sm:$0xff] }
0x2142   :  { %v3553_v33 = vpack.c.bf16 %v3552_v32, %v3552_v32  ;;  %v5635_v34 = vpop.f32.mrf.mxu0 }
0x2144   :  { %5641 = vmatmul.mubr.msk.bf16.vlgmr.msra.gmra.mxu1 %vm3506_vm9, %v3553_v33  ;;  %v3679_v57 = vpop.f32.mrf.mxu0 }
0x2145   :  { %5652 = vmatprep.mubr.msk.bf16.mxu1 %vm6448_vm0, %v6447_v0  ;;  %5651 = vmatpush3.bf16.msra.mxu1 %v3692_v52  ;;  %v5907_v52 = vld [vmem:[%s7333_s12 + $0x10] sm:$0xff]  }
0x2146   :  { %5664 = vmatprep.subr.bf16.mxu1 %v6447_v0  ;;  %v5648_v59 = vpop.f32.mrf.mxu0 }
0x2148   :  { %v3682_v10 = vpop.f32.mrf.mxu0 }
0x214a   :  { %v5649_v15 = vpop.f32.mrf.mxu0 }
0x2204   :  { %v3614_v36 = vpop.f32.mrf.mxu1 }
0x2205   :  { %v3615_v37 = vadd.f32 %v4998_v35, %v3614_v36 }
0x2206   :  { %v5642_v38 = vpop.f32.mrf.mxu1 }
0x2207   :  { %5949 = vtanh.f32 %v3615_v37 }
0x2208   :  { %v3617_v40 = vpop.f32.mrf.mxu1 }
0x220a   :  { %v5643_v42 = vpop.f32.mrf.mxu1 }
0x2214   :  { %v7148_v43 = vpop.eup %5949 }
0x2215   :  { %v3621_v45 = vmul.f32 1.442695, %v7148_v43 }
0x2217   :  { %5951 = vpow2.f32 %v3621_v45 }
0x2224   :  { %v5952_v53 = vpop.eup %5951 }
0x2225   :  { %3624 = vrot.lane.b32.xlu0 %v5952_v53, %s6428_s11 }
0x2297   :  { %v3625_v54 = vpop.permute.xlu0 %3624 }
0x2298   :  { %v3627_v13 = vmul.f32 %v3625_v54, %v7125_v7  ;;  %v5026_v54 = vld [vmem:[#allocation25 + $0x1] ss:$0 sm:$0xff] }
0x229a   :  { %v3628_v2 = vadd.f32 %v3627_v13, %v3615_v37  ;;  %v5028_v13 = vld [vmem:[#allocation26 + $0x1] ss:$0 sm:$0xff] }
0x229c   :  { %v3633_v56 = vpack.c.bf16 %v3628_v2, %v3628_v2 }
0x229e   :  { %3686 = vrot.lane.b32.xlu1 %v3633_v56, %s6452_s16 }
0x22a2   :  { %3901 = vrot.lane.b32.xlu1 %v3628_v2, %s6452_s16 }
0x2310   :  { %v3687_v60 = vpop.permute.xlu1 %3686 }
0x2311   :  { %5653 = vmatmul.mubr.msk.bf16.vlgmr.msra.gmra.mxu1 %vm3423_vm7, %v3687_v60 }
0x2312   :  { %5668 = vmatprep.mubr.msk.bf16.mxu1 %vm6448_vm0, %v6447_v0  ;;  %5665 = vmatpush3.bf16.msra.mxu1 %v5905_v17 }
0x2313   :  { %5666 = vmatprep.subr.bf16.mxu1 %v6447_v0 }
0x2314   :  { %v3902_v45 = vpop.permute.xlu1 %3901 }
0x2316   :  { %5667 = vmatpush3.bf16.msra.mxu1 %v5906_v18 }
0x2317   :  { %5677 = vmatprep.subr.bf16.mxu1 %v6447_v0 }
0x23d1   :  { %v3728_v1 = vpop.f32.mrf.mxu1 }
0x23d2   :  { %v3729_v5 = vadd.f32 %v3728_v1, %v3679_v57 }
0x23d3   :  { %v5654_v6 = vpop.f32.mrf.mxu1 }
0x23d4   :  { %v3742_v8 = vadd.f32 %v5007_v4, %v3729_v5  ;;  %v5908_v5 = vld [vmem:[%s7334_s0 + $0x28] sm:$0xff]   ;;  %v5909_v6 = vld [vmem:[%s7334_s0 + $0x20] sm:$0xff]  }
0x23d5   :  { %v3731_v9 = vpop.f32.mrf.mxu1 }
0x23d6   :  { %vm3743_vm12 = vcmp.ge.f32.partialorder %v3742_v8, 0.0  ;;  %v3744_v11 = vmul.f32 0.01, %v3742_v8  ;;  %v5034_v9 = vld [vmem:[#allocation31 + $0x2] ss:$0 sm:$0xff] }
0x23d7   :  { %v5655_v12 = vpop.f32.mrf.mxu1 }
0x23d8   :  { %v3745_v14 = vsel %vm3743_vm12, %v3742_v8, %v3744_v11 }
0x23d9   :  { %v3746_v16 = vpack.c.bf16 %v3745_v14, %v3745_v14 }
0x23db   :  { %5661 = vmatmul.mubr.msk.bf16.vlgmr.msra.gmra.mxu0 %vm3506_vm9, %v3746_v16 }
0x23dc   :  { %5674 = vmatprep.mubr.msk.f32.mxu0 %vm6448_vm0, %v6447_v0  ;;  %5673 = vmatpush3.msra.mxu0 %v3909_v28 }
0x23dd   :  { %5683 = vmatprep.subr.bf16.mxu0 %v6447_v0 }
0x249b   :  { %v3809_v20 = vpop.f32.mrf.mxu0 }
0x249c   :  { %v3810_v21 = vadd.f32 %v5013_v19, %v3809_v20 }
0x249d   :  { %v5662_v22 = vpop.f32.mrf.mxu0 }
0x249e   :  { %vm3815_vm13 = vcmp.ge.f32.partialorder %v3810_v21, 0.0  ;;  %v3816_v23 = vmul.f32 0.01, %v3810_v21  ;;  %v5911_v22 = vld [vmem:[%s6612_s21 + $0x20] sm:$0xff]  }
0x249f   :  { %v3812_v24 = vpop.f32.mrf.mxu0 }
0x24a0   :  { %v3817_v25 = vsel %vm3815_vm13, %v3810_v21, %v3816_v23  ;;  %v5910_v21 = vld [vmem:[%s6612_s21 + $0x28] sm:$0xff]   ;;  %v5040_v23 = vld [vmem:[%s7335_s15 + $0x2] ss:$0 sm:$0xff] }
0x24a1   :  { %v3818_v26 = vpack.c.bf16 %v3817_v25, %v3817_v25  ;;  %v5663_v27 = vpop.f32.mrf.mxu0 }
0x24a3   :  { %5669 = vmatmul.mubr.msk.bf16.vlgmr.msra.gmra.mxu1 %vm3506_vm9, %v3818_v26 }
0x24a4   :  { %5679 = vmatprep.mubr.msk.bf16.mxu1 %vm6448_vm0, %v6447_v0  ;;  %5678 = vmatpush3.bf16.msra.mxu1 %v5907_v52 }
0x24a5   :  { %5689 = vmatprep.subr.bf16.mxu1 %v6447_v0 }
0x24ab   :  { %5680 = vmatmul.mubr.msk.bf16.vlgmr.msra.gmra.mxu1 %vm425_vm2, %v6703_v3 }
0x24ac   :  { %5693 = vmatprep.mubr.msk.bf16.mxu1 %vm6448_vm0, %v6447_v0  ;;  %5690 = vmatpush3.bf16.msra.mxu1 %v5908_v5 }
0x24ad   :  { %5691 = vmatprep.subr.bf16.mxu1 %v6447_v0 }
0x24b0   :  { %5692 = vmatpush3.bf16.msra.mxu1 %v5909_v6 }
0x24b1   :  { %5705 = vmatprep.subr.bf16.mxu1 %v6447_v0 }
0x2563   :  { %v3881_v30 = vpop.f32.mrf.mxu1 }
0x2564   :  { %v3882_v31 = vadd.f32 %v5022_v29, %v3881_v30 }
0x2565   :  { %v5670_v32 = vpop.f32.mrf.mxu1 }
0x2566   :  { %3892 = vrot.lane.b32.xlu0 %v3882_v31, %s6452_s16  ;;  %5953 = vtanh.f32 %v3882_v31  ;;  %v5049_v32 = vld [vmem:[%s6617_s19 + $0x2] ss:$0 sm:$0xff] }
0x2567   :  { %v3884_v33 = vpop.f32.mrf.mxu1 }
0x2569   :  { %v5671_v34 = vpop.f32.mrf.mxu1 }
0x256b   :  { %v4049_v61 = vpop.f32.mrf.mxu1 }
0x256d   :  { %v5681_v62 = vpop.f32.mrf.mxu1 }
0x256e   :  { %v5058_v62 = vld [vmem:[#allocation31 + $0x3] ss:$0 sm:$0xff] }
0x256f   :  { %v4052_v1 = vpop.f32.mrf.mxu1 }
0x2571   :  { %v5682_v4 = vpop.f32.mrf.mxu1 }
0x2573   :  { %v7184_v35 = vpop.eup %5953 }
0x2574   :  { %v3888_v36 = vmul.f32 1.442695, %v7184_v35 }
0x2576   :  { %5955 = vpow2.f32 %v3888_v36 }
0x2583   :  { %v5956_v37 = vpop.eup %5955 }
0x2584   :  { %v3890_v38 = vmul.f32 %v5956_v37, %v7125_v7  ;;  %v4005_v7 = vld [vmem:[#allocation29 + $0x4] sm:$0x3] }
0x2585   :  { %v4059_v53 = vsel %vm3427_vm4, %v4005_v7, 0 }
0x25d8   :  { %v3893_v40 = vpop.permute.xlu0 %3892 }
0x25d9   :  { %v3895_v42 = vadd.f32 %v3893_v40, %v3890_v38 }
0x25db   :  { %3905 = vrot.lane.b32.xlu0 %v3895_v42, %s6428_s11 }
0x264d   :  { %v3906_v47 = vpop.permute.xlu0 %3905 }
0x264e   :  { %v3908_v50 = vsel %vm3423_vm7, %v3902_v45, %v3906_v47  ;;  %v5912_v47 = vld [vmem:[%s7333_s12 + $0x18] sm:$0xff]  }
0x264f   :  { %5675 = vmatmul.mubr.msk.f32.vlgmr.msra.gmra.mxu0 %vm2023_vm5, %v3908_v50  ;;  %v4269_v50 = vld [vmem:[#allocation29 + $0x6] sm:$0x3] }
0x2650   :  { %5685 = vmatprep.mubr.msk.bf16.mxu0 %vm6448_vm0, %v6447_v0  ;;  %5684 = vmatpush3.bf16.msra.mxu0 %v4059_v53  ;;  %v4326_v52 = vsel %vm3427_vm4, %v4269_v50, 0  ;;  %v2960_v50 = vsel %vm2023_vm5, %v7061_v44, 0.0 }
0x2651   :  { %5697 = vmatprep.subr.bf16.mxu0 %v6447_v0 }
0x270f   :  { %v3989_v2 = vpop.f32.mrf.mxu0 }
0x2710   :  { %v3990_v56 = vadd.f32 %v5026_v54, %v3989_v2  ;;  %v744_v2 = vsel %vm474_vm3, %v6751_v55, 0.0  ;;  %v3896_v55 = vsel %vm3423_vm7, %v7184_v35, 0.0 }
0x2711   :  { %v5676_v57 = vpop.f32.mrf.mxu0 }
0x2712   :  { %v3999_v59 = vmul.f32 %v5028_v13, %v3990_v56  ;;  %v1521_v56 = vsel %vm474_vm3, %v6868_v51, 0.0  ;;  %v2560_v57 = vsel %vm2023_vm5, %v7016_v41, 0.0 }
0x2714   :  { %vm4000_vm14 = vcmp.ge.f32.partialorder %v3999_v59, 0.0  ;;  %v4001_v10 = vmul.f32 0.9, %v3999_v59 }
0x2716   :  { %v7201_v15 = vsel %vm4000_vm14, %v3999_v59, %v4001_v10  ;;  %v3259_v59 = vsel %vm2023_vm5, %v7103_v39, 0.0  ;;  %v5914_v39 = vld [vmem:[%s7334_s0 + $0x30] sm:$0xff]  }
0x2717   :  { %v4003_v60 = vpack.c.bf16 %v7201_v15, %v7201_v15 }
0x2719   :  { %5686 = vmatmul.mubr.msk.bf16.vlgmr.msra.gmra.mxu0 %vm3423_vm7, %v4003_v60 }
0x271a   :  { %5701 = vmatprep.mubr.msk.bf16.mxu0 %vm6448_vm0, %v6447_v0  ;;  %5698 = vmatpush3.bf16.msra.mxu0 %v5910_v21 }
0x271b   :  { %5699 = vmatprep.subr.bf16.mxu0 %v6447_v0 }
0x271e   :  { %5700 = vmatpush3.bf16.msra.mxu0 %v5911_v22 }
0x271f   :  { %5711 = vmatprep.subr.bf16.mxu0 %v6447_v0 }
0x27d9   :  { %v4095_v8 = vpop.f32.mrf.mxu0 }
0x27da   :  { %v4096_v11 = vadd.f32 %v4095_v8, %v4049_v61  ;;  %v5913_v61 = vld [vmem:[%s7334_s0 + $0x38] sm:$0xff]  }
0x27db   :  { %v5687_v12 = vpop.f32.mrf.mxu0 }
0x27dc   :  { %v4109_v14 = vadd.f32 %v5034_v9, %v4096_v11 }
0x27dd   :  { %v4098_v16 = vpop.f32.mrf.mxu0 }
0x27de   :  { %vm4110_vm15 = vcmp.ge.f32.partialorder %v4109_v14, 0.0  ;;  %v4111_v17 = vmul.f32 0.01, %v4109_v14  ;;  %v5916_v16 = vld [vmem:[%s6612_s21 + $0x30] sm:$0xff]  }
0x27df   :  { %v5688_v18 = vpop.f32.mrf.mxu0 }
0x27e0   :  { %v4112_v19 = vsel %vm4110_vm15, %v4109_v14, %v4111_v17  ;;  %v5915_v14 = vld [vmem:[%s6612_s21 + $0x38] sm:$0xff]   ;;  %v5064_v17 = vld [vmem:[%s7335_s15 + $0x3] ss:$0 sm:$0xff]  ;;  %s6453_s21 = smov [#allocation32]  }
0x27e1   :  { %v4113_v20 = vpack.c.bf16 %v4112_v19, %v4112_v19 }
0x27e3   :  { %5694 = vmatmul.mubr.msk.bf16.vlgmr.msra.gmra.mxu1 %vm3506_vm9, %v4113_v20 }
0x27e4   :  { %5707 = vmatprep.mubr.msk.bf16.mxu1 %vm6448_vm0, %v6447_v0  ;;  %5706 = vmatpush3.bf16.msra.mxu1 %v5912_v47  ;;  %v2261_v47 = vsel %vm2023_vm5, %v6974_v48, 0.0 }
0x27e5   :  { %5717 = vmatprep.subr.bf16.mxu1 %v6447_v0 }
0x27eb   :  { %5708 = vmatmul.mubr.msk.bf16.vlgmr.msra.gmra.mxu1 %vm425_vm2, %v6703_v3  ;;  %v1858_v3 = vsel %vm474_vm3, %v6924_v46, 0.0 }
0x27ec   :  { %5721 = vmatprep.mubr.msk.bf16.mxu1 %vm6448_vm0, %v6447_v0  ;;  %5718 = vmatpush3.bf16.msra.mxu1 %v5913_v61 }
0x27ed   :  { %5719 = vmatprep.subr.bf16.mxu1 %v6447_v0 }
0x27f0   :  { %5720 = vmatpush3.bf16.msra.mxu1 %v5914_v39 }
0x27f1   :  { %5733 = vmatprep.subr.mxu1 %v6447_v0 }
0x28a3   :  { %v4176_v24 = vpop.f32.mrf.mxu1 }
0x28a4   :  { %v4177_v25 = vadd.f32 %v5040_v23, %v4176_v24 }
0x28a5   :  { %v5695_v26 = vpop.f32.mrf.mxu1 }
0x28a6   :  { %vm4182_vm1 = vcmp.ge.f32.partialorder %v4177_v25, 0.0  ;;  %v4183_v27 = vmul.f32 0.01, %v4177_v25  ;;  %v5073_v26 = vld [vmem:[%s6617_s19 + $0x3] ss:$0 sm:$0xff]  ;;  %s4637_s19 = sshll.u32 %s6453_s21, 4  ;;  %s4638_s19 = int_to_ptr.vmem [resolvable:$true] %s4637_s19 }
0x28a7   :  { %v4179_v28 = vpop.f32.mrf.mxu1  ;;  %p6350_p12 = scmp.lt.s32.totalorder %s4638_s19, %s4638_s19 }
0x28a8   :  { %v4184_v29 = vsel %vm4182_vm1, %v4177_v25, %v4183_v27 }
0x28a9   :  { %v4185_v30 = vpack.c.bf16 %v4184_v29, %v4184_v29  ;;  %v5696_v31 = vpop.f32.mrf.mxu1 }
0x28ab   :  { %5702 = vmatmul.mubr.msk.bf16.vlgmr.msra.gmra.mxu0 %vm3506_vm9, %v4185_v30  ;;  %v4313_v46 = vpop.f32.mrf.mxu1 }
0x28ac   :  { %5713 = vmatprep.mubr.msk.bf16.mxu0 %vm6448_vm0, %v6447_v0  ;;  %5712 = vmatpush3.bf16.msra.mxu0 %v4326_v52  ;;  %v3629_v52 = vsel %vm3423_vm7, %v7148_v43, 0.0 }
0x28ad   :  { %5725 = vmatprep.subr.bf16.mxu0 %v6447_v0  ;;  %v5709_v10 = vpop.f32.mrf.mxu1 }
0x28af   :  { %v4316_v60 = vpop.f32.mrf.mxu1 }
0x28b1   :  { %v5710_v41 = vpop.f32.mrf.mxu1 }
0x296b   :  { %v4248_v33 = vpop.f32.mrf.mxu0 }
0x296c   :  { %v4249_v34 = vadd.f32 %v5049_v32, %v4248_v33  ;;  %v4544_v33 = vld [vmem:[#allocation28 + $0x8] sm:$0xff] }
0x296d   :  { %v5703_v36 = vpop.f32.mrf.mxu0 }
0x296e   :  { %5957 = vtanh.f32 %v4249_v34 }
0x296f   :  { %v4251_v37 = vpop.f32.mrf.mxu0 }
0x2971   :  { %v5704_v38 = vpop.f32.mrf.mxu0 }
0x297b   :  { %v7224_v40 = vpop.eup %5957 }
0x297c   :  { %v4255_v42 = vmul.f32 1.442695, %v7224_v40 }
0x297e   :  { %5959 = vpow2.f32 %v4255_v42 }
0x298b   :  { %v5960_v45 = vpop.eup %5959 }
0x298c   :  { %4258 = vrot.lane.b32.xlu1 %v5960_v45, %s6428_s11  ;;  %v1081_v45 = vsel %vm474_vm3, %v6812_v49, 0.0 }
0x29fe   :  { %v4259_v7 = vpop.permute.xlu1 %4258 }
0x29ff   :  { %v4261_v53 = vmul.f32 %v4259_v7, %v7201_v15 }
0x2a01   :  { %v4262_v54 = vadd.f32 %v4261_v53, %v4249_v34 }
0x2a03   :  { %v4267_v13 = vpack.c.bf16 %v4262_v54, %v4262_v54 }
0x2a05   :  { %4320 = vrot.lane.b32.xlu0 %v4267_v13, %s6452_s16 }
0x2a09   :  { %4535 = vrot.lane.b32.xlu0 %v4262_v54, %s6452_s16 }
0x2a28   :  { %745 = vadd.xlane.f32.xlu0 %v744_v2 }
0x2a2c   :  { %1522 = vadd.xlane.f32.xlu0 %v1521_v56 }
0x2a30   :  { %1859 = vadd.xlane.f32.xlu0 %v1858_v3 }
0x2a34   :  { %2561 = vadd.xlane.f32.xlu0 %v2560_v57 }
0x2a38   :  { %3260 = vadd.xlane.f32.xlu0 %v3259_v59 }
0x2a3c   :  { %3897 = vadd.xlane.f32.xlu0 %v3896_v55 }
0x2a77   :  { %v4321_v51 = vpop.permute.xlu0 %4320 }
0x2a78   :  { %5714 = vmatmul.mubr.msk.bf16.vlgmr.msra.gmra.mxu0 %vm3423_vm7, %v4321_v51 }
0x2a79   :  { %5729 = vmatprep.mubr.msk.bf16.mxu0 %vm6448_vm0, %v6447_v0  ;;  %5726 = vmatpush3.bf16.msra.mxu0 %v5915_v14 }
0x2a7a   :  { %5727 = vmatprep.subr.bf16.mxu0 %v6447_v0 }
0x2a7b   :  { %v4536_v49 = vpop.permute.xlu0 %4535 }
0x2a7d   :  { %5728 = vmatpush3.bf16.msra.mxu0 %v5916_v16 }
0x2ab1   :  { %v746_v53 = vpop.xlane.xlu0 %745 }
0x2ab5   :  { %v1523_v44 = vpop.xlane.xlu0 %1522 }
0x2ab9   :  { %v1860_v54 = vpop.xlane.xlu0 %1859 }
0x2abd   :  { %v2562_v56 = vpop.xlane.xlu0 %2561 }
0x2b38   :  { %v4362_v35 = vpop.f32.mrf.mxu0 }
0x2b39   :  { %v4363_v1 = vadd.f32 %v4362_v35, %v4313_v46 }
0x2b3a   :  { %v5715_v4 = vpop.f32.mrf.mxu0 }
0x2b3b   :  { %v4376_v5 = vadd.f32 %v5058_v62, %v4363_v1 }
0x2b3c   :  { %v4365_v6 = vpop.f32.mrf.mxu0 }
0x2b3d   :  { %vm4377_vm4 = vcmp.ge.f32.partialorder %v4376_v5, 0.0  ;;  %v4378_v8 = vmul.f32 0.01, %v4376_v5 }
0x2b3e   :  { %v5716_v9 = vpop.f32.mrf.mxu0 }
0x2b3f   :  { %v4379_v11 = vsel %vm4377_vm4, %v4376_v5, %v4378_v8 }
0x2b40   :  { %v4380_v12 = vpack.c.bf16 %v4379_v11, %v4379_v11 }
0x2b42   :  { %5722 = vmatmul.mubr.msk.bf16.vlgmr.msra.gmra.mxu1 %vm3506_vm9, %v4380_v12 }
0x2b43   :  { %5735 = vmatprep.mubr.msk.f32.mxu1 %vm6448_vm0, %v6447_v0  ;;  %5734 = vmatpush3.msra.mxu1 %v4544_v33  ;;  %vm4629_vm0 = vcmask 7168  }
0x2c02   :  { %v4443_v18 = vpop.f32.mrf.mxu1 }
0x2c03   :  { %v4444_v19 = vadd.f32 %v5064_v17, %v4443_v18 }
0x2c04   :  { %v5723_v20 = vpop.f32.mrf.mxu1 }
0x2c05   :  { %vm4449_vm6 = vcmp.ge.f32.partialorder %v4444_v19, 0.0  ;;  %v4450_v21 = vmul.f32 0.01, %v4444_v19 }
0x2c06   :  { %v4446_v22 = vpop.f32.mrf.mxu1 }
0x2c07   :  { %v4451_v23 = vsel %vm4449_vm6, %v4444_v19, %v4450_v21 }
0x2c08   :  { %v4452_v24 = vpack.c.bf16 %v4451_v23, %v4451_v23  ;;  %v5724_v25 = vpop.f32.mrf.mxu1 }
0x2c0a   :  { %5730 = vmatmul.mubr.msk.bf16.vlgmr.msra.gmra.mxu0 %vm3506_vm9, %v4452_v24 }
0x2cca   :  { %v4515_v27 = vpop.f32.mrf.mxu0 }
0x2ccb   :  { %v4516_v28 = vadd.f32 %v5073_v26, %v4515_v27 }
0x2ccc   :  { %v5731_v29 = vpop.f32.mrf.mxu0 }
0x2ccd   :  { %5961 = vtanh.f32 %v4516_v28  ;;  %4526 = vrot.lane.b32.xlu1 %v4516_v28, %s6452_s16 }
0x2cce   :  { %v4518_v0 = vpop.f32.mrf.mxu0 }
0x2cd0   :  { %v5732_v30 = vpop.f32.mrf.mxu0 }
0x2cda   :  { %v5962_v31 = vpop.eup %5961 }
0x2cdb   :  { %v4530_v32 = vsel %vm3423_vm7, %v5962_v31, 0.0  ;;  %v4522_v34 = vmul.f32 1.442695, %v5962_v31 }
0x2cdc   :  { %4531 = vadd.xlane.f32.xlu0 %v4530_v32 }
0x2cdd   :  { %5963 = vpow2.f32 %v4522_v34 }
0x2cea   :  { %v5964_v36 = vpop.eup %5963 }
0x2ceb   :  { %v4524_v37 = vmul.f32 %v5964_v36, %v7201_v15  ;;  %v4263_v15 = vsel %vm3423_vm7, %v7224_v40, 0.0 }
0x2d3f   :  { %v4527_v38 = vpop.permute.xlu1 %4526 }
0x2d40   :  { %v4529_v42 = vadd.f32 %v4527_v38, %v4524_v37 }
0x2d42   :  { %4539 = vrot.lane.b32.xlu1 %v4529_v42, %s6428_s11  ;;  %s6345_s11 = scalar_lea.vmem %s4638_s19, 128 }
0x2d43   :  { %p6346_p11 = scmp.ne.s32.totalorder %s4638_s19, %s6345_s11  ;;  %p6351_p13 = scmp.lt.s32.totalorder %s6345_s11, %s6345_s11 }
0x2d45   :  { %p6352_p0 = por %p6351_p13, %p6350_p12 }
0x2d47   :  { %p6353_p1 = pnand %p6352_p0, %p6346_p11 }
0x2d66   :  { %1082 = vadd.xlane.f32.xlu1 %v1081_v45 }
0x2d6a   :  { %2262 = vadd.xlane.f32.xlu1 %v2261_v47 }
0x2d6e   :  { %2961 = vadd.xlane.f32.xlu1 %v2960_v50 }
0x2d72   :  { %3630 = vadd.xlane.f32.xlu1 %v3629_v52 }
0x2d76   :  { %4264 = vadd.xlane.f32.xlu1 %v4263_v15 }
0x2d87   :  { %4619 = vrot.lane.b32.xlu1 %v7121_v58, %s6441_s1  ;;  %v3261_v58 = vpop.xlane.xlu0 %3260 }
0x2d8b   :  { %v3898_v41 = vpop.xlane.xlu0 %3897 }
0x2d8f   :  { %v4532_v62 = vpop.xlane.xlu0 %4531 }
0x2db4   :  { %v4540_v7 = vpop.permute.xlu1 %4539 }
0x2db5   :  { %v4542_v48 = vsel %vm3423_vm7, %v4536_v49, %v4540_v7 }
0x2db6   :  { %5736 = vmatmul.mubr.msk.f32.vlgmr.msra.gmra.mxu1 %vm2023_vm5, %v4542_v48 }
0x2def   :  { %v1083_v13 = vpop.xlane.xlu1 %1082 }
0x2df0   :  { %v1084_v2 = vadd.f32 %v1083_v13, %v746_v53 }
0x2df2   :  { %v1524_v43 = vadd.f32 %v1523_v44, %v1084_v2 }
0x2df3   :  { %v2263_v3 = vpop.xlane.xlu1 %2262 }
0x2df4   :  { %v1861_v57 = vadd.f32 %v1860_v54, %v1524_v43 }
0x2df6   :  { %v2264_v40 = vadd.f32 %v2263_v3, %v1861_v57 }
0x2df7   :  { %v2962_v59 = vpop.xlane.xlu1 %2961 }
0x2df8   :  { %v2563_v55 = vadd.f32 %v2562_v56, %v2264_v40 }
0x2dfa   :  { %v2963_v51 = vadd.f32 %v2962_v59, %v2563_v55 }
0x2dfb   :  { %v3631_v46 = vpop.xlane.xlu1 %3630 }
0x2dfc   :  { %v3262_v10 = vadd.f32 %v3261_v58, %v2963_v51 }
0x2dfe   :  { %v3632_v60 = vadd.f32 %v3631_v46, %v3262_v10 }
0x2dff   :  { %v4265_v39 = vpop.xlane.xlu1 %4264 }
0x2e00   :  { %v3899_v61 = vadd.f32 %v3898_v41, %v3632_v60 }
0x2e02   :  { %v4266_v35 = vadd.f32 %v4265_v39, %v3899_v61 }
0x2e03   :  { %v4620_v6 = vpop.permute.xlu1 %4619 }
0x2e04   :  { %v4533_v1 = vadd.f32 %v4532_v62, %v4266_v35  ;;  %v4626_v8 = vsel %vm2023_vm5, %v6943_v63, %v4620_v6 }
0x2e06   :  { %4630 = vst.msk [vmem:[%s6627_s27] sm:$0xff] %vm4629_vm0, %v4533_v1 }
0x2e76   :  { %v4614_v4 = vpop.f32.mrf.mxu1 }
0x2e77   :  { %4623 = vrot.lane.b32.xlu0 %v4614_v4, %s6423_s23 }
0x2e78   :  { %v5737_v5 = vpop.f32.mrf.mxu1 }
0x2ee9   :  { %v4624_v9 = vpop.permute.xlu0 %4623 }
0x2eea   :  { %v4627_v11 = vsel %vm425_vm2, %v4626_v8, %v4624_v9 }
0x2eeb   :  { %4628 = vst.msk [vmem:[#allocation32] sm:$0xff] %vm1107_vm10, %v4627_v11 }
0x2eec   :  { %6356 = shalt.err (!%p6353_p1)
}
0x2eed   :  { %4640 = dma.vmem_to_hbm [thread:$0]  %s4638_s19, 128, %s6622_s8, [#allocation4]  }
0x2eee   :  { %6385 = dma.done.wait [#allocation4], 128  }
0x2eef   :  { %6386 = vsyncadd [#allocation4], 4294967168 }
0x2ef0   :  { %4648 = vsyncpa [#allocation3], 1 }
0x2ef1   :  { %4649 = vsyncpa [#allocation6], 1 }
0x2ef2   :  { %4650 = vsyncpa [#allocation9], 1 }
0x2ef3   :  { %4651 = vsyncpa [#allocation12], 1 }
0x2ef4   :  { %4652 = vsyncpa [#allocation15], 1 }
0x2ef5   :  { %4653 = vsyncpa [#allocation18], 1 }
0x2ef6   :  { %4654 = vsyncpa [#allocation21], 1 }
0x2ef7   :  { %4655 = vsyncpa [#allocation24], 1 }
0x2ef8   :  { %4656 = vsyncpa [#allocation27], 1 }
0x2ef9   :  { %4657 = vsyncpa [#allocation30], 1 }
0x2efa   :  { %4658 = vsyncpa [#allocation4], 1 }

</bundles_post_ra>
